<compile_context>
chip_gen: v7x
topology: tpu7x:2x2x1
jax: 0.10.0
libtpu: 0.0.40
codegen_flags: <defaults>
</compile_context>

<pallas_src>
import jax
import jax.numpy as jnp
from jax.experimental import pallas as pl
from jax.experimental.pallas import tpu as pltpu

B = 2            # batch
S = 8            # sequence length
BS = B * S       # flattened token axis (matmul M dim)
H = 128          # hidden size (real BERT: 768; scaled down, multiple of 128)
NH = 4           # attention heads
DH = H // NH     # head dim
F = 4 * H        # FFN intermediate size
NL = 2           # transformer layers
VOCAB = 64
NTYPE = 2
REL = 8          # relation_num (classifier output dim)
REL_PAD = 128    # lane-dense padded classifier width
LN_EPS = 1e-12


# ---------------------------------------------------------------- kernel ----

def _layernorm(x, g, b):
    mu = jnp.mean(x, axis=-1, keepdims=True)
    var = jnp.mean((x - mu) ** 2, axis=-1, keepdims=True)
    return (x - mu) * jax.lax.rsqrt(var + LN_EPS) * g + b


def fused_bert_kernel(emb_ref, mask_ref, eg_ref, eb_ref,
                      wqkv_ref, bqkv_ref, wo_ref, bo_ref, g1_ref, be1_ref,
                      w1_ref, b1_ref, w2_ref, b2_ref, g2_ref, be2_ref,
                      wp_ref, bp_ref, wc_ref, bc_ref, o_ref):
    x = _layernorm(emb_ref[...], eg_ref[...], eb_ref[...])   # (BS, H) f32
    mask = mask_ref[...]                                      # (BS, BS) additive
    scale = 1.0 / (DH ** 0.5)

    for li in range(NL):                                      # static, unrolled
        # ---- fused QKV projection: one (BS,H) x (H,3H) MXU push (bf16 in, f32 acc)
        qkv = (jnp.dot(x.astype(jnp.bfloat16), wqkv_ref[li],
                       preferred_element_type=jnp.float32) + bqkv_ref[li])
        q = qkv[:, 0:H] * scale           # fold 1/sqrt(DH) into q
        k = qkv[:, H:2 * H]
        v = qkv[:, 2 * H:3 * H]

        wo = wo_ref[li]                   # (H, H) bf16, loaded once per layer
        attn = jnp.zeros((BS, H), jnp.float32)
        for h in range(NH):               # static per-head loop, no lane concat
            sl = slice(h * DH, (h + 1) * DH)
            qh = q[:, sl].astype(jnp.bfloat16)
            kh = k[:, sl].astype(jnp.bfloat16)
            vh = v[:, sl].astype(jnp.bfloat16)
            s = jax.lax.dot_general(qh, kh, (((1,), (1,)), ((), ())),
                                    preferred_element_type=jnp.float32) + mask
            s = s - jnp.max(s, axis=-1, keepdims=True)
            p = jnp.exp(s)
            p = p * pl.reciprocal(jnp.sum(p, axis=-1, keepdims=True), approx=True)
            ctx_h = jnp.dot(p.astype(jnp.bfloat16), vh,
                            preferred_element_type=jnp.float32)       # (BS, DH)
            # head-concat folded into output projection:
            #   concat_h(ctx_h) @ Wo == sum_h ctx_h @ Wo[h*DH:(h+1)*DH, :]
            attn = attn + jnp.dot(ctx_h.astype(jnp.bfloat16), wo[sl, :],
                                  preferred_element_type=jnp.float32)
        x1 = _layernorm(x + attn + bo_ref[li], g1_ref[li], be1_ref[li])

        # ---- FFN ----
        h1 = (jnp.dot(x1.astype(jnp.bfloat16), w1_ref[li],
                      preferred_element_type=jnp.float32) + b1_ref[li])
        # TODO(synk): PyTorch BERT uses exact-erf GELU; tanh approximation here
        # differs at the ~1e-3 level.
        h1 = jax.nn.gelu(h1, approximate=True)
        h2 = (jnp.dot(h1.astype(jnp.bfloat16), w2_ref[li],
                      preferred_element_type=jnp.float32) + b2_ref[li])
        x = _layernorm(x1 + h2, g2_ref[li], be2_ref[li])

    # ---- pooler + classifier (computed for all BS rows; CLS rows sliced outside)
    pooled = jnp.tanh(jnp.dot(x.astype(jnp.bfloat16), wp_ref[...],
                              preferred_element_type=jnp.float32) + bp_ref[...])
    # TODO(synk): nn.Dropout is identity in eval/inference mode; stochastic
    # training-mode dropout is not implemented here.
    o_ref[...] = (jnp.dot(pooled.astype(jnp.bfloat16), wc_ref[...],
                          preferred_element_type=jnp.float32) + bc_ref[...])


# --------------------------------------------------------------- wrapper ----

def _fs(shape):
    nd = len(shape)
    return pl.BlockSpec(shape, lambda i, nd=nd: (0,) * nd)


def bert_classifier_forward(params, sent_in, attention_mask, token_type):
    # Embedding lookup (glue, plain JAX); LayerNorm happens inside the kernel.
    emb = (params['word_emb'][sent_in]
           + params['pos_emb'][None, :, :]
           + params['type_emb'][token_type]).astype(jnp.float32)
    emb = emb.reshape(BS, H)

    # Combined additive attention mask over the flattened B*S token axis:
    # block-diagonal across the batch + BERT-style (1 - mask) * -10000 padding.
    valid = attention_mask.astype(jnp.float32).reshape(BS)
    batch_id = jnp.repeat(jnp.arange(B), S)
    same_batch = (batch_id[:, None] == batch_id[None, :]).astype(jnp.float32)
    mask_add = (1.0 - same_batch * valid[None, :]) * -10000.0      # (BS, BS)

    ordered = [emb, mask_add,
               params['emb_ln_g'], params['emb_ln_b'],
               params['wqkv'], params['bqkv'], params['wo'], params['bo'],
               params['ln1_g'], params['ln1_b'],
               params['w1'], params['b1'], params['w2'], params['b2'],
               params['ln2_g'], params['ln2_b'],
               params['pool_w'], params['pool_b'],
               params['cls_w'], params['cls_b']]

    # TODO(synk): on v7x (2 TensorCores) a grid over batch with "parallel"
    # semantics would split B across cores; at B=2, S=8 the single fused
    # kernel is still the better trade.
    out = pl.pallas_call(
        fused_bert_kernel,
        out_shape=jax.ShapeDtypeStruct((BS, REL_PAD), jnp.float32),
        grid_spec=pltpu.PrefetchScalarGridSpec(
            num_scalar_prefetch=0, grid=(1,),
            in_specs=[_fs(a.shape) for a in ordered],
            out_specs=_fs((BS, REL_PAD))),
        compiler_params=pltpu.CompilerParams(
            dimension_semantics=("arbitrary",)),
    )(*ordered)

    return out[0::S, :REL]          # [CLS] rows -> (B, REL) logits


# ------------------------------------------------------ params & forward ----

def init_params(key):
    ks = jax.random.split(key, 10)

    def nrm(k, shape):
        return (0.02 * jax.random.normal(k, shape)).astype(jnp.float32)

    cls_w = jnp.zeros((H, REL_PAD), jnp.float32).at[:, :REL].set(nrm(ks[7], (H, REL)))

    return dict(
        word_emb=nrm(ks[0], (VOCAB, H)),
        pos_emb=nrm(ks[1], (S, H)),
        type_emb=nrm(ks[2], (NTYPE, H)),
        emb_ln_g=jnp.ones((1, H), jnp.float32),
        emb_ln_b=jnp.zeros((1, H), jnp.float32),
        # Per-layer weights stacked on a leading NL axis; MXU operands in bf16.
        wqkv=nrm(ks[3], (NL, H, 3 * H)).astype(jnp.bfloat16),
        bqkv=jnp.zeros((NL, 1, 3 * H), jnp.float32),
        wo=nrm(ks[4], (NL, H, H)).astype(jnp.bfloat16),
        bo=jnp.zeros((NL, 1, H), jnp.float32),
        ln1_g=jnp.ones((NL, 1, H), jnp.float32),
        ln1_b=jnp.zeros((NL, 1, H), jnp.float32),
        w1=nrm(ks[5], (NL, H, F)).astype(jnp.bfloat16),
        b1=jnp.zeros((NL, 1, F), jnp.float32),
        w2=nrm(ks[6], (NL, F, H)).astype(jnp.bfloat16),
        b2=jnp.zeros((NL, 1, H), jnp.float32),
        ln2_g=jnp.ones((NL, 1, H), jnp.float32),
        ln2_b=jnp.zeros((NL, 1, H), jnp.float32),
        pool_w=nrm(ks[8], (H, H)).astype(jnp.bfloat16),
        pool_b=jnp.zeros((1, H), jnp.float32),
        cls_w=cls_w.astype(jnp.bfloat16),
        cls_b=jnp.zeros((1, REL_PAD), jnp.float32),
    )


if __name__ == "__main__":
    key = jax.random.PRNGKey(0)
    pk, dk = jax.random.split(key, 2)
    params = init_params(pk)

    sent_in = jax.random.randint(dk, (B, S), 0, VOCAB, dtype=jnp.int32)
    attention_mask = jnp.ones((B, S), jnp.int32).at[1, 6:].set(0)
    token_type = jnp.zeros((B, S), jnp.int32).at[:, 4:].set(1)

    logits = bert_classifier_forward(params, sent_in, attention_mask, token_type)
    jax.block_until_ready(logits)
    assert logits.shape == (B, REL) and logits.dtype == jnp.float32
    print("KERNEL_OK")
</pallas_src>

<mosaic_0001>
module attributes {stable_mosaic.version = 11 : i64} {
  func.func @fused_bert_kernel(%arg0: i32, %arg1: memref<16x128xf32, #tpu.memory_space<vmem>>, %arg2: memref<16x16xf32, #tpu.memory_space<vmem>>, %arg3: memref<1x128xf32, #tpu.memory_space<vmem>>, %arg4: memref<1x128xf32, #tpu.memory_space<vmem>>, %arg5: memref<2x128x384xbf16, #tpu.memory_space<vmem>>, %arg6: memref<2x1x384xf32, #tpu.memory_space<vmem>>, %arg7: memref<2x128x128xbf16, #tpu.memory_space<vmem>>, %arg8: memref<2x1x128xf32, #tpu.memory_space<vmem>>, %arg9: memref<2x1x128xf32, #tpu.memory_space<vmem>>, %arg10: memref<2x1x128xf32, #tpu.memory_space<vmem>>, %arg11: memref<2x128x512xbf16, #tpu.memory_space<vmem>>, %arg12: memref<2x1x512xf32, #tpu.memory_space<vmem>>, %arg13: memref<2x512x128xbf16, #tpu.memory_space<vmem>>, %arg14: memref<2x1x128xf32, #tpu.memory_space<vmem>>, %arg15: memref<2x1x128xf32, #tpu.memory_space<vmem>>, %arg16: memref<2x1x128xf32, #tpu.memory_space<vmem>>, %arg17: memref<128x128xbf16, #tpu.memory_space<vmem>>, %arg18: memref<1x128xf32, #tpu.memory_space<vmem>>, %arg19: memref<128x128xbf16, #tpu.memory_space<vmem>>, %arg20: memref<1x128xf32, #tpu.memory_space<vmem>>, %arg21: memref<16x128xf32, #tpu.memory_space<vmem>>) attributes {dimension_semantics = [#tpu.dimension_semantics<arbitrary>], iteration_bounds = array<i64: 1>, scalar_prefetch = 0 : i64, scratch_operands = 0 : i64, tpu.core_type = #tpu.core_type<tc>, window_params = [{pipeline_mode = #tpu.pipeline_mode<synchronous>, transform_indices = @transform_0, window_bounds = array<i64: 16, 128>}, {pipeline_mode = #tpu.pipeline_mode<synchronous>, transform_indices = @transform_1, window_bounds = array<i64: 16, 16>}, {pipeline_mode = #tpu.pipeline_mode<synchronous>, transform_indices = @transform_2, window_bounds = array<i64: 1, 128>}, {pipeline_mode = #tpu.pipeline_mode<synchronous>, transform_indices = @transform_3, window_bounds = array<i64: 1, 128>}, {pipeline_mode = #tpu.pipeline_mode<synchronous>, transform_indices = @transform_4, window_bounds = array<i64: 2, 128, 384>}, {pipeline_mode = #tpu.pipeline_mode<synchronous>, transform_indices = @transform_5, window_bounds = array<i64: 2, 1, 384>}, {pipeline_mode = #tpu.pipeline_mode<synchronous>, transform_indices = @transform_6, window_bounds = array<i64: 2, 128, 128>}, {pipeline_mode = #tpu.pipeline_mode<synchronous>, transform_indices = @transform_7, window_bounds = array<i64: 2, 1, 128>}, {pipeline_mode = #tpu.pipeline_mode<synchronous>, transform_indices = @transform_8, window_bounds = array<i64: 2, 1, 128>}, {pipeline_mode = #tpu.pipeline_mode<synchronous>, transform_indices = @transform_9, window_bounds = array<i64: 2, 1, 128>}, {pipeline_mode = #tpu.pipeline_mode<synchronous>, transform_indices = @transform_10, window_bounds = array<i64: 2, 128, 512>}, {pipeline_mode = #tpu.pipeline_mode<synchronous>, transform_indices = @transform_11, window_bounds = array<i64: 2, 1, 512>}, {pipeline_mode = #tpu.pipeline_mode<synchronous>, transform_indices = @transform_12, window_bounds = array<i64: 2, 512, 128>}, {pipeline_mode = #tpu.pipeline_mode<synchronous>, transform_indices = @transform_13, window_bounds = array<i64: 2, 1, 128>}, {pipeline_mode = #tpu.pipeline_mode<synchronous>, transform_indices = @transform_14, window_bounds = array<i64: 2, 1, 128>}, {pipeline_mode = #tpu.pipeline_mode<synchronous>, transform_indices = @transform_15, window_bounds = array<i64: 2, 1, 128>}, {pipeline_mode = #tpu.pipeline_mode<synchronous>, transform_indices = @transform_16, window_bounds = array<i64: 128, 128>}, {pipeline_mode = #tpu.pipeline_mode<synchronous>, transform_indices = @transform_17, window_bounds = array<i64: 1, 128>}, {pipeline_mode = #tpu.pipeline_mode<synchronous>, transform_indices = @transform_18, window_bounds = array<i64: 128, 128>}, {pipeline_mode = #tpu.pipeline_mode<synchronous>, transform_indices = @transform_19, window_bounds = array<i64: 1, 128>}, {pipeline_mode = #tpu.pipeline_mode<synchronous>, transform_indices = @transform_20, window_bounds = array<i64: 16, 128>}]} {
    %c0 = arith.constant 0 : index
    %c0_0 = arith.constant 0 : index
    %0 = vector.load %arg1[%c0, %c0_0] : memref<16x128xf32, #tpu.memory_space<vmem>>, vector<16x128xf32>
    %c0_1 = arith.constant 0 : index
    %c0_2 = arith.constant 0 : index
    %1 = vector.load %arg3[%c0_1, %c0_2] : memref<1x128xf32, #tpu.memory_space<vmem>>, vector<1x128xf32>
    %c0_3 = arith.constant 0 : index
    %c0_4 = arith.constant 0 : index
    %2 = vector.load %arg4[%c0_3, %c0_4] : memref<1x128xf32, #tpu.memory_space<vmem>>, vector<1x128xf32>
    %cst = arith.constant dense<0.000000e+00> : vector<16xf32>
    %3 = vector.multi_reduction <add>, %0, %cst [1] : vector<16x128xf32> to vector<16xf32>
    %4 = vector.shape_cast %3 : vector<16xf32> to vector<16x1xf32>
    %cst_5 = arith.constant 1.280000e+02 : f32
    %5 = vector.broadcast %cst_5 : f32 to vector<16x1xf32>
    %6 = arith.divf %4, %5 : vector<16x1xf32>
    %7 = vector.broadcast %6 : vector<16x1xf32> to vector<16x128xf32>
    %8 = arith.subf %0, %7 : vector<16x128xf32>
    %9 = arith.mulf %8, %8 : vector<16x128xf32>
    %cst_6 = arith.constant dense<0.000000e+00> : vector<16xf32>
    %10 = vector.multi_reduction <add>, %9, %cst_6 [1] : vector<16x128xf32> to vector<16xf32>
    %11 = vector.shape_cast %10 : vector<16xf32> to vector<16x1xf32>
    %cst_7 = arith.constant 1.280000e+02 : f32
    %12 = vector.broadcast %cst_7 : f32 to vector<16x1xf32>
    %13 = arith.divf %11, %12 : vector<16x1xf32>
    %14 = vector.broadcast %6 : vector<16x1xf32> to vector<16x128xf32>
    %15 = arith.subf %0, %14 : vector<16x128xf32>
    %cst_8 = arith.constant 9.99999996E-13 : f32
    %16 = vector.broadcast %cst_8 : f32 to vector<16x1xf32>
    %17 = arith.addf %13, %16 : vector<16x1xf32>
    %18 = math.rsqrt %17 : vector<16x1xf32>
    %19 = vector.broadcast %18 : vector<16x1xf32> to vector<16x128xf32>
    %20 = arith.mulf %15, %19 : vector<16x128xf32>
    %21 = vector.broadcast %1 : vector<1x128xf32> to vector<16x128xf32>
    %22 = arith.mulf %20, %21 : vector<16x128xf32>
    %23 = vector.broadcast %2 : vector<1x128xf32> to vector<16x128xf32>
    %24 = arith.addf %22, %23 : vector<16x128xf32>
    %c0_9 = arith.constant 0 : index
    %c0_10 = arith.constant 0 : index
    %25 = vector.load %arg2[%c0_9, %c0_10] : memref<16x16xf32, #tpu.memory_space<vmem>>, vector<16x16xf32>
    %26 = arith.truncf %24 : vector<16x128xf32> to vector<16x128xbf16>
    %c0_11 = arith.constant 0 : index
    %c0_12 = arith.constant 0 : index
    %c0_13 = arith.constant 0 : index
    %27 = vector.load %arg5[%c0_11, %c0_12, %c0_13] : memref<2x128x384xbf16, #tpu.memory_space<vmem>>, vector<1x128x384xbf16>
    %28 = vector.shape_cast %27 : vector<1x128x384xbf16> to vector<128x384xbf16>
    %cst_14 = arith.constant dense<0.000000e+00> : vector<16x384xf32>
    %29 = tpu.matmul %26, %28, %cst_14 {dimension_numbers = #tpu.dot_dimension_numbers<[1], [0], [0], [1], [0, 0, 1, 1], [], []>} : vector<16x128xbf16>, vector<128x384xbf16>, vector<16x384xf32> -> vector<16x384xf32>
    %c0_15 = arith.constant 0 : index
    %c0_16 = arith.constant 0 : index
    %c0_17 = arith.constant 0 : index
    %30 = vector.load %arg6[%c0_15, %c0_16, %c0_17] : memref<2x1x384xf32, #tpu.memory_space<vmem>>, vector<1x1x384xf32>
    %31 = vector.shape_cast %30 : vector<1x1x384xf32> to vector<1x384xf32>
    %32 = vector.broadcast %31 : vector<1x384xf32> to vector<16x384xf32>
    %33 = arith.addf %29, %32 : vector<16x384xf32>
    %34 = vector.extract_strided_slice %33 {offsets = [0, 0], sizes = [16, 128], strides = [1, 1]} : vector<16x384xf32> to vector<16x128xf32>
    %cst_18 = arith.constant 0.176776692 : f32
    %35 = vector.broadcast %cst_18 : f32 to vector<16x128xf32>
    %36 = arith.mulf %34, %35 : vector<16x128xf32>
    %37 = vector.extract_strided_slice %33 {offsets = [0, 128], sizes = [16, 128], strides = [1, 1]} : vector<16x384xf32> to vector<16x128xf32>
    %38 = vector.extract_strided_slice %33 {offsets = [0, 256], sizes = [16, 128], strides = [1, 1]} : vector<16x384xf32> to vector<16x128xf32>
    %c0_19 = arith.constant 0 : index
    %c0_20 = arith.constant 0 : index
    %c0_21 = arith.constant 0 : index
    %39 = vector.load %arg7[%c0_19, %c0_20, %c0_21] : memref<2x128x128xbf16, #tpu.memory_space<vmem>>, vector<1x128x128xbf16>
    %40 = vector.shape_cast %39 : vector<1x128x128xbf16> to vector<128x128xbf16>
    %cst_22 = arith.constant 0.000000e+00 : f32
    %41 = vector.broadcast %cst_22 : f32 to vector<16x128xf32>
    %42 = vector.extract_strided_slice %36 {offsets = [0, 0], sizes = [16, 32], strides = [1, 1]} : vector<16x128xf32> to vector<16x32xf32>
    %43 = arith.truncf %42 : vector<16x32xf32> to vector<16x32xbf16>
    %44 = vector.extract_strided_slice %37 {offsets = [0, 0], sizes = [16, 32], strides = [1, 1]} : vector<16x128xf32> to vector<16x32xf32>
    %45 = arith.truncf %44 : vector<16x32xf32> to vector<16x32xbf16>
    %46 = vector.extract_strided_slice %38 {offsets = [0, 0], sizes = [16, 32], strides = [1, 1]} : vector<16x128xf32> to vector<16x32xf32>
    %47 = arith.truncf %46 : vector<16x32xf32> to vector<16x32xbf16>
    %cst_23 = arith.constant dense<0.000000e+00> : vector<16x16xf32>
    %48 = tpu.matmul %43, %45, %cst_23 {dimension_numbers = #tpu.dot_dimension_numbers<[1], [1], [0], [0], [0, 0, 1, 0], [], []>} : vector<16x32xbf16>, vector<16x32xbf16>, vector<16x16xf32> -> vector<16x16xf32>
    %49 = arith.addf %48, %25 : vector<16x16xf32>
    %cst_24 = arith.constant dense<0xFF800000> : vector<16xf32>
    %50 = vector.multi_reduction <maximumf>, %49, %cst_24 [1] : vector<16x16xf32> to vector<16xf32>
    %51 = vector.shape_cast %50 : vector<16xf32> to vector<16x1xf32>
    %52 = vector.broadcast %51 : vector<16x1xf32> to vector<16x16xf32>
    %53 = arith.subf %49, %52 : vector<16x16xf32>
    %54 = math.exp %53 : vector<16x16xf32>
    %cst_25 = arith.constant dense<0.000000e+00> : vector<16xf32>
    %55 = vector.multi_reduction <add>, %54, %cst_25 [1] : vector<16x16xf32> to vector<16xf32>
    %56 = vector.shape_cast %55 : vector<16xf32> to vector<16x1xf32>
    %57 = tpu.reciprocal %56 {approx = true} : vector<16x1xf32> -> vector<16x1xf32>
    %58 = vector.broadcast %57 : vector<16x1xf32> to vector<16x16xf32>
    %59 = arith.mulf %54, %58 : vector<16x16xf32>
    %60 = arith.truncf %59 : vector<16x16xf32> to vector<16x16xbf16>
    %cst_26 = arith.constant dense<0.000000e+00> : vector<16x32xf32>
    %61 = tpu.matmul %60, %47, %cst_26 {dimension_numbers = #tpu.dot_dimension_numbers<[1], [0], [0], [1], [0, 0, 1, 1], [], []>} : vector<16x16xbf16>, vector<16x32xbf16>, vector<16x32xf32> -> vector<16x32xf32>
    %62 = arith.truncf %61 : vector<16x32xf32> to vector<16x32xbf16>
    %63 = vector.extract_strided_slice %40 {offsets = [0, 0], sizes = [32, 128], strides = [1, 1]} : vector<128x128xbf16> to vector<32x128xbf16>
    %cst_27 = arith.constant dense<0.000000e+00> : vector<16x128xf32>
    %64 = tpu.matmul %62, %63, %cst_27 {dimension_numbers = #tpu.dot_dimension_numbers<[1], [0], [0], [1], [0, 0, 1, 1], [], []>} : vector<16x32xbf16>, vector<32x128xbf16>, vector<16x128xf32> -> vector<16x128xf32>
    %65 = arith.addf %41, %64 : vector<16x128xf32>
    %66 = vector.extract_strided_slice %36 {offsets = [0, 32], sizes = [16, 32], strides = [1, 1]} : vector<16x128xf32> to vector<16x32xf32>
    %67 = arith.truncf %66 : vector<16x32xf32> to vector<16x32xbf16>
    %68 = vector.extract_strided_slice %37 {offsets = [0, 32], sizes = [16, 32], strides = [1, 1]} : vector<16x128xf32> to vector<16x32xf32>
    %69 = arith.truncf %68 : vector<16x32xf32> to vector<16x32xbf16>
    %70 = vector.extract_strided_slice %38 {offsets = [0, 32], sizes = [16, 32], strides = [1, 1]} : vector<16x128xf32> to vector<16x32xf32>
    %71 = arith.truncf %70 : vector<16x32xf32> to vector<16x32xbf16>
    %cst_28 = arith.constant dense<0.000000e+00> : vector<16x16xf32>
    %72 = tpu.matmul %67, %69, %cst_28 {dimension_numbers = #tpu.dot_dimension_numbers<[1], [1], [0], [0], [0, 0, 1, 0], [], []>} : vector<16x32xbf16>, vector<16x32xbf16>, vector<16x16xf32> -> vector<16x16xf32>
    %73 = arith.addf %72, %25 : vector<16x16xf32>
    %cst_29 = arith.constant dense<0xFF800000> : vector<16xf32>
    %74 = vector.multi_reduction <maximumf>, %73, %cst_29 [1] : vector<16x16xf32> to vector<16xf32>
    %75 = vector.shape_cast %74 : vector<16xf32> to vector<16x1xf32>
    %76 = vector.broadcast %75 : vector<16x1xf32> to vector<16x16xf32>
    %77 = arith.subf %73, %76 : vector<16x16xf32>
    %78 = math.exp %77 : vector<16x16xf32>
    %cst_30 = arith.constant dense<0.000000e+00> : vector<16xf32>
    %79 = vector.multi_reduction <add>, %78, %cst_30 [1] : vector<16x16xf32> to vector<16xf32>
    %80 = vector.shape_cast %79 : vector<16xf32> to vector<16x1xf32>
    %81 = tpu.reciprocal %80 {approx = true} : vector<16x1xf32> -> vector<16x1xf32>
    %82 = vector.broadcast %81 : vector<16x1xf32> to vector<16x16xf32>
    %83 = arith.mulf %78, %82 : vector<16x16xf32>
    %84 = arith.truncf %83 : vector<16x16xf32> to vector<16x16xbf16>
    %cst_31 = arith.constant dense<0.000000e+00> : vector<16x32xf32>
    %85 = tpu.matmul %84, %71, %cst_31 {dimension_numbers = #tpu.dot_dimension_numbers<[1], [0], [0], [1], [0, 0, 1, 1], [], []>} : vector<16x16xbf16>, vector<16x32xbf16>, vector<16x32xf32> -> vector<16x32xf32>
    %86 = arith.truncf %85 : vector<16x32xf32> to vector<16x32xbf16>
    %87 = vector.extract_strided_slice %40 {offsets = [32, 0], sizes = [32, 128], strides = [1, 1]} : vector<128x128xbf16> to vector<32x128xbf16>
    %cst_32 = arith.constant dense<0.000000e+00> : vector<16x128xf32>
    %88 = tpu.matmul %86, %87, %cst_32 {dimension_numbers = #tpu.dot_dimension_numbers<[1], [0], [0], [1], [0, 0, 1, 1], [], []>} : vector<16x32xbf16>, vector<32x128xbf16>, vector<16x128xf32> -> vector<16x128xf32>
    %89 = arith.addf %65, %88 : vector<16x128xf32>
    %90 = vector.extract_strided_slice %36 {offsets = [0, 64], sizes = [16, 32], strides = [1, 1]} : vector<16x128xf32> to vector<16x32xf32>
    %91 = arith.truncf %90 : vector<16x32xf32> to vector<16x32xbf16>
    %92 = vector.extract_strided_slice %37 {offsets = [0, 64], sizes = [16, 32], strides = [1, 1]} : vector<16x128xf32> to vector<16x32xf32>
    %93 = arith.truncf %92 : vector<16x32xf32> to vector<16x32xbf16>
    %94 = vector.extract_strided_slice %38 {offsets = [0, 64], sizes = [16, 32], strides = [1, 1]} : vector<16x128xf32> to vector<16x32xf32>
    %95 = arith.truncf %94 : vector<16x32xf32> to vector<16x32xbf16>
    %cst_33 = arith.constant dense<0.000000e+00> : vector<16x16xf32>
    %96 = tpu.matmul %91, %93, %cst_33 {dimension_numbers = #tpu.dot_dimension_numbers<[1], [1], [0], [0], [0, 0, 1, 0], [], []>} : vector<16x32xbf16>, vector<16x32xbf16>, vector<16x16xf32> -> vector<16x16xf32>
    %97 = arith.addf %96, %25 : vector<16x16xf32>
    %cst_34 = arith.constant dense<0xFF800000> : vector<16xf32>
    %98 = vector.multi_reduction <maximumf>, %97, %cst_34 [1] : vector<16x16xf32> to vector<16xf32>
    %99 = vector.shape_cast %98 : vector<16xf32> to vector<16x1xf32>
    %100 = vector.broadcast %99 : vector<16x1xf32> to vector<16x16xf32>
    %101 = arith.subf %97, %100 : vector<16x16xf32>
    %102 = math.exp %101 : vector<16x16xf32>
    %cst_35 = arith.constant dense<0.000000e+00> : vector<16xf32>
    %103 = vector.multi_reduction <add>, %102, %cst_35 [1] : vector<16x16xf32> to vector<16xf32>
    %104 = vector.shape_cast %103 : vector<16xf32> to vector<16x1xf32>
    %105 = tpu.reciprocal %104 {approx = true} : vector<16x1xf32> -> vector<16x1xf32>
    %106 = vector.broadcast %105 : vector<16x1xf32> to vector<16x16xf32>
    %107 = arith.mulf %102, %106 : vector<16x16xf32>
    %108 = arith.truncf %107 : vector<16x16xf32> to vector<16x16xbf16>
    %cst_36 = arith.constant dense<0.000000e+00> : vector<16x32xf32>
    %109 = tpu.matmul %108, %95, %cst_36 {dimension_numbers = #tpu.dot_dimension_numbers<[1], [0], [0], [1], [0, 0, 1, 1], [], []>} : vector<16x16xbf16>, vector<16x32xbf16>, vector<16x32xf32> -> vector<16x32xf32>
    %110 = arith.truncf %109 : vector<16x32xf32> to vector<16x32xbf16>
    %111 = vector.extract_strided_slice %40 {offsets = [64, 0], sizes = [32, 128], strides = [1, 1]} : vector<128x128xbf16> to vector<32x128xbf16>
    %cst_37 = arith.constant dense<0.000000e+00> : vector<16x128xf32>
    %112 = tpu.matmul %110, %111, %cst_37 {dimension_numbers = #tpu.dot_dimension_numbers<[1], [0], [0], [1], [0, 0, 1, 1], [], []>} : vector<16x32xbf16>, vector<32x128xbf16>, vector<16x128xf32> -> vector<16x128xf32>
    %113 = arith.addf %89, %112 : vector<16x128xf32>
    %114 = vector.extract_strided_slice %36 {offsets = [0, 96], sizes = [16, 32], strides = [1, 1]} : vector<16x128xf32> to vector<16x32xf32>
    %115 = arith.truncf %114 : vector<16x32xf32> to vector<16x32xbf16>
    %116 = vector.extract_strided_slice %37 {offsets = [0, 96], sizes = [16, 32], strides = [1, 1]} : vector<16x128xf32> to vector<16x32xf32>
    %117 = arith.truncf %116 : vector<16x32xf32> to vector<16x32xbf16>
    %118 = vector.extract_strided_slice %38 {offsets = [0, 96], sizes = [16, 32], strides = [1, 1]} : vector<16x128xf32> to vector<16x32xf32>
    %119 = arith.truncf %118 : vector<16x32xf32> to vector<16x32xbf16>
    %cst_38 = arith.constant dense<0.000000e+00> : vector<16x16xf32>
    %120 = tpu.matmul %115, %117, %cst_38 {dimension_numbers = #tpu.dot_dimension_numbers<[1], [1], [0], [0], [0, 0, 1, 0], [], []>} : vector<16x32xbf16>, vector<16x32xbf16>, vector<16x16xf32> -> vector<16x16xf32>
    %121 = arith.addf %120, %25 : vector<16x16xf32>
    %cst_39 = arith.constant dense<0xFF800000> : vector<16xf32>
    %122 = vector.multi_reduction <maximumf>, %121, %cst_39 [1] : vector<16x16xf32> to vector<16xf32>
    %123 = vector.shape_cast %122 : vector<16xf32> to vector<16x1xf32>
    %124 = vector.broadcast %123 : vector<16x1xf32> to vector<16x16xf32>
    %125 = arith.subf %121, %124 : vector<16x16xf32>
    %126 = math.exp %125 : vector<16x16xf32>
    %cst_40 = arith.constant dense<0.000000e+00> : vector<16xf32>
    %127 = vector.multi_reduction <add>, %126, %cst_40 [1] : vector<16x16xf32> to vector<16xf32>
    %128 = vector.shape_cast %127 : vector<16xf32> to vector<16x1xf32>
    %129 = tpu.reciprocal %128 {approx = true} : vector<16x1xf32> -> vector<16x1xf32>
    %130 = vector.broadcast %129 : vector<16x1xf32> to vector<16x16xf32>
    %131 = arith.mulf %126, %130 : vector<16x16xf32>
    %132 = arith.truncf %131 : vector<16x16xf32> to vector<16x16xbf16>
    %cst_41 = arith.constant dense<0.000000e+00> : vector<16x32xf32>
    %133 = tpu.matmul %132, %119, %cst_41 {dimension_numbers = #tpu.dot_dimension_numbers<[1], [0], [0], [1], [0, 0, 1, 1], [], []>} : vector<16x16xbf16>, vector<16x32xbf16>, vector<16x32xf32> -> vector<16x32xf32>
    %134 = arith.truncf %133 : vector<16x32xf32> to vector<16x32xbf16>
    %135 = vector.extract_strided_slice %40 {offsets = [96, 0], sizes = [32, 128], strides = [1, 1]} : vector<128x128xbf16> to vector<32x128xbf16>
    %cst_42 = arith.constant dense<0.000000e+00> : vector<16x128xf32>
    %136 = tpu.matmul %134, %135, %cst_42 {dimension_numbers = #tpu.dot_dimension_numbers<[1], [0], [0], [1], [0, 0, 1, 1], [], []>} : vector<16x32xbf16>, vector<32x128xbf16>, vector<16x128xf32> -> vector<16x128xf32>
    %137 = arith.addf %113, %136 : vector<16x128xf32>
    %138 = arith.addf %24, %137 : vector<16x128xf32>
    %c0_43 = arith.constant 0 : index
    %c0_44 = arith.constant 0 : index
    %c0_45 = arith.constant 0 : index
    %139 = vector.load %arg8[%c0_43, %c0_44, %c0_45] : memref<2x1x128xf32, #tpu.memory_space<vmem>>, vector<1x1x128xf32>
    %140 = vector.shape_cast %139 : vector<1x1x128xf32> to vector<1x128xf32>
    %141 = vector.broadcast %140 : vector<1x128xf32> to vector<16x128xf32>
    %142 = arith.addf %138, %141 : vector<16x128xf32>
    %c0_46 = arith.constant 0 : index
    %c0_47 = arith.constant 0 : index
    %c0_48 = arith.constant 0 : index
    %143 = vector.load %arg9[%c0_46, %c0_47, %c0_48] : memref<2x1x128xf32, #tpu.memory_space<vmem>>, vector<1x1x128xf32>
    %144 = vector.shape_cast %143 : vector<1x1x128xf32> to vector<1x128xf32>
    %c0_49 = arith.constant 0 : index
    %c0_50 = arith.constant 0 : index
    %c0_51 = arith.constant 0 : index
    %145 = vector.load %arg10[%c0_49, %c0_50, %c0_51] : memref<2x1x128xf32, #tpu.memory_space<vmem>>, vector<1x1x128xf32>
    %146 = vector.shape_cast %145 : vector<1x1x128xf32> to vector<1x128xf32>
    %cst_52 = arith.constant dense<0.000000e+00> : vector<16xf32>
    %147 = vector.multi_reduction <add>, %142, %cst_52 [1] : vector<16x128xf32> to vector<16xf32>
    %148 = vector.shape_cast %147 : vector<16xf32> to vector<16x1xf32>
    %cst_53 = arith.constant 1.280000e+02 : f32
    %149 = vector.broadcast %cst_53 : f32 to vector<16x1xf32>
    %150 = arith.divf %148, %149 : vector<16x1xf32>
    %151 = vector.broadcast %150 : vector<16x1xf32> to vector<16x128xf32>
    %152 = arith.subf %142, %151 : vector<16x128xf32>
    %153 = arith.mulf %152, %152 : vector<16x128xf32>
    %cst_54 = arith.constant dense<0.000000e+00> : vector<16xf32>
    %154 = vector.multi_reduction <add>, %153, %cst_54 [1] : vector<16x128xf32> to vector<16xf32>
    %155 = vector.shape_cast %154 : vector<16xf32> to vector<16x1xf32>
    %cst_55 = arith.constant 1.280000e+02 : f32
    %156 = vector.broadcast %cst_55 : f32 to vector<16x1xf32>
    %157 = arith.divf %155, %156 : vector<16x1xf32>
    %158 = vector.broadcast %150 : vector<16x1xf32> to vector<16x128xf32>
    %159 = arith.subf %142, %158 : vector<16x128xf32>
    %cst_56 = arith.constant 9.99999996E-13 : f32
    %160 = vector.broadcast %cst_56 : f32 to vector<16x1xf32>
    %161 = arith.addf %157, %160 : vector<16x1xf32>
    %162 = math.rsqrt %161 : vector<16x1xf32>
    %163 = vector.broadcast %162 : vector<16x1xf32> to vector<16x128xf32>
    %164 = arith.mulf %159, %163 : vector<16x128xf32>
    %165 = vector.broadcast %144 : vector<1x128xf32> to vector<16x128xf32>
    %166 = arith.mulf %164, %165 : vector<16x128xf32>
    %167 = vector.broadcast %146 : vector<1x128xf32> to vector<16x128xf32>
    %168 = arith.addf %166, %167 : vector<16x128xf32>
    %169 = arith.truncf %168 : vector<16x128xf32> to vector<16x128xbf16>
    %c0_57 = arith.constant 0 : index
    %c0_58 = arith.constant 0 : index
    %c0_59 = arith.constant 0 : index
    %170 = vector.load %arg11[%c0_57, %c0_58, %c0_59] : memref<2x128x512xbf16, #tpu.memory_space<vmem>>, vector<1x128x512xbf16>
    %171 = vector.shape_cast %170 : vector<1x128x512xbf16> to vector<128x512xbf16>
    %cst_60 = arith.constant dense<0.000000e+00> : vector<16x512xf32>
    %172 = tpu.matmul %169, %171, %cst_60 {dimension_numbers = #tpu.dot_dimension_numbers<[1], [0], [0], [1], [0, 0, 1, 1], [], []>} : vector<16x128xbf16>, vector<128x512xbf16>, vector<16x512xf32> -> vector<16x512xf32>
    %c0_61 = arith.constant 0 : index
    %c0_62 = arith.constant 0 : index
    %c0_63 = arith.constant 0 : index
    %173 = vector.load %arg12[%c0_61, %c0_62, %c0_63] : memref<2x1x512xf32, #tpu.memory_space<vmem>>, vector<1x1x512xf32>
    %174 = vector.shape_cast %173 : vector<1x1x512xf32> to vector<1x512xf32>
    %175 = vector.broadcast %174 : vector<1x512xf32> to vector<16x512xf32>
    %176 = arith.addf %172, %175 : vector<16x512xf32>
    %177 = arith.mulf %176, %176 : vector<16x512xf32>
    %178 = arith.mulf %176, %177 : vector<16x512xf32>
    %cst_64 = arith.constant 4.471500e-02 : f32
    %179 = vector.broadcast %cst_64 : f32 to vector<16x512xf32>
    %180 = arith.mulf %179, %178 : vector<16x512xf32>
    %181 = arith.addf %176, %180 : vector<16x512xf32>
    %cst_65 = arith.constant 0.797884583 : f32
    %182 = vector.broadcast %cst_65 : f32 to vector<16x512xf32>
    %183 = arith.mulf %182, %181 : vector<16x512xf32>
    %184 = math.tanh %183 : vector<16x512xf32>
    %cst_66 = arith.constant 1.000000e+00 : f32
    %185 = vector.broadcast %cst_66 : f32 to vector<16x512xf32>
    %186 = arith.addf %185, %184 : vector<16x512xf32>
    %cst_67 = arith.constant 5.000000e-01 : f32
    %187 = vector.broadcast %cst_67 : f32 to vector<16x512xf32>
    %188 = arith.mulf %187, %186 : vector<16x512xf32>
    %189 = arith.mulf %176, %188 : vector<16x512xf32>
    %190 = arith.truncf %189 : vector<16x512xf32> to vector<16x512xbf16>
    %c0_68 = arith.constant 0 : index
    %c0_69 = arith.constant 0 : index
    %c0_70 = arith.constant 0 : index
    %191 = vector.load %arg13[%c0_68, %c0_69, %c0_70] : memref<2x512x128xbf16, #tpu.memory_space<vmem>>, vector<1x512x128xbf16>
    %192 = vector.shape_cast %191 : vector<1x512x128xbf16> to vector<512x128xbf16>
    %cst_71 = arith.constant dense<0.000000e+00> : vector<16x128xf32>
    %193 = tpu.matmul %190, %192, %cst_71 {dimension_numbers = #tpu.dot_dimension_numbers<[1], [0], [0], [1], [0, 0, 1, 1], [], []>} : vector<16x512xbf16>, vector<512x128xbf16>, vector<16x128xf32> -> vector<16x128xf32>
    %c0_72 = arith.constant 0 : index
    %c0_73 = arith.constant 0 : index
    %c0_74 = arith.constant 0 : index
    %194 = vector.load %arg14[%c0_72, %c0_73, %c0_74] : memref<2x1x128xf32, #tpu.memory_space<vmem>>, vector<1x1x128xf32>
    %195 = vector.shape_cast %194 : vector<1x1x128xf32> to vector<1x128xf32>
    %196 = vector.broadcast %195 : vector<1x128xf32> to vector<16x128xf32>
    %197 = arith.addf %193, %196 : vector<16x128xf32>
    %198 = arith.addf %168, %197 : vector<16x128xf32>
    %c0_75 = arith.constant 0 : index
    %c0_76 = arith.constant 0 : index
    %c0_77 = arith.constant 0 : index
    %199 = vector.load %arg15[%c0_75, %c0_76, %c0_77] : memref<2x1x128xf32, #tpu.memory_space<vmem>>, vector<1x1x128xf32>
    %200 = vector.shape_cast %199 : vector<1x1x128xf32> to vector<1x128xf32>
    %c0_78 = arith.constant 0 : index
    %c0_79 = arith.constant 0 : index
    %c0_80 = arith.constant 0 : index
    %201 = vector.load %arg16[%c0_78, %c0_79, %c0_80] : memref<2x1x128xf32, #tpu.memory_space<vmem>>, vector<1x1x128xf32>
    %202 = vector.shape_cast %201 : vector<1x1x128xf32> to vector<1x128xf32>
    %cst_81 = arith.constant dense<0.000000e+00> : vector<16xf32>
    %203 = vector.multi_reduction <add>, %198, %cst_81 [1] : vector<16x128xf32> to vector<16xf32>
    %204 = vector.shape_cast %203 : vector<16xf32> to vector<16x1xf32>
    %cst_82 = arith.constant 1.280000e+02 : f32
    %205 = vector.broadcast %cst_82 : f32 to vector<16x1xf32>
    %206 = arith.divf %204, %205 : vector<16x1xf32>
    %207 = vector.broadcast %206 : vector<16x1xf32> to vector<16x128xf32>
    %208 = arith.subf %198, %207 : vector<16x128xf32>
    %209 = arith.mulf %208, %208 : vector<16x128xf32>
    %cst_83 = arith.constant dense<0.000000e+00> : vector<16xf32>
    %210 = vector.multi_reduction <add>, %209, %cst_83 [1] : vector<16x128xf32> to vector<16xf32>
    %211 = vector.shape_cast %210 : vector<16xf32> to vector<16x1xf32>
    %cst_84 = arith.constant 1.280000e+02 : f32
    %212 = vector.broadcast %cst_84 : f32 to vector<16x1xf32>
    %213 = arith.divf %211, %212 : vector<16x1xf32>
    %214 = vector.broadcast %206 : vector<16x1xf32> to vector<16x128xf32>
    %215 = arith.subf %198, %214 : vector<16x128xf32>
    %cst_85 = arith.constant 9.99999996E-13 : f32
    %216 = vector.broadcast %cst_85 : f32 to vector<16x1xf32>
    %217 = arith.addf %213, %216 : vector<16x1xf32>
    %218 = math.rsqrt %217 : vector<16x1xf32>
    %219 = vector.broadcast %218 : vector<16x1xf32> to vector<16x128xf32>
    %220 = arith.mulf %215, %219 : vector<16x128xf32>
    %221 = vector.broadcast %200 : vector<1x128xf32> to vector<16x128xf32>
    %222 = arith.mulf %220, %221 : vector<16x128xf32>
    %223 = vector.broadcast %202 : vector<1x128xf32> to vector<16x128xf32>
    %224 = arith.addf %222, %223 : vector<16x128xf32>
    %225 = arith.truncf %224 : vector<16x128xf32> to vector<16x128xbf16>
    %c1 = arith.constant 1 : index
    %c0_86 = arith.constant 0 : index
    %c0_87 = arith.constant 0 : index
    %226 = vector.load %arg5[%c1, %c0_86, %c0_87] : memref<2x128x384xbf16, #tpu.memory_space<vmem>>, vector<1x128x384xbf16>
    %227 = vector.shape_cast %226 : vector<1x128x384xbf16> to vector<128x384xbf16>
    %cst_88 = arith.constant dense<0.000000e+00> : vector<16x384xf32>
    %228 = tpu.matmul %225, %227, %cst_88 {dimension_numbers = #tpu.dot_dimension_numbers<[1], [0], [0], [1], [0, 0, 1, 1], [], []>} : vector<16x128xbf16>, vector<128x384xbf16>, vector<16x384xf32> -> vector<16x384xf32>
    %c1_89 = arith.constant 1 : index
    %c0_90 = arith.constant 0 : index
    %c0_91 = arith.constant 0 : index
    %229 = vector.load %arg6[%c1_89, %c0_90, %c0_91] : memref<2x1x384xf32, #tpu.memory_space<vmem>>, vector<1x1x384xf32>
    %230 = vector.shape_cast %229 : vector<1x1x384xf32> to vector<1x384xf32>
    %231 = vector.broadcast %230 : vector<1x384xf32> to vector<16x384xf32>
    %232 = arith.addf %228, %231 : vector<16x384xf32>
    %233 = vector.extract_strided_slice %232 {offsets = [0, 0], sizes = [16, 128], strides = [1, 1]} : vector<16x384xf32> to vector<16x128xf32>
    %cst_92 = arith.constant 0.176776692 : f32
    %234 = vector.broadcast %cst_92 : f32 to vector<16x128xf32>
    %235 = arith.mulf %233, %234 : vector<16x128xf32>
    %236 = vector.extract_strided_slice %232 {offsets = [0, 128], sizes = [16, 128], strides = [1, 1]} : vector<16x384xf32> to vector<16x128xf32>
    %237 = vector.extract_strided_slice %232 {offsets = [0, 256], sizes = [16, 128], strides = [1, 1]} : vector<16x384xf32> to vector<16x128xf32>
    %c1_93 = arith.constant 1 : index
    %c0_94 = arith.constant 0 : index
    %c0_95 = arith.constant 0 : index
    %238 = vector.load %arg7[%c1_93, %c0_94, %c0_95] : memref<2x128x128xbf16, #tpu.memory_space<vmem>>, vector<1x128x128xbf16>
    %239 = vector.shape_cast %238 : vector<1x128x128xbf16> to vector<128x128xbf16>
    %cst_96 = arith.constant 0.000000e+00 : f32
    %240 = vector.broadcast %cst_96 : f32 to vector<16x128xf32>
    %241 = vector.extract_strided_slice %235 {offsets = [0, 0], sizes = [16, 32], strides = [1, 1]} : vector<16x128xf32> to vector<16x32xf32>
    %242 = arith.truncf %241 : vector<16x32xf32> to vector<16x32xbf16>
    %243 = vector.extract_strided_slice %236 {offsets = [0, 0], sizes = [16, 32], strides = [1, 1]} : vector<16x128xf32> to vector<16x32xf32>
    %244 = arith.truncf %243 : vector<16x32xf32> to vector<16x32xbf16>
    %245 = vector.extract_strided_slice %237 {offsets = [0, 0], sizes = [16, 32], strides = [1, 1]} : vector<16x128xf32> to vector<16x32xf32>
    %246 = arith.truncf %245 : vector<16x32xf32> to vector<16x32xbf16>
    %cst_97 = arith.constant dense<0.000000e+00> : vector<16x16xf32>
    %247 = tpu.matmul %242, %244, %cst_97 {dimension_numbers = #tpu.dot_dimension_numbers<[1], [1], [0], [0], [0, 0, 1, 0], [], []>} : vector<16x32xbf16>, vector<16x32xbf16>, vector<16x16xf32> -> vector<16x16xf32>
    %248 = arith.addf %247, %25 : vector<16x16xf32>
    %cst_98 = arith.constant dense<0xFF800000> : vector<16xf32>
    %249 = vector.multi_reduction <maximumf>, %248, %cst_98 [1] : vector<16x16xf32> to vector<16xf32>
    %250 = vector.shape_cast %249 : vector<16xf32> to vector<16x1xf32>
    %251 = vector.broadcast %250 : vector<16x1xf32> to vector<16x16xf32>
    %252 = arith.subf %248, %251 : vector<16x16xf32>
    %253 = math.exp %252 : vector<16x16xf32>
    %cst_99 = arith.constant dense<0.000000e+00> : vector<16xf32>
    %254 = vector.multi_reduction <add>, %253, %cst_99 [1] : vector<16x16xf32> to vector<16xf32>
    %255 = vector.shape_cast %254 : vector<16xf32> to vector<16x1xf32>
    %256 = tpu.reciprocal %255 {approx = true} : vector<16x1xf32> -> vector<16x1xf32>
    %257 = vector.broadcast %256 : vector<16x1xf32> to vector<16x16xf32>
    %258 = arith.mulf %253, %257 : vector<16x16xf32>
    %259 = arith.truncf %258 : vector<16x16xf32> to vector<16x16xbf16>
    %cst_100 = arith.constant dense<0.000000e+00> : vector<16x32xf32>
    %260 = tpu.matmul %259, %246, %cst_100 {dimension_numbers = #tpu.dot_dimension_numbers<[1], [0], [0], [1], [0, 0, 1, 1], [], []>} : vector<16x16xbf16>, vector<16x32xbf16>, vector<16x32xf32> -> vector<16x32xf32>
    %261 = arith.truncf %260 : vector<16x32xf32> to vector<16x32xbf16>
    %262 = vector.extract_strided_slice %239 {offsets = [0, 0], sizes = [32, 128], strides = [1, 1]} : vector<128x128xbf16> to vector<32x128xbf16>
    %cst_101 = arith.constant dense<0.000000e+00> : vector<16x128xf32>
    %263 = tpu.matmul %261, %262, %cst_101 {dimension_numbers = #tpu.dot_dimension_numbers<[1], [0], [0], [1], [0, 0, 1, 1], [], []>} : vector<16x32xbf16>, vector<32x128xbf16>, vector<16x128xf32> -> vector<16x128xf32>
    %264 = arith.addf %240, %263 : vector<16x128xf32>
    %265 = vector.extract_strided_slice %235 {offsets = [0, 32], sizes = [16, 32], strides = [1, 1]} : vector<16x128xf32> to vector<16x32xf32>
    %266 = arith.truncf %265 : vector<16x32xf32> to vector<16x32xbf16>
    %267 = vector.extract_strided_slice %236 {offsets = [0, 32], sizes = [16, 32], strides = [1, 1]} : vector<16x128xf32> to vector<16x32xf32>
    %268 = arith.truncf %267 : vector<16x32xf32> to vector<16x32xbf16>
    %269 = vector.extract_strided_slice %237 {offsets = [0, 32], sizes = [16, 32], strides = [1, 1]} : vector<16x128xf32> to vector<16x32xf32>
    %270 = arith.truncf %269 : vector<16x32xf32> to vector<16x32xbf16>
    %cst_102 = arith.constant dense<0.000000e+00> : vector<16x16xf32>
    %271 = tpu.matmul %266, %268, %cst_102 {dimension_numbers = #tpu.dot_dimension_numbers<[1], [1], [0], [0], [0, 0, 1, 0], [], []>} : vector<16x32xbf16>, vector<16x32xbf16>, vector<16x16xf32> -> vector<16x16xf32>
    %272 = arith.addf %271, %25 : vector<16x16xf32>
    %cst_103 = arith.constant dense<0xFF800000> : vector<16xf32>
    %273 = vector.multi_reduction <maximumf>, %272, %cst_103 [1] : vector<16x16xf32> to vector<16xf32>
    %274 = vector.shape_cast %273 : vector<16xf32> to vector<16x1xf32>
    %275 = vector.broadcast %274 : vector<16x1xf32> to vector<16x16xf32>
    %276 = arith.subf %272, %275 : vector<16x16xf32>
    %277 = math.exp %276 : vector<16x16xf32>
    %cst_104 = arith.constant dense<0.000000e+00> : vector<16xf32>
    %278 = vector.multi_reduction <add>, %277, %cst_104 [1] : vector<16x16xf32> to vector<16xf32>
    %279 = vector.shape_cast %278 : vector<16xf32> to vector<16x1xf32>
    %280 = tpu.reciprocal %279 {approx = true} : vector<16x1xf32> -> vector<16x1xf32>
    %281 = vector.broadcast %280 : vector<16x1xf32> to vector<16x16xf32>
    %282 = arith.mulf %277, %281 : vector<16x16xf32>
    %283 = arith.truncf %282 : vector<16x16xf32> to vector<16x16xbf16>
    %cst_105 = arith.constant dense<0.000000e+00> : vector<16x32xf32>
    %284 = tpu.matmul %283, %270, %cst_105 {dimension_numbers = #tpu.dot_dimension_numbers<[1], [0], [0], [1], [0, 0, 1, 1], [], []>} : vector<16x16xbf16>, vector<16x32xbf16>, vector<16x32xf32> -> vector<16x32xf32>
    %285 = arith.truncf %284 : vector<16x32xf32> to vector<16x32xbf16>
    %286 = vector.extract_strided_slice %239 {offsets = [32, 0], sizes = [32, 128], strides = [1, 1]} : vector<128x128xbf16> to vector<32x128xbf16>
    %cst_106 = arith.constant dense<0.000000e+00> : vector<16x128xf32>
    %287 = tpu.matmul %285, %286, %cst_106 {dimension_numbers = #tpu.dot_dimension_numbers<[1], [0], [0], [1], [0, 0, 1, 1], [], []>} : vector<16x32xbf16>, vector<32x128xbf16>, vector<16x128xf32> -> vector<16x128xf32>
    %288 = arith.addf %264, %287 : vector<16x128xf32>
    %289 = vector.extract_strided_slice %235 {offsets = [0, 64], sizes = [16, 32], strides = [1, 1]} : vector<16x128xf32> to vector<16x32xf32>
    %290 = arith.truncf %289 : vector<16x32xf32> to vector<16x32xbf16>
    %291 = vector.extract_strided_slice %236 {offsets = [0, 64], sizes = [16, 32], strides = [1, 1]} : vector<16x128xf32> to vector<16x32xf32>
    %292 = arith.truncf %291 : vector<16x32xf32> to vector<16x32xbf16>
    %293 = vector.extract_strided_slice %237 {offsets = [0, 64], sizes = [16, 32], strides = [1, 1]} : vector<16x128xf32> to vector<16x32xf32>
    %294 = arith.truncf %293 : vector<16x32xf32> to vector<16x32xbf16>
    %cst_107 = arith.constant dense<0.000000e+00> : vector<16x16xf32>
    %295 = tpu.matmul %290, %292, %cst_107 {dimension_numbers = #tpu.dot_dimension_numbers<[1], [1], [0], [0], [0, 0, 1, 0], [], []>} : vector<16x32xbf16>, vector<16x32xbf16>, vector<16x16xf32> -> vector<16x16xf32>
    %296 = arith.addf %295, %25 : vector<16x16xf32>
    %cst_108 = arith.constant dense<0xFF800000> : vector<16xf32>
    %297 = vector.multi_reduction <maximumf>, %296, %cst_108 [1] : vector<16x16xf32> to vector<16xf32>
    %298 = vector.shape_cast %297 : vector<16xf32> to vector<16x1xf32>
    %299 = vector.broadcast %298 : vector<16x1xf32> to vector<16x16xf32>
    %300 = arith.subf %296, %299 : vector<16x16xf32>
    %301 = math.exp %300 : vector<16x16xf32>
    %cst_109 = arith.constant dense<0.000000e+00> : vector<16xf32>
    %302 = vector.multi_reduction <add>, %301, %cst_109 [1] : vector<16x16xf32> to vector<16xf32>
    %303 = vector.shape_cast %302 : vector<16xf32> to vector<16x1xf32>
    %304 = tpu.reciprocal %303 {approx = true} : vector<16x1xf32> -> vector<16x1xf32>
    %305 = vector.broadcast %304 : vector<16x1xf32> to vector<16x16xf32>
    %306 = arith.mulf %301, %305 : vector<16x16xf32>
    %307 = arith.truncf %306 : vector<16x16xf32> to vector<16x16xbf16>
    %cst_110 = arith.constant dense<0.000000e+00> : vector<16x32xf32>
    %308 = tpu.matmul %307, %294, %cst_110 {dimension_numbers = #tpu.dot_dimension_numbers<[1], [0], [0], [1], [0, 0, 1, 1], [], []>} : vector<16x16xbf16>, vector<16x32xbf16>, vector<16x32xf32> -> vector<16x32xf32>
    %309 = arith.truncf %308 : vector<16x32xf32> to vector<16x32xbf16>
    %310 = vector.extract_strided_slice %239 {offsets = [64, 0], sizes = [32, 128], strides = [1, 1]} : vector<128x128xbf16> to vector<32x128xbf16>
    %cst_111 = arith.constant dense<0.000000e+00> : vector<16x128xf32>
    %311 = tpu.matmul %309, %310, %cst_111 {dimension_numbers = #tpu.dot_dimension_numbers<[1], [0], [0], [1], [0, 0, 1, 1], [], []>} : vector<16x32xbf16>, vector<32x128xbf16>, vector<16x128xf32> -> vector<16x128xf32>
    %312 = arith.addf %288, %311 : vector<16x128xf32>
    %313 = vector.extract_strided_slice %235 {offsets = [0, 96], sizes = [16, 32], strides = [1, 1]} : vector<16x128xf32> to vector<16x32xf32>
    %314 = arith.truncf %313 : vector<16x32xf32> to vector<16x32xbf16>
    %315 = vector.extract_strided_slice %236 {offsets = [0, 96], sizes = [16, 32], strides = [1, 1]} : vector<16x128xf32> to vector<16x32xf32>
    %316 = arith.truncf %315 : vector<16x32xf32> to vector<16x32xbf16>
    %317 = vector.extract_strided_slice %237 {offsets = [0, 96], sizes = [16, 32], strides = [1, 1]} : vector<16x128xf32> to vector<16x32xf32>
    %318 = arith.truncf %317 : vector<16x32xf32> to vector<16x32xbf16>
    %cst_112 = arith.constant dense<0.000000e+00> : vector<16x16xf32>
    %319 = tpu.matmul %314, %316, %cst_112 {dimension_numbers = #tpu.dot_dimension_numbers<[1], [1], [0], [0], [0, 0, 1, 0], [], []>} : vector<16x32xbf16>, vector<16x32xbf16>, vector<16x16xf32> -> vector<16x16xf32>
    %320 = arith.addf %319, %25 : vector<16x16xf32>
    %cst_113 = arith.constant dense<0xFF800000> : vector<16xf32>
    %321 = vector.multi_reduction <maximumf>, %320, %cst_113 [1] : vector<16x16xf32> to vector<16xf32>
    %322 = vector.shape_cast %321 : vector<16xf32> to vector<16x1xf32>
    %323 = vector.broadcast %322 : vector<16x1xf32> to vector<16x16xf32>
    %324 = arith.subf %320, %323 : vector<16x16xf32>
    %325 = math.exp %324 : vector<16x16xf32>
    %cst_114 = arith.constant dense<0.000000e+00> : vector<16xf32>
    %326 = vector.multi_reduction <add>, %325, %cst_114 [1] : vector<16x16xf32> to vector<16xf32>
    %327 = vector.shape_cast %326 : vector<16xf32> to vector<16x1xf32>
    %328 = tpu.reciprocal %327 {approx = true} : vector<16x1xf32> -> vector<16x1xf32>
    %329 = vector.broadcast %328 : vector<16x1xf32> to vector<16x16xf32>
    %330 = arith.mulf %325, %329 : vector<16x16xf32>
    %331 = arith.truncf %330 : vector<16x16xf32> to vector<16x16xbf16>
    %cst_115 = arith.constant dense<0.000000e+00> : vector<16x32xf32>
    %332 = tpu.matmul %331, %318, %cst_115 {dimension_numbers = #tpu.dot_dimension_numbers<[1], [0], [0], [1], [0, 0, 1, 1], [], []>} : vector<16x16xbf16>, vector<16x32xbf16>, vector<16x32xf32> -> vector<16x32xf32>
    %333 = arith.truncf %332 : vector<16x32xf32> to vector<16x32xbf16>
    %334 = vector.extract_strided_slice %239 {offsets = [96, 0], sizes = [32, 128], strides = [1, 1]} : vector<128x128xbf16> to vector<32x128xbf16>
    %cst_116 = arith.constant dense<0.000000e+00> : vector<16x128xf32>
    %335 = tpu.matmul %333, %334, %cst_116 {dimension_numbers = #tpu.dot_dimension_numbers<[1], [0], [0], [1], [0, 0, 1, 1], [], []>} : vector<16x32xbf16>, vector<32x128xbf16>, vector<16x128xf32> -> vector<16x128xf32>
    %336 = arith.addf %312, %335 : vector<16x128xf32>
    %337 = arith.addf %224, %336 : vector<16x128xf32>
    %c1_117 = arith.constant 1 : index
    %c0_118 = arith.constant 0 : index
    %c0_119 = arith.constant 0 : index
    %338 = vector.load %arg8[%c1_117, %c0_118, %c0_119] : memref<2x1x128xf32, #tpu.memory_space<vmem>>, vector<1x1x128xf32>
    %339 = vector.shape_cast %338 : vector<1x1x128xf32> to vector<1x128xf32>
    %340 = vector.broadcast %339 : vector<1x128xf32> to vector<16x128xf32>
    %341 = arith.addf %337, %340 : vector<16x128xf32>
    %c1_120 = arith.constant 1 : index
    %c0_121 = arith.constant 0 : index
    %c0_122 = arith.constant 0 : index
    %342 = vector.load %arg9[%c1_120, %c0_121, %c0_122] : memref<2x1x128xf32, #tpu.memory_space<vmem>>, vector<1x1x128xf32>
    %343 = vector.shape_cast %342 : vector<1x1x128xf32> to vector<1x128xf32>
    %c1_123 = arith.constant 1 : index
    %c0_124 = arith.constant 0 : index
    %c0_125 = arith.constant 0 : index
    %344 = vector.load %arg10[%c1_123, %c0_124, %c0_125] : memref<2x1x128xf32, #tpu.memory_space<vmem>>, vector<1x1x128xf32>
    %345 = vector.shape_cast %344 : vector<1x1x128xf32> to vector<1x128xf32>
    %cst_126 = arith.constant dense<0.000000e+00> : vector<16xf32>
    %346 = vector.multi_reduction <add>, %341, %cst_126 [1] : vector<16x128xf32> to vector<16xf32>
    %347 = vector.shape_cast %346 : vector<16xf32> to vector<16x1xf32>
    %cst_127 = arith.constant 1.280000e+02 : f32
    %348 = vector.broadcast %cst_127 : f32 to vector<16x1xf32>
    %349 = arith.divf %347, %348 : vector<16x1xf32>
    %350 = vector.broadcast %349 : vector<16x1xf32> to vector<16x128xf32>
    %351 = arith.subf %341, %350 : vector<16x128xf32>
    %352 = arith.mulf %351, %351 : vector<16x128xf32>
    %cst_128 = arith.constant dense<0.000000e+00> : vector<16xf32>
    %353 = vector.multi_reduction <add>, %352, %cst_128 [1] : vector<16x128xf32> to vector<16xf32>
    %354 = vector.shape_cast %353 : vector<16xf32> to vector<16x1xf32>
    %cst_129 = arith.constant 1.280000e+02 : f32
    %355 = vector.broadcast %cst_129 : f32 to vector<16x1xf32>
    %356 = arith.divf %354, %355 : vector<16x1xf32>
    %357 = vector.broadcast %349 : vector<16x1xf32> to vector<16x128xf32>
    %358 = arith.subf %341, %357 : vector<16x128xf32>
    %cst_130 = arith.constant 9.99999996E-13 : f32
    %359 = vector.broadcast %cst_130 : f32 to vector<16x1xf32>
    %360 = arith.addf %356, %359 : vector<16x1xf32>
    %361 = math.rsqrt %360 : vector<16x1xf32>
    %362 = vector.broadcast %361 : vector<16x1xf32> to vector<16x128xf32>
    %363 = arith.mulf %358, %362 : vector<16x128xf32>
    %364 = vector.broadcast %343 : vector<1x128xf32> to vector<16x128xf32>
    %365 = arith.mulf %363, %364 : vector<16x128xf32>
    %366 = vector.broadcast %345 : vector<1x128xf32> to vector<16x128xf32>
    %367 = arith.addf %365, %366 : vector<16x128xf32>
    %368 = arith.truncf %367 : vector<16x128xf32> to vector<16x128xbf16>
    %c1_131 = arith.constant 1 : index
    %c0_132 = arith.constant 0 : index
    %c0_133 = arith.constant 0 : index
    %369 = vector.load %arg11[%c1_131, %c0_132, %c0_133] : memref<2x128x512xbf16, #tpu.memory_space<vmem>>, vector<1x128x512xbf16>
    %370 = vector.shape_cast %369 : vector<1x128x512xbf16> to vector<128x512xbf16>
    %cst_134 = arith.constant dense<0.000000e+00> : vector<16x512xf32>
    %371 = tpu.matmul %368, %370, %cst_134 {dimension_numbers = #tpu.dot_dimension_numbers<[1], [0], [0], [1], [0, 0, 1, 1], [], []>} : vector<16x128xbf16>, vector<128x512xbf16>, vector<16x512xf32> -> vector<16x512xf32>
    %c1_135 = arith.constant 1 : index
    %c0_136 = arith.constant 0 : index
    %c0_137 = arith.constant 0 : index
    %372 = vector.load %arg12[%c1_135, %c0_136, %c0_137] : memref<2x1x512xf32, #tpu.memory_space<vmem>>, vector<1x1x512xf32>
    %373 = vector.shape_cast %372 : vector<1x1x512xf32> to vector<1x512xf32>
    %374 = vector.broadcast %373 : vector<1x512xf32> to vector<16x512xf32>
    %375 = arith.addf %371, %374 : vector<16x512xf32>
    %376 = arith.mulf %375, %375 : vector<16x512xf32>
    %377 = arith.mulf %375, %376 : vector<16x512xf32>
    %cst_138 = arith.constant 4.471500e-02 : f32
    %378 = vector.broadcast %cst_138 : f32 to vector<16x512xf32>
    %379 = arith.mulf %378, %377 : vector<16x512xf32>
    %380 = arith.addf %375, %379 : vector<16x512xf32>
    %cst_139 = arith.constant 0.797884583 : f32
    %381 = vector.broadcast %cst_139 : f32 to vector<16x512xf32>
    %382 = arith.mulf %381, %380 : vector<16x512xf32>
    %383 = math.tanh %382 : vector<16x512xf32>
    %cst_140 = arith.constant 1.000000e+00 : f32
    %384 = vector.broadcast %cst_140 : f32 to vector<16x512xf32>
    %385 = arith.addf %384, %383 : vector<16x512xf32>
    %cst_141 = arith.constant 5.000000e-01 : f32
    %386 = vector.broadcast %cst_141 : f32 to vector<16x512xf32>
    %387 = arith.mulf %386, %385 : vector<16x512xf32>
    %388 = arith.mulf %375, %387 : vector<16x512xf32>
    %389 = arith.truncf %388 : vector<16x512xf32> to vector<16x512xbf16>
    %c1_142 = arith.constant 1 : index
    %c0_143 = arith.constant 0 : index
    %c0_144 = arith.constant 0 : index
    %390 = vector.load %arg13[%c1_142, %c0_143, %c0_144] : memref<2x512x128xbf16, #tpu.memory_space<vmem>>, vector<1x512x128xbf16>
    %391 = vector.shape_cast %390 : vector<1x512x128xbf16> to vector<512x128xbf16>
    %cst_145 = arith.constant dense<0.000000e+00> : vector<16x128xf32>
    %392 = tpu.matmul %389, %391, %cst_145 {dimension_numbers = #tpu.dot_dimension_numbers<[1], [0], [0], [1], [0, 0, 1, 1], [], []>} : vector<16x512xbf16>, vector<512x128xbf16>, vector<16x128xf32> -> vector<16x128xf32>
    %c1_146 = arith.constant 1 : index
    %c0_147 = arith.constant 0 : index
    %c0_148 = arith.constant 0 : index
    %393 = vector.load %arg14[%c1_146, %c0_147, %c0_148] : memref<2x1x128xf32, #tpu.memory_space<vmem>>, vector<1x1x128xf32>
    %394 = vector.shape_cast %393 : vector<1x1x128xf32> to vector<1x128xf32>
    %395 = vector.broadcast %394 : vector<1x128xf32> to vector<16x128xf32>
    %396 = arith.addf %392, %395 : vector<16x128xf32>
    %397 = arith.addf %367, %396 : vector<16x128xf32>
    %c1_149 = arith.constant 1 : index
    %c0_150 = arith.constant 0 : index
    %c0_151 = arith.constant 0 : index
    %398 = vector.load %arg15[%c1_149, %c0_150, %c0_151] : memref<2x1x128xf32, #tpu.memory_space<vmem>>, vector<1x1x128xf32>
    %399 = vector.shape_cast %398 : vector<1x1x128xf32> to vector<1x128xf32>
    %c1_152 = arith.constant 1 : index
    %c0_153 = arith.constant 0 : index
    %c0_154 = arith.constant 0 : index
    %400 = vector.load %arg16[%c1_152, %c0_153, %c0_154] : memref<2x1x128xf32, #tpu.memory_space<vmem>>, vector<1x1x128xf32>
    %401 = vector.shape_cast %400 : vector<1x1x128xf32> to vector<1x128xf32>
    %cst_155 = arith.constant dense<0.000000e+00> : vector<16xf32>
    %402 = vector.multi_reduction <add>, %397, %cst_155 [1] : vector<16x128xf32> to vector<16xf32>
    %403 = vector.shape_cast %402 : vector<16xf32> to vector<16x1xf32>
    %cst_156 = arith.constant 1.280000e+02 : f32
    %404 = vector.broadcast %cst_156 : f32 to vector<16x1xf32>
    %405 = arith.divf %403, %404 : vector<16x1xf32>
    %406 = vector.broadcast %405 : vector<16x1xf32> to vector<16x128xf32>
    %407 = arith.subf %397, %406 : vector<16x128xf32>
    %408 = arith.mulf %407, %407 : vector<16x128xf32>
    %cst_157 = arith.constant dense<0.000000e+00> : vector<16xf32>
    %409 = vector.multi_reduction <add>, %408, %cst_157 [1] : vector<16x128xf32> to vector<16xf32>
    %410 = vector.shape_cast %409 : vector<16xf32> to vector<16x1xf32>
    %cst_158 = arith.constant 1.280000e+02 : f32
    %411 = vector.broadcast %cst_158 : f32 to vector<16x1xf32>
    %412 = arith.divf %410, %411 : vector<16x1xf32>
    %413 = vector.broadcast %405 : vector<16x1xf32> to vector<16x128xf32>
    %414 = arith.subf %397, %413 : vector<16x128xf32>
    %cst_159 = arith.constant 9.99999996E-13 : f32
    %415 = vector.broadcast %cst_159 : f32 to vector<16x1xf32>
    %416 = arith.addf %412, %415 : vector<16x1xf32>
    %417 = math.rsqrt %416 : vector<16x1xf32>
    %418 = vector.broadcast %417 : vector<16x1xf32> to vector<16x128xf32>
    %419 = arith.mulf %414, %418 : vector<16x128xf32>
    %420 = vector.broadcast %399 : vector<1x128xf32> to vector<16x128xf32>
    %421 = arith.mulf %419, %420 : vector<16x128xf32>
    %422 = vector.broadcast %401 : vector<1x128xf32> to vector<16x128xf32>
    %423 = arith.addf %421, %422 : vector<16x128xf32>
    %424 = arith.truncf %423 : vector<16x128xf32> to vector<16x128xbf16>
    %c0_160 = arith.constant 0 : index
    %c0_161 = arith.constant 0 : index
    %425 = vector.load %arg17[%c0_160, %c0_161] : memref<128x128xbf16, #tpu.memory_space<vmem>>, vector<128x128xbf16>
    %cst_162 = arith.constant dense<0.000000e+00> : vector<16x128xf32>
    %426 = tpu.matmul %424, %425, %cst_162 {dimension_numbers = #tpu.dot_dimension_numbers<[1], [0], [0], [1], [0, 0, 1, 1], [], []>} : vector<16x128xbf16>, vector<128x128xbf16>, vector<16x128xf32> -> vector<16x128xf32>
    %c0_163 = arith.constant 0 : index
    %c0_164 = arith.constant 0 : index
    %427 = vector.load %arg18[%c0_163, %c0_164] : memref<1x128xf32, #tpu.memory_space<vmem>>, vector<1x128xf32>
    %428 = vector.broadcast %427 : vector<1x128xf32> to vector<16x128xf32>
    %429 = arith.addf %426, %428 : vector<16x128xf32>
    %430 = math.tanh %429 : vector<16x128xf32>
    %431 = arith.truncf %430 : vector<16x128xf32> to vector<16x128xbf16>
    %c0_165 = arith.constant 0 : index
    %c0_166 = arith.constant 0 : index
    %432 = vector.load %arg19[%c0_165, %c0_166] : memref<128x128xbf16, #tpu.memory_space<vmem>>, vector<128x128xbf16>
    %cst_167 = arith.constant dense<0.000000e+00> : vector<16x128xf32>
    %433 = tpu.matmul %431, %432, %cst_167 {dimension_numbers = #tpu.dot_dimension_numbers<[1], [0], [0], [1], [0, 0, 1, 1], [], []>} : vector<16x128xbf16>, vector<128x128xbf16>, vector<16x128xf32> -> vector<16x128xf32>
    %c0_168 = arith.constant 0 : index
    %c0_169 = arith.constant 0 : index
    %434 = vector.load %arg20[%c0_168, %c0_169] : memref<1x128xf32, #tpu.memory_space<vmem>>, vector<1x128xf32>
    %435 = vector.broadcast %434 : vector<1x128xf32> to vector<16x128xf32>
    %436 = arith.addf %433, %435 : vector<16x128xf32>
    %c0_170 = arith.constant 0 : index
    %c0_171 = arith.constant 0 : index
    %437 = vector.load %arg21[%c0_170, %c0_171] : memref<16x128xf32, #tpu.memory_space<vmem>>, vector<16x128xf32>
    tpu.vector_store %arg21[%c0_170, %c0_171], %436 {strides = array<i32>} : memref<16x128xf32, #tpu.memory_space<vmem>>, vector<16x128xf32>,
    return
  }
  func.func @transform_0(%arg0: i32) -> (i32, i32) {
    %c0_i32 = arith.constant 0 : i32
    %c0_i32_0 = arith.constant 0 : i32
    %c0_i32_1 = arith.constant 0 : i32
    return %c0_i32, %c0_i32_0 : i32, i32
  }
  func.func @transform_1(%arg0: i32) -> (i32, i32) {
    %c0_i32 = arith.constant 0 : i32
    %c0_i32_0 = arith.constant 0 : i32
    %c0_i32_1 = arith.constant 0 : i32
    return %c0_i32, %c0_i32_0 : i32, i32
  }
  func.func @transform_2(%arg0: i32) -> (i32, i32) {
    %c0_i32 = arith.constant 0 : i32
    %c0_i32_0 = arith.constant 0 : i32
    %c0_i32_1 = arith.constant 0 : i32
    return %c0_i32, %c0_i32_0 : i32, i32
  }
  func.func @transform_3(%arg0: i32) -> (i32, i32) {
    %c0_i32 = arith.constant 0 : i32
    %c0_i32_0 = arith.constant 0 : i32
    %c0_i32_1 = arith.constant 0 : i32
    return %c0_i32, %c0_i32_0 : i32, i32
  }
  func.func @transform_4(%arg0: i32) -> (i32, i32, i32) {
    %c0_i32 = arith.constant 0 : i32
    %c0_i32_0 = arith.constant 0 : i32
    %c0_i32_1 = arith.constant 0 : i32
    %c0_i32_2 = arith.constant 0 : i32
    return %c0_i32, %c0_i32_0, %c0_i32_1 : i32, i32, i32
  }
  func.func @transform_5(%arg0: i32) -> (i32, i32, i32) {
    %c0_i32 = arith.constant 0 : i32
    %c0_i32_0 = arith.constant 0 : i32
    %c0_i32_1 = arith.constant 0 : i32
    %c0_i32_2 = arith.constant 0 : i32
    return %c0_i32, %c0_i32_0, %c0_i32_1 : i32, i32, i32
  }
  func.func @transform_6(%arg0: i32) -> (i32, i32, i32) {
    %c0_i32 = arith.constant 0 : i32
    %c0_i32_0 = arith.constant 0 : i32
    %c0_i32_1 = arith.constant 0 : i32
    %c0_i32_2 = arith.constant 0 : i32
    return %c0_i32, %c0_i32_0, %c0_i32_1 : i32, i32, i32
  }
  func.func @transform_7(%arg0: i32) -> (i32, i32, i32) {
    %c0_i32 = arith.constant 0 : i32
    %c0_i32_0 = arith.constant 0 : i32
    %c0_i32_1 = arith.constant 0 : i32
    %c0_i32_2 = arith.constant 0 : i32
    return %c0_i32, %c0_i32_0, %c0_i32_1 : i32, i32, i32
  }
  func.func @transform_8(%arg0: i32) -> (i32, i32, i32) {
    %c0_i32 = arith.constant 0 : i32
    %c0_i32_0 = arith.constant 0 : i32
    %c0_i32_1 = arith.constant 0 : i32
    %c0_i32_2 = arith.constant 0 : i32
    return %c0_i32, %c0_i32_0, %c0_i32_1 : i32, i32, i32
  }
  func.func @transform_9(%arg0: i32) -> (i32, i32, i32) {
    %c0_i32 = arith.constant 0 : i32
    %c0_i32_0 = arith.constant 0 : i32
    %c0_i32_1 = arith.constant 0 : i32
    %c0_i32_2 = arith.constant 0 : i32
    return %c0_i32, %c0_i32_0, %c0_i32_1 : i32, i32, i32
  }
  func.func @transform_10(%arg0: i32) -> (i32, i32, i32) {
    %c0_i32 = arith.constant 0 : i32
    %c0_i32_0 = arith.constant 0 : i32
    %c0_i32_1 = arith.constant 0 : i32
    %c0_i32_2 = arith.constant 0 : i32
    return %c0_i32, %c0_i32_0, %c0_i32_1 : i32, i32, i32
  }
  func.func @transform_11(%arg0: i32) -> (i32, i32, i32) {
    %c0_i32 = arith.constant 0 : i32
    %c0_i32_0 = arith.constant 0 : i32
    %c0_i32_1 = arith.constant 0 : i32
    %c0_i32_2 = arith.constant 0 : i32
    return %c0_i32, %c0_i32_0, %c0_i32_1 : i32, i32, i32
  }
  func.func @transform_12(%arg0: i32) -> (i32, i32, i32) {
    %c0_i32 = arith.constant 0 : i32
    %c0_i32_0 = arith.constant 0 : i32
    %c0_i32_1 = arith.constant 0 : i32
    %c0_i32_2 = arith.constant 0 : i32
    return %c0_i32, %c0_i32_0, %c0_i32_1 : i32, i32, i32
  }
  func.func @transform_13(%arg0: i32) -> (i32, i32, i32) {
    %c0_i32 = arith.constant 0 : i32
    %c0_i32_0 = arith.constant 0 : i32
    %c0_i32_1 = arith.constant 0 : i32
    %c0_i32_2 = arith.constant 0 : i32
    return %c0_i32, %c0_i32_0, %c0_i32_1 : i32, i32, i32
  }
  func.func @transform_14(%arg0: i32) -> (i32, i32, i32) {
    %c0_i32 = arith.constant 0 : i32
    %c0_i32_0 = arith.constant 0 : i32
    %c0_i32_1 = arith.constant 0 : i32
    %c0_i32_2 = arith.constant 0 : i32
    return %c0_i32, %c0_i32_0, %c0_i32_1 : i32, i32, i32
  }
  func.func @transform_15(%arg0: i32) -> (i32, i32, i32) {
    %c0_i32 = arith.constant 0 : i32
    %c0_i32_0 = arith.constant 0 : i32
    %c0_i32_1 = arith.constant 0 : i32
    %c0_i32_2 = arith.constant 0 : i32
    return %c0_i32, %c0_i32_0, %c0_i32_1 : i32, i32, i32
  }
  func.func @transform_16(%arg0: i32) -> (i32, i32) {
    %c0_i32 = arith.constant 0 : i32
    %c0_i32_0 = arith.constant 0 : i32
    %c0_i32_1 = arith.constant 0 : i32
    return %c0_i32, %c0_i32_0 : i32, i32
  }
  func.func @transform_17(%arg0: i32) -> (i32, i32) {
    %c0_i32 = arith.constant 0 : i32
    %c0_i32_0 = arith.constant 0 : i32
    %c0_i32_1 = arith.constant 0 : i32
    return %c0_i32, %c0_i32_0 : i32, i32
  }
  func.func @transform_18(%arg0: i32) -> (i32, i32) {
    %c0_i32 = arith.constant 0 : i32
    %c0_i32_0 = arith.constant 0 : i32
    %c0_i32_1 = arith.constant 0 : i32
    return %c0_i32, %c0_i32_0 : i32, i32
  }
  func.func @transform_19(%arg0: i32) -> (i32, i32) {
    %c0_i32 = arith.constant 0 : i32
    %c0_i32_0 = arith.constant 0 : i32
    %c0_i32_1 = arith.constant 0 : i32
    return %c0_i32, %c0_i32_0 : i32, i32
  }
  func.func @transform_20(%arg0: i32) -> (i32, i32) {
    %c0_i32 = arith.constant 0 : i32
    %c0_i32_0 = arith.constant 0 : i32
    %c0_i32_1 = arith.constant 0 : i32
    return %c0_i32, %c0_i32_0 : i32, i32
  }
}

</mosaic_0001>

<bundles_post_ra>
// kernel: tpu_custom_call.1
= control target key start
LH: loop header
LB: loop body
LE: loop exit
PB: predicated region body
PF: predicated region fallthrough
CT: control target
= control target key end

     0   :  { %s6625_s0 = inlined_call_operand.hbm [shape: f32[16,128], index: 0, kind: input, shape index: {}]   ;;  %s6626_s1 = inlined_call_operand.hbm [shape: f32[16,16], index: 1, kind: input, shape index: {}]   ;;  %s6627_s2 = inlined_call_operand.hbm [shape: f32[1,128], index: 2, kind: input, shape index: {}]   ;;  %s6628_s3 = inlined_call_operand.hbm [shape: f32[1,128], index: 3, kind: input, shape index: {}]   ;;  %s6629_s4 = inlined_call_operand.hbm [shape: bf16[2,128,384], index: 4, kind: input, shape index: {}]   ;;  %s6630_s5 = inlined_call_operand.hbm [shape: f32[2,1,384], index: 5, kind: input, shape index: {}]   ;;  %s6631_s6 = inlined_call_operand.hbm [shape: bf16[2,128,128], index: 6, kind: input, shape index: {}]   ;;  %s6632_s7 = inlined_call_operand.vmem [shape: f32[2,1,128], index: 7, kind: input, shape index: {}]   ;;  %s6633_s8 = inlined_call_operand.vmem [shape: f32[2,1,128], index: 8, kind: input, shape index: {}]   ;;  %s6634_s9 = inlined_call_operand.hbm [shape: f32[2,1,128], index: 9, kind: input, shape index: {}]   ;;  %s6635_s10 = inlined_call_operand.hbm [shape: bf16[2,128,512], index: 10, kind: input, shape index: {}]   ;;  %s6636_s11 = inlined_call_operand.hbm [shape: f32[2,1,512], index: 11, kind: input, shape index: {}]   ;;  %s6637_s12 = inlined_call_operand.hbm [shape: bf16[2,512,128], index: 12, kind: input, shape index: {}]   ;;  %s6638_s13 = inlined_call_operand.hbm [shape: f32[2,1,128], index: 13, kind: input, shape index: {}]   ;;  %s6639_s14 = inlined_call_operand.hbm [shape: f32[2,1,128], index: 14, kind: input, shape index: {}]   ;;  %s6640_s15 = inlined_call_operand.hbm [shape: f32[2,1,128], index: 15, kind: input, shape index: {}]   ;;  %s6641_s16 = inlined_call_operand.hbm [shape: bf16[128,128], index: 16, kind: input, shape index: {}]   ;;  %s6642_s17 = inlined_call_operand.hbm [shape: f32[1,128], index: 17, kind: input, shape index: {}]   ;;  %s6643_s18 = inlined_call_operand.vmem [shape: bf16[128,128], index: 18, kind: input, shape index: {}]   ;;  %s6644_s19 = inlined_call_operand.vmem [shape: f32[1,128], index: 19, kind: input, shape index: {}]   ;;  %s6645_s20 = inlined_call_operand.hbm [shape: f32[16,128], index: 20, kind: output, shape index: {}]  }
   0x1   :  { %6660 = sst [smem:[#allocation39_spill]] %s6625_s0 }
   0x2   :  { %6661 = sst [smem:[#allocation40_spill]] %s6626_s1 }
   0x3   :  { %6662 = sst [smem:[#allocation41_spill]] %s6627_s2 }
   0x4   :  { %6663 = sst [smem:[#allocation42_spill]] %s6628_s3 }
   0x5   :  { %6664 = sst [smem:[#allocation43_spill]] %s6629_s4 }
   0x6   :  { %25 = vsyncpa [#allocation3], 0 }
   0x7   :  { %26 = vsyncpa [#allocation6], 0 }
   0x8   :  { %27 = vsyncpa [#allocation9], 0 }
   0x9   :  { %28 = vsyncpa [#allocation12], 0 }
   0xa   :  { %29 = vsyncpa [#allocation15], 0 }
   0xb   :  { %30 = vsyncpa [#allocation18], 0 }
   0xc   :  { %31 = vsyncpa [#allocation21], 0 }
   0xd   :  { %32 = vsyncpa [#allocation24], 0 }
   0xe   :  { %33 = vsyncpa [#allocation27], 0 }
   0xf   :  { %34 = vsyncpa [#allocation4], 0  ;;  %s5687_s1 = smov [#allocation5]   ;;  %s5688_s23 = smov [#allocation8]  }
  0x10   :  { %s52_s22 = sshll.u32 %s5687_s1, 4  ;;  %s75_s24 = sshll.u32 %s5688_s23, 4  ;;  %s53_s22 = int_to_ptr.vmem [resolvable:$true] %s52_s22  ;;  %s5825_s24 = int_to_ptr.vmem [resolvable:$true] %s75_s24 }
  0x11   :  { %s6665_s3 = sld [smem:[#allocation40_spill]] }
  0x17   :  { %s5293_s26 = scalar_lea.hbm %s6665_s3, 256 }
  0x18   :  { %p5294_p0 = scmp.ne.s32.totalorder %s6665_s3, %s5293_s26  ;;  %p5297_p1 = scmp.lt.u32.totalorder %s5293_s26, %s6665_s3 }
  0x1a   :  { %p5299_p2 = pnand %p5297_p1, %p5294_p0 }
  0x1c   :  { %5302 = shalt.err (!%p5299_p2)
}
  0x1d   :  { %s5303_s30 = scalar_lea.vmem %s53_s22, 256  ;;  %p5308_p4 = scmp.lt.s32.totalorder %s53_s22, %s53_s22 }
  0x1e   :  { %p5304_p3 = scmp.ne.s32.totalorder %s53_s22, %s5303_s30  ;;  %p5309_p5 = scmp.lt.s32.totalorder %s5303_s30, %s5303_s30 }
  0x20   :  { %p5310_p6 = por %p5309_p5, %p5308_p4 }
  0x22   :  { %p5311_p7 = pnand %p5310_p6, %p5304_p3 }
  0x24   :  { %5314 = shalt.err (!%p5311_p7)
}
  0x25   :  { %s6651_s0 = smov 128   ;;  %s6653_s21 = smov 8  }
  0x26   :  { %58 = dma.hbm_to_vmem [thread:$0]  %s6665_s3, 256, %s53_s22, [#allocation6], %s6651_s0, %s6651_s0, %s6653_s21  }
  0x27   :  { %s6666_s26 = sld [smem:[#allocation42_spill]] }
  0x2d   :  { %s5315_s27 = scalar_lea.hbm %s6666_s26, 16 }
  0x2e   :  { %p5316_p8 = scmp.ne.s32.totalorder %s6666_s26, %s5315_s27  ;;  %p5319_p9 = scmp.lt.u32.totalorder %s5315_s27, %s6666_s26 }
  0x30   :  { %p5321_p10 = pnand %p5319_p9, %p5316_p8 }
  0x32   :  { %5324 = shalt.err (!%p5321_p10)
}
  0x33   :  { %s5325_s1 = scalar_lea.vmem %s5825_s24, 16  ;;  %s5329_s22 = scalar_lea.vmem %s5825_s24, 32 }
  0x34   :  { %p5326_p11 = scmp.ne.s32.totalorder %s5825_s24, %s5325_s1  ;;  %p5330_p12 = scmp.lt.s32.totalorder %s5825_s24, %s5825_s24 }
  0x35   :  { %p5331_p13 = scmp.lt.s32.totalorder %s5329_s22, %s5325_s1 }
  0x37   :  { %p5332_p0 = por %p5331_p13, %p5330_p12 }
  0x39   :  { %p5333_p1 = pnand %p5332_p0, %p5326_p11 }
  0x3b   :  { %5336 = shalt.err (!%p5333_p1)
}
  0x3c   :  { %78 = dma.hbm_to_vmem [thread:$0]  %s6666_s26, 16, %s5825_s24, [#allocation9]  }
  0x3d   :  { %s5691_s2 = smov [#allocation11]   ;;  %s5337_s4 = scalar_lea.hbm %s6630_s5, 96 }
  0x3e   :  { %s96_s25 = sshll.u32 %s5691_s2, 4  ;;  %p5338_p2 = scmp.ne.s32.totalorder %s6630_s5, %s5337_s4  ;;  %s97_s25 = int_to_ptr.vmem [resolvable:$true] %s96_s25 }
  0x3f   :  { %p5341_p3 = scmp.lt.u32.totalorder %s5337_s4, %s6630_s5 }
  0x41   :  { %p5343_p4 = pnand %p5341_p3, %p5338_p2 }
  0x43   :  { %5346 = shalt.err (!%p5343_p4)
}
  0x44   :  { %s5347_s0 = scalar_lea.vmem %s97_s25, 96  ;;  %p5352_p6 = scmp.lt.s32.totalorder %s97_s25, %s97_s25 }
  0x45   :  { %p5348_p5 = scmp.ne.s32.totalorder %s97_s25, %s5347_s0  ;;  %p5353_p7 = scmp.lt.s32.totalorder %s5347_s0, %s5347_s0 }
  0x47   :  { %p5354_p8 = por %p5353_p7, %p5352_p6 }
  0x49   :  { %p5355_p9 = pnand %p5354_p8, %p5348_p5 }
  0x4b   :  { %5358 = shalt.err (!%p5355_p9)
}
  0x4c   :  { %s5692_s24 = smov 48   ;;  %s5693_s26 = smov 3  }
  0x4d   :  { %102 = dma.hbm_to_vmem [thread:$0]  %s6630_s5, 96, %s97_s25, [#allocation12], %s5692_s24, %s5692_s24, %s5693_s26  }
  0x4e   :  { %s5694_s2 = smov [#allocation14]   ;;  %s5359_s29 = scalar_lea.hbm %s6634_s9, 32 }
  0x4f   :  { %s124_s27 = sshll.u32 %s5694_s2, 4  ;;  %p5360_p10 = scmp.ne.s32.totalorder %s6634_s9, %s5359_s29  ;;  %s125_s27 = int_to_ptr.vmem [resolvable:$true] %s124_s27 }
  0x50   :  { %p5363_p11 = scmp.lt.u32.totalorder %s5359_s29, %s6634_s9 }
  0x52   :  { %p5365_p12 = pnand %p5363_p11, %p5360_p10 }
  0x54   :  { %5368 = shalt.err (!%p5365_p12)
}
  0x55   :  { %s5369_s21 = scalar_lea.vmem %s125_s27, 32  ;;  %p5374_p0 = scmp.lt.s32.totalorder %s125_s27, %s125_s27 }
  0x56   :  { %p5370_p13 = scmp.ne.s32.totalorder %s125_s27, %s5369_s21  ;;  %p5375_p1 = scmp.lt.s32.totalorder %s5369_s21, %s5369_s21 }
  0x58   :  { %p5376_p2 = por %p5375_p1, %p5374_p0 }
  0x5a   :  { %p5377_p3 = pnand %p5376_p2, %p5370_p13 }
  0x5c   :  { %5380 = shalt.err (!%p5377_p3)
}
  0x5d   :  { %s6656_s5 = smov 16   ;;  %s6655_s25 = smov 1  }
  0x5e   :  { %130 = dma.hbm_to_vmem [thread:$0]  %s6634_s9, 32, %s125_s27, [#allocation15], %s6656_s5, %s6656_s5, %s6655_s25  }
  0x5f   :  { %s5697_s3 = smov [#allocation17]   ;;  %s5698_s2 = smov [#allocation20]  }
  0x60   :  { %s148_s23 = sshll.u32 %s5697_s3, 4  ;;  %s172_s28 = sshll.u32 %s5698_s2, 4  ;;  %s149_s23 = int_to_ptr.vmem [resolvable:$true] %s148_s23  ;;  %s5887_s28 = int_to_ptr.vmem [resolvable:$true] %s172_s28 }
  0x61   :  { %s5381_s29 = scalar_lea.hbm %s6636_s11, 128 }
  0x62   :  { %p5382_p4 = scmp.ne.s32.totalorder %s6636_s11, %s5381_s29  ;;  %p5385_p5 = scmp.lt.u32.totalorder %s5381_s29, %s6636_s11 }
  0x64   :  { %p5387_p6 = pnand %p5385_p5, %p5382_p4 }
  0x66   :  { %5390 = shalt.err (!%p5387_p6)
}
  0x67   :  { %s5391_s9 = scalar_lea.vmem %s149_s23, 128  ;;  %p5396_p8 = scmp.lt.s32.totalorder %s149_s23, %s149_s23 }
  0x68   :  { %p5392_p7 = scmp.ne.s32.totalorder %s149_s23, %s5391_s9  ;;  %p5397_p9 = scmp.lt.s32.totalorder %s5391_s9, %s5391_s9 }
  0x6a   :  { %p5398_p10 = por %p5397_p9, %p5396_p8 }
  0x6c   :  { %p5399_p11 = pnand %p5398_p10, %p5392_p7 }
  0x6e   :  { %5402 = shalt.err (!%p5399_p11)
}
  0x6f   :  { %s6658_s27 = smov 64   ;;  %s5700_s24 = smov 4  }
  0x70   :  { %154 = dma.hbm_to_vmem [thread:$0]  %s6636_s11, 128, %s149_s23, [#allocation18], %s6658_s27, %s6658_s27, %s5700_s24  }
  0x71   :  { %s5403_s4 = scalar_lea.hbm %s6638_s13, 32 }
  0x72   :  { %p5404_p12 = scmp.ne.s32.totalorder %s6638_s13, %s5403_s4  ;;  %p5407_p13 = scmp.lt.u32.totalorder %s5403_s4, %s6638_s13 }
  0x74   :  { %p5409_p0 = pnand %p5407_p13, %p5404_p12 }
  0x76   :  { %5412 = shalt.err (!%p5409_p0)
}
  0x77   :  { %s5413_s22 = scalar_lea.vmem %s5887_s28, 32  ;;  %p5418_p2 = scmp.lt.s32.totalorder %s5887_s28, %s5887_s28 }
  0x78   :  { %p5414_p1 = scmp.ne.s32.totalorder %s5887_s28, %s5413_s22  ;;  %p5419_p3 = scmp.lt.s32.totalorder %s5413_s22, %s5413_s22 }
  0x7a   :  { %p5420_p4 = por %p5419_p3, %p5418_p2 }
  0x7c   :  { %p5421_p5 = pnand %p5420_p4, %p5414_p1 }
  0x7e   :  { %5424 = shalt.err (!%p5421_p5)
}
  0x7f   :  { %178 = dma.hbm_to_vmem [thread:$0]  %s6638_s13, 32, %s5887_s28, [#allocation21], %s6656_s5, %s6656_s5, %s6655_s25  }
  0x80   :  { %s5701_s9 = smov [#allocation23]   ;;  %s5702_s3 = smov [#allocation2]  }
  0x81   :  { %s196_s26 = sshll.u32 %s5701_s9, 4  ;;  %s40_s2 = sshll.u32 %s5702_s3, 4  ;;  %s197_s26 = int_to_ptr.vmem [resolvable:$true] %s196_s26  ;;  %s5924_s2 = int_to_ptr.vmem [resolvable:$true] %s40_s2 }
  0x82   :  { %s5425_s29 = scalar_lea.hbm %s6640_s15, 32 }
  0x83   :  { %p5426_p6 = scmp.ne.s32.totalorder %s6640_s15, %s5425_s29  ;;  %p5429_p7 = scmp.lt.u32.totalorder %s5425_s29, %s6640_s15 }
  0x85   :  { %p5431_p8 = pnand %p5429_p7, %p5426_p6 }
  0x87   :  { %5434 = shalt.err (!%p5431_p8)
}
  0x88   :  { %s5435_s13 = scalar_lea.vmem %s197_s26, 32  ;;  %p5440_p10 = scmp.lt.s32.totalorder %s197_s26, %s197_s26 }
  0x89   :  { %p5436_p9 = scmp.ne.s32.totalorder %s197_s26, %s5435_s13  ;;  %p5441_p11 = scmp.lt.s32.totalorder %s5435_s13, %s5435_s13 }
  0x8b   :  { %p5442_p12 = por %p5441_p11, %p5440_p10 }
  0x8d   :  { %p5443_p13 = pnand %p5442_p12, %p5436_p9 }
  0x8f   :  { %5446 = shalt.err (!%p5443_p13)
}
  0x90   :  { %202 = dma.hbm_to_vmem [thread:$0]  %s6640_s15, 32, %s197_s26, [#allocation24], %s6656_s5, %s6656_s5, %s6655_s25  }
  0x91   :  { %s6667_s3 = sld [smem:[#allocation39_spill]] }
  0x97   :  { %s5447_s21 = scalar_lea.hbm %s6667_s3, 256 }
  0x98   :  { %p5448_p0 = scmp.ne.s32.totalorder %s6667_s3, %s5447_s21  ;;  %p5451_p1 = scmp.lt.u32.totalorder %s5447_s21, %s6667_s3 }
  0x9a   :  { %p5453_p2 = pnand %p5451_p1, %p5448_p0 }
  0x9c   :  { %5456 = shalt.err (!%p5453_p2)
}
  0x9d   :  { %s5457_s0 = scalar_lea.vmem %s5924_s2, 256  ;;  %p5462_p4 = scmp.lt.s32.totalorder %s5924_s2, %s5924_s2 }
  0x9e   :  { %p5458_p3 = scmp.ne.s32.totalorder %s5924_s2, %s5457_s0  ;;  %p5463_p5 = scmp.lt.s32.totalorder %s5457_s0, %s5457_s0 }
  0xa0   :  { %p5464_p6 = por %p5463_p5, %p5462_p4 }
  0xa2   :  { %p5465_p7 = pnand %p5464_p6, %p5458_p3 }
  0xa4   :  { %5468 = shalt.err (!%p5465_p7)
}
  0xa5   :  { %s6668_s15 = smov 8   ;;  %s6669_s26 = smov 128  }
  0xa6   :  { %46 = dma.hbm_to_vmem [thread:$0]  %s6667_s3, 256, %s5924_s2, [#allocation3], %s6669_s26, %s6669_s26, %s6668_s15  }
  0xa7   :  { %s5703_s28 = smov [#allocation7]   ;;  %s5704_s23 = smov [#allocation10]  }
  0xa8   :  { %s65_s11 = sshll.u32 %s5703_s28, 4  ;;  %s84_s9 = sshll.u32 %s5704_s23, 4  ;;  %s66_s11 = int_to_ptr.vmem [resolvable:$true] %s65_s11  ;;  %s5961_s9 = int_to_ptr.vmem [resolvable:$true] %s84_s9 }
  0xa9   :  { %s6670_s29 = sld [smem:[#allocation41_spill]] }
  0xaf   :  { %s5469_s30 = scalar_lea.hbm %s6670_s29, 16 }
  0xb0   :  { %p5470_p8 = scmp.ne.s32.totalorder %s6670_s29, %s5469_s30  ;;  %p5473_p9 = scmp.lt.u32.totalorder %s5469_s30, %s6670_s29 }
  0xb2   :  { %p5475_p10 = pnand %p5473_p9, %p5470_p8 }
  0xb4   :  { %5478 = shalt.err (!%p5475_p10)
}
  0xb5   :  { %s5479_s2 = scalar_lea.vmem %s66_s11, 16  ;;  %s5483_s3 = scalar_lea.vmem %s66_s11, 32 }
  0xb6   :  { %p5480_p11 = scmp.ne.s32.totalorder %s66_s11, %s5479_s2  ;;  %p5484_p12 = scmp.lt.s32.totalorder %s66_s11, %s66_s11 }
  0xb7   :  { %p5485_p13 = scmp.lt.s32.totalorder %s5483_s3, %s5479_s2 }
  0xb9   :  { %p5486_p0 = por %p5485_p13, %p5484_p12 }
  0xbb   :  { %p5487_p1 = pnand %p5486_p0, %p5480_p11 }
  0xbd   :  { %5490 = shalt.err (!%p5487_p1)
}
  0xbe   :  { %68 = dma.hbm_to_vmem [thread:$0]  %s6670_s29, 16, %s66_s11, [#allocation6]  }
  0xbf   :  { %s6671_s21 = sld [smem:[#allocation43_spill]] }
  0xc5   :  { %s5491_s4 = scalar_lea.hbm %s6671_s21, 6144 }
  0xc6   :  { %p5492_p2 = scmp.ne.s32.totalorder %s6671_s21, %s5491_s4  ;;  %p5495_p3 = scmp.lt.u32.totalorder %s5491_s4, %s6671_s21 }
  0xc8   :  { %p5497_p4 = pnand %p5495_p3, %p5492_p2 }
  0xca   :  { %5500 = shalt.err (!%p5497_p4)
}
  0xcb   :  { %s5501_s0 = scalar_lea.vmem %s5961_s9, 6144  ;;  %p5506_p6 = scmp.lt.s32.totalorder %s5961_s9, %s5961_s9 }
  0xcc   :  { %p5502_p5 = scmp.ne.s32.totalorder %s5961_s9, %s5501_s0  ;;  %p5507_p7 = scmp.lt.s32.totalorder %s5501_s0, %s5501_s0 }
  0xce   :  { %p5508_p8 = por %p5507_p7, %p5506_p6 }
  0xd0   :  { %p5509_p9 = pnand %p5508_p8, %p5502_p5 }
  0xd2   :  { %5512 = shalt.err (!%p5509_p9)
}
  0xd3   :  { %s5705_s11 = smov 192   ;;  %s5706_s29 = smov 12  }
  0xd4   :  { %90 = dma.hbm_to_vmem [thread:$0]  %s6671_s21, 6144, %s5961_s9, [#allocation9], %s5705_s11, %s5705_s11, %s5706_s29  }
  0xd5   :  { %s5707_s22 = smov [#allocation13]   ;;  %s5708_s28 = smov [#allocation16]  }
  0xd6   :  { %s108_s13 = sshll.u32 %s5707_s22, 4  ;;  %s136_s23 = sshll.u32 %s5708_s28, 4  ;;  %s109_s13 = int_to_ptr.vmem [resolvable:$true] %s108_s13  ;;  %s5992_s23 = int_to_ptr.vmem [resolvable:$true] %s136_s23 }
  0xd7   :  { %s5513_s25 = scalar_lea.hbm %s6631_s6, 2048 }
  0xd8   :  { %p5514_p10 = scmp.ne.s32.totalorder %s6631_s6, %s5513_s25  ;;  %p5517_p11 = scmp.lt.u32.totalorder %s5513_s25, %s6631_s6 }
  0xda   :  { %p5519_p12 = pnand %p5517_p11, %p5514_p10 }
  0xdc   :  { %5522 = shalt.err (!%p5519_p12)
}
  0xdd   :  { %s5523_s9 = scalar_lea.vmem %s109_s13, 2048  ;;  %p5528_p0 = scmp.lt.s32.totalorder %s109_s13, %s109_s13 }
  0xde   :  { %p5524_p13 = scmp.ne.s32.totalorder %s109_s13, %s5523_s9  ;;  %p5529_p1 = scmp.lt.s32.totalorder %s5523_s9, %s5523_s9 }
  0xe0   :  { %p5530_p2 = por %p5529_p1, %p5528_p0 }
  0xe2   :  { %p5531_p3 = pnand %p5530_p2, %p5524_p13 }
  0xe4   :  { %5534 = shalt.err (!%p5531_p3)
}
  0xe5   :  { %s6672_s21 = smov 64   ;;  %s5535_s27 = scalar_lea.hbm %s6635_s10, 8192 }
  0xe6   :  { %114 = dma.hbm_to_vmem [thread:$0]  %s6631_s6, 2048, %s109_s13, [#allocation12], %s6672_s21, %s6672_s21, %s5700_s24  }
  0xe7   :  { %p5536_p4 = scmp.ne.s32.totalorder %s6635_s10, %s5535_s27  ;;  %p5539_p5 = scmp.lt.u32.totalorder %s5535_s27, %s6635_s10 }
  0xe9   :  { %p5541_p6 = pnand %p5539_p5, %p5536_p4 }
  0xeb   :  { %5544 = shalt.err (!%p5541_p6)
}
  0xec   :  { %s5545_s25 = scalar_lea.vmem %s5992_s23, 8192  ;;  %p5550_p8 = scmp.lt.s32.totalorder %s5992_s23, %s5992_s23 }
  0xed   :  { %p5546_p7 = scmp.ne.s32.totalorder %s5992_s23, %s5545_s25  ;;  %p5551_p9 = scmp.lt.s32.totalorder %s5545_s25, %s5545_s25 }
  0xef   :  { %p5552_p10 = por %p5551_p9, %p5550_p8 }
  0xf1   :  { %p5553_p11 = pnand %p5552_p10, %p5546_p7 }
  0xf3   :  { %5556 = shalt.err (!%p5553_p11)
}
  0xf4   :  { %s5709_s6 = smov 256   ;;  %s6673_s13 = smov 16  }
  0xf5   :  { %142 = dma.hbm_to_vmem [thread:$0]  %s6635_s10, 8192, %s5992_s23, [#allocation15], %s5709_s6, %s5709_s6, %s6673_s13  }
  0xf6   :  { %s5710_s0 = smov [#allocation19]   ;;  %s5711_s11 = smov [#allocation22]  }
  0xf7   :  { %s160_s9 = sshll.u32 %s5710_s0, 4  ;;  %s184_s29 = sshll.u32 %s5711_s11, 4  ;;  %s161_s9 = int_to_ptr.vmem [resolvable:$true] %s160_s9  ;;  %s185_s29 = int_to_ptr.vmem [resolvable:$true] %s184_s29 }
  0xf8   :  { %s5557_s27 = scalar_lea.hbm %s6637_s12, 8192 }
  0xf9   :  { %p5558_p12 = scmp.ne.s32.totalorder %s6637_s12, %s5557_s27  ;;  %p5561_p13 = scmp.lt.u32.totalorder %s5557_s27, %s6637_s12 }
  0xfb   :  { %p5563_p0 = pnand %p5561_p13, %p5558_p12 }
  0xfd   :  { %5566 = shalt.err (!%p5563_p0)
}
  0xfe   :  { %s5567_s10 = scalar_lea.vmem %s161_s9, 8192  ;;  %p5572_p2 = scmp.lt.s32.totalorder %s161_s9, %s161_s9 }
  0xff   :  { %p5568_p1 = scmp.ne.s32.totalorder %s161_s9, %s5567_s10  ;;  %p5573_p3 = scmp.lt.s32.totalorder %s5567_s10, %s5567_s10 }
 0x101   :  { %p5574_p4 = por %p5573_p3, %p5572_p2 }
 0x103   :  { %p5575_p5 = pnand %p5574_p4, %p5568_p1 }
 0x105   :  { %5578 = shalt.err (!%p5575_p5)
}
 0x106   :  { %166 = dma.hbm_to_vmem [thread:$0]  %s6637_s12, 8192, %s161_s9, [#allocation18], %s6672_s21, %s6672_s21, %s5700_s24  }
 0x107   :  { %s5579_s1 = scalar_lea.hbm %s6639_s14, 32 }
 0x108   :  { %p5580_p6 = scmp.ne.s32.totalorder %s6639_s14, %s5579_s1  ;;  %p5583_p7 = scmp.lt.u32.totalorder %s5579_s1, %s6639_s14 }
 0x10a   :  { %p5585_p8 = pnand %p5583_p7, %p5580_p6 }
 0x10c   :  { %5588 = shalt.err (!%p5585_p8)
}
 0x10d   :  { %s5589_s27 = scalar_lea.vmem %s185_s29, 32  ;;  %p5594_p10 = scmp.lt.s32.totalorder %s185_s29, %s185_s29 }
 0x10e   :  { %p5590_p9 = scmp.ne.s32.totalorder %s185_s29, %s5589_s27  ;;  %p5595_p11 = scmp.lt.s32.totalorder %s5589_s27, %s5589_s27 }
 0x110   :  { %p5596_p12 = por %p5595_p11, %p5594_p10 }
 0x112   :  { %p5597_p13 = pnand %p5596_p12, %p5590_p9 }
 0x114   :  { %5600 = shalt.err (!%p5597_p13)
}
 0x115   :  { %s6674_s12 = smov 1   ;;  %s5712_s28 = smov [#allocation25]  }
 0x116   :  { %190 = dma.hbm_to_vmem [thread:$0]  %s6639_s14, 32, %s185_s29, [#allocation21], %s6673_s13, %s6673_s13, %s6674_s12  }
 0x117   :  { %s208_s4 = sshll.u32 %s5712_s28, 4  ;;  %s5713_s5 = smov [#allocation26]   ;;  %s209_s4 = int_to_ptr.vmem [resolvable:$true] %s208_s4 }
 0x118   :  { %s221_s10 = sshll.u32 %s5713_s5, 4  ;;  %s5601_s6 = scalar_lea.hbm %s6641_s16, 1024  ;;  %s222_s10 = int_to_ptr.vmem [resolvable:$true] %s221_s10 }
 0x119   :  { %p5602_p0 = scmp.ne.s32.totalorder %s6641_s16, %s5601_s6  ;;  %p5605_p1 = scmp.lt.u32.totalorder %s5601_s6, %s6641_s16 }
 0x11b   :  { %p5607_p2 = pnand %p5605_p1, %p5602_p0 }
 0x11d   :  { %5610 = shalt.err (!%p5607_p2)
}
 0x11e   :  { %s5611_s14 = scalar_lea.vmem %s209_s4, 1024  ;;  %p5616_p4 = scmp.lt.s32.totalorder %s209_s4, %s209_s4 }
 0x11f   :  { %p5612_p3 = scmp.ne.s32.totalorder %s209_s4, %s5611_s14  ;;  %p5617_p5 = scmp.lt.s32.totalorder %s5611_s14, %s5611_s14 }
 0x121   :  { %p5618_p6 = por %p5617_p5, %p5616_p4 }
 0x123   :  { %p5619_p7 = pnand %p5618_p6, %p5612_p3 }
 0x125   :  { %5622 = shalt.err (!%p5619_p7)
}
 0x126   :  { %214 = dma.hbm_to_vmem [thread:$0]  %s6641_s16, 1024, %s209_s4, [#allocation24], %s6672_s21, %s6672_s21, %s5700_s24  }
 0x127   :  { %s5623_s27 = scalar_lea.hbm %s6642_s17, 16 }
 0x128   :  { %p5624_p8 = scmp.ne.s32.totalorder %s6642_s17, %s5623_s27  ;;  %p5627_p9 = scmp.lt.u32.totalorder %s5623_s27, %s6642_s17 }
 0x12a   :  { %p5629_p10 = pnand %p5627_p9, %p5624_p8 }
 0x12c   :  { %5632 = shalt.err (!%p5629_p10)
}
 0x12d   :  { %s5633_s5 = scalar_lea.vmem %s222_s10, 16  ;;  %s5637_s23 = scalar_lea.vmem %s222_s10, 32 }
 0x12e   :  { %p5634_p11 = scmp.ne.s32.totalorder %s222_s10, %s5633_s5  ;;  %p5638_p12 = scmp.lt.s32.totalorder %s222_s10, %s222_s10 }
 0x12f   :  { %p5639_p13 = scmp.lt.s32.totalorder %s5637_s23, %s5633_s5 }
 0x131   :  { %p5640_p0 = por %p5639_p13, %p5638_p12 }
 0x133   :  { %p5641_p1 = pnand %p5640_p0, %p5634_p11 }
 0x135   :  { %5644 = shalt.err (!%p5641_p1)
}
 0x136   :  { %224 = dma.hbm_to_vmem [thread:$0]  %s6642_s17, 16, %s222_s10, [#allocation27]  }
 0x137   :  { %5667 = dma.done.wait [#allocation3], 256  }
 0x138   :  { %5668 = vsyncadd [#allocation3], 4294967040 }
 0x139   :  { %5669 = dma.done.wait [#allocation6], 272  }
 0x13a   :  { %5670 = vsyncadd [#allocation6], 4294967024 }
 0x13b   :  { %5671 = dma.done.wait [#allocation9], 6160  }
 0x13c   :  { %5672 = vsyncadd [#allocation9], 4294961136 }
 0x13d   :  { %5673 = dma.done.wait [#allocation12], 2144  }
 0x13e   :  { %5674 = vsyncadd [#allocation12], 4294965152 }
 0x13f   :  { %5675 = dma.done.wait [#allocation15], 8224  }
 0x140   :  { %5676 = vsyncadd [#allocation15], 4294959072 }
 0x141   :  { %5677 = dma.done.wait [#allocation18], 8320  }
 0x142   :  { %5678 = vsyncadd [#allocation18], 4294958976 }
 0x143   :  { %5679 = dma.done.wait [#allocation21], 64  }
 0x144   :  { %5680 = vsyncadd [#allocation21], 4294967232 }
 0x145   :  { %5681 = dma.done.wait [#allocation24], 1056  }
 0x146   :  { %5682 = vsyncadd [#allocation24], 4294966240 }
 0x147   :  { %5683 = dma.done.wait [#allocation27], 16  }
 0x148   :  { %5684 = vsyncadd [#allocation27], 4294967280  ;;  %v278_v0 = vld [vmem:[#allocation2] sm:$0xff]  ;;  %v279_v1 = vld [vmem:[#allocation2 + $0x8] sm:$0xff]  ;;  %v5714_v4 = vmov 0.0   ;;  %v5715_v30 = vmov 0   ;;  %v358_v53 = vlaneseq }
 0x149   :  { %282 = vadd.xlane.f32.xlu0 %v278_v0  ;;  %v4915_v2 = vld [vmem:[#allocation10 + $0x4] ss:$12 sps:$4 sm:$0xff]   ;;  %v4917_v3 = vld [vmem:[#allocation10] ss:$12 sps:$4 sm:$0xff]   ;;  %4642 = vmatprep.subr.bf16.mxu1 %v5714_v4  ;;  %v4918_v5 = vld [vmem:[#allocation10 + $0x8] ss:$12 sps:$4 sm:$0xff]  }
 0x14a   :  { %v4919_v6 = vld [vmem:[#allocation10 + $0x1c] ss:$12 sps:$4 sm:$0xff]   ;;  %501 = vmatprep.subr.bf16.mxu0 %v4915_v2  ;;  %4643 = vmatpush3.bf16.msra.mxu1 %v4918_v5  ;;  %v4921_v15 = vld [vmem:[#allocation10 + $0x18] ss:$12 sps:$4 sm:$0xff]   ;;  %v4922_v16 = vld [vmem:[#allocation10 + $0x20] ss:$12 sps:$4 sm:$0xff]  }
 0x14b   :  { %502 = vmatpush1.bf16.msra.mxu0 %v4917_v3  ;;  %4644 = vmatprep.subr.bf16.mxu1 %v5714_v4  ;;  %v4923_v17 = vld [vmem:[#allocation10 + $0x34] ss:$12 sps:$4 sm:$0xff]   ;;  %v4925_v18 = vld [vmem:[#allocation10 + $0x30] ss:$12 sps:$4 sm:$0xff]   ;;  %v4926_v19 = vld [vmem:[#allocation10 + $0x38] ss:$12 sps:$4 sm:$0xff]  }
 0x14c   :  { %503 = vmatprep.subr.bf16.mxu0 %v4919_v6  ;;  %v4927_v20 = vld [vmem:[#allocation10 + $0x4c] ss:$12 sps:$4 sm:$0xff]   ;;  %v4929_v21 = vld [vmem:[#allocation10 + $0x48] ss:$12 sps:$4 sm:$0xff]   ;;  %v4930_v22 = vld [vmem:[#allocation10 + $0x50] ss:$12 sps:$4 sm:$0xff]   ;;  %533 = vmatprep.mubr.bf16.mxu0 %v5715_v30 }
 0x14d   :  { %284 = vadd.xlane.f32.xlu0 %v279_v1  ;;  %v4931_v23 = vld [vmem:[#allocation10 + $0x64] ss:$12 sps:$4 sm:$0xff]   ;;  %v4933_v24 = vld [vmem:[#allocation10 + $0x60] ss:$12 sps:$4 sm:$0xff]   ;;  %v4934_v25 = vld [vmem:[#allocation10 + $0x68] ss:$12 sps:$4 sm:$0xff]  }
 0x14e   :  { %4645 = vmatpush3.bf16.msra.mxu1 %v4922_v16  ;;  %v4935_v26 = vld [vmem:[#allocation10 + $0x7c] ss:$12 sps:$4 sm:$0xff]   ;;  %v4937_v27 = vld [vmem:[#allocation10 + $0x78] ss:$12 sps:$4 sm:$0xff]   ;;  %v4938_v28 = vld [vmem:[#allocation10 + $0x80] ss:$12 sps:$4 sm:$0xff]  }
 0x14f   :  { %504 = vmatpush1.bf16.msra.mxu0 %v4921_v15  ;;  %4646 = vmatprep.subr.bf16.mxu1 %v5714_v4  ;;  %v4939_v29 = vld [vmem:[#allocation10 + $0x94] ss:$12 sps:$4 sm:$0xff]   ;;  %vm5716_vm0 = vmmov 0   ;;  %v4941_v31 = vld [vmem:[#allocation10 + $0x90] ss:$12 sps:$4 sm:$0xff]   ;;  %v6117_v54 = vshrl.u32 %v358_v53, 7 }
 0x150   :  { %505 = vmatprep.subr.bf16.mxu0 %v4923_v17  ;;  %4658 = vmatprep.mubr.msk.bf16.mxu1 %vm5716_vm0, %v5714_v4  ;;  %v4942_v32 = vld [vmem:[#allocation10 + $0x98] ss:$12 sps:$4 sm:$0xff]   ;;  %v4945_v34 = vld [vmem:[#allocation10 + $0xa8] ss:$12 sps:$4 sm:$0xff]   ;;  %v4946_v35 = vld [vmem:[#allocation10 + $0xb0] ss:$12 sps:$4 sm:$0xff]  }
 0x151   :  { %v4943_v33 = vld [vmem:[#allocation10 + $0xac] ss:$12 sps:$4 sm:$0xff]   ;;  %v4212_v44 = vld [vmem:[#allocation7] ss:$0 sm:$0xff]  ;;  %v4213_v48 = vld [vmem:[#allocation8] ss:$0 sm:$0xff] }
 0x152   :  { %4647 = vmatpush3.bf16.msra.mxu1 %v4926_v19  ;;  %v6120_v55 = vsub.s32 0, %v6117_v54  ;;  %v356_v56 = vld [vmem:[#allocation11] sm:$0x7]  ;;  %v6123_v57 = vsub.s32 2, %v6117_v54  ;;  %v6126_v58 = vsub.s32 1, %v6117_v54  ;;  %vm606_vm1 = vcmask 261120  }
 0x153   :  { %506 = vmatpush1.bf16.msra.mxu0 %v4925_v18  ;;  %4648 = vmatprep.subr.bf16.mxu1 %v5714_v4  ;;  %s5717_s17 = smov 96   ;;  %vm654_vm2 = vcmask 130048   ;;  %s5718_s4 = smov 32  }
 0x154   :  { %507 = vmatprep.subr.bf16.mxu0 %v4927_v20  ;;  %v361_v59 = vrot.slane %v356_v56, %v6120_v55  ;;  %v369_v60 = vrot.slane %v356_v56, %v6123_v57  ;;  %v365_v63 = vrot.slane %v356_v56, %v6126_v58 }
 0x156   :  { %4649 = vmatpush3.bf16.msra.mxu1 %v4930_v22  ;;  %v6155_v22 = vld [vmem:[#allocation5] sm:$0xff] }
 0x157   :  { %508 = vmatpush1.bf16.msra.mxu0 %v4929_v21  ;;  %4650 = vmatprep.subr.bf16.mxu1 %v5714_v4 }
 0x158   :  { %509 = vmatprep.subr.bf16.mxu0 %v4931_v23 }
 0x15a   :  { %4651 = vmatpush3.bf16.msra.mxu1 %v4934_v25 }
 0x15b   :  { %510 = vmatpush1.bf16.msra.mxu0 %v4933_v24  ;;  %4652 = vmatprep.subr.bf16.mxu1 %v5714_v4  ;;  %v6157_v24 = vld [vmem:[#allocation5 + $0x8] sm:$0xff] }
 0x15c   :  { %511 = vmatprep.subr.bf16.mxu0 %v4935_v26 }
 0x15e   :  { %4653 = vmatpush3.bf16.msra.mxu1 %v4938_v28 }
 0x15f   :  { %512 = vmatpush1.bf16.msra.mxu0 %v4937_v27  ;;  %4654 = vmatprep.subr.bf16.mxu1 %v5714_v4 }
 0x160   :  { %513 = vmatprep.subr.bf16.mxu0 %v4939_v29 }
 0x162   :  { %4655 = vmatpush3.bf16.msra.mxu1 %v4942_v32 }
 0x163   :  { %514 = vmatpush1.bf16.msra.mxu0 %v4941_v31  ;;  %4656 = vmatprep.subr.bf16.mxu1 %v5714_v4 }
 0x164   :  { %515 = vmatprep.subr.bf16.mxu0 %v4943_v33 }
 0x166   :  { %4657 = vmatpush3.bf16.msra.mxu1 %v4946_v35 }
 0x167   :  { %516 = vmatpush1.bf16.msra.mxu0 %v4945_v34  ;;  %4668 = vmatprep.subr.bf16.mxu1 %v5714_v4 }
 0x168   :  { %4662 = vmatprep.subr.bf16.mxu0 %v5714_v4 }
 0x1d6   :  { %v283_v7 = vpop.xlane.xlu0 %282 }
 0x1d7   :  { %v287_v8 = vmul.f32 0.0078125, %v283_v7 }
 0x1d9   :  { %v6086_v9 = vsub.f32 %v278_v0, %v287_v8 }
 0x1da   :  { %v285_v10 = vpop.xlane.xlu0 %284 }
 0x1db   :  { %v288_v11 = vmul.f32 0.0078125, %v285_v10  ;;  %v291_v12 = vmul.f32 %v6086_v9, %v6086_v9 }
 0x1dd   :  { %v6090_v13 = vsub.f32 %v279_v1, %v288_v11  ;;  %293 = vadd.xlane.f32.xlu1 %v291_v12 }
 0x1df   :  { %v292_v14 = vmul.f32 %v6090_v13, %v6090_v13 }
 0x1e1   :  { %295 = vadd.xlane.f32.xlu1 %v292_v14 }
 0x26a   :  { %v294_v36 = vpop.xlane.xlu1 %293 }
 0x26b   :  { %v297_v37 = vmul.f32 0.0078125, %v294_v36 }
 0x26d   :  { %v299_v38 = vadd.f32 1e-12, %v297_v37 }
 0x26e   :  { %v296_v39 = vpop.xlane.xlu1 %295 }
 0x26f   :  { %5171 = vrsqrt.f32 %v299_v38  ;;  %v298_v40 = vmul.f32 0.0078125, %v296_v39 }
 0x271   :  { %v300_v41 = vadd.f32 1e-12, %v298_v40 }
 0x273   :  { %5173 = vrsqrt.f32 %v300_v41 }
 0x279   :  { %v5172_v42 = vpop.eup %5171 }
 0x27a   :  { %v303_v43 = vmul.f32 %v5172_v42, %v6086_v9 }
 0x27c   :  { %v311_v47 = vmul.f32 %v4212_v44, %v303_v43 }
 0x27d   :  { %v5174_v45 = vpop.eup %5173 }
 0x27e   :  { %v304_v46 = vmul.f32 %v5174_v45, %v6090_v13  ;;  %v6107_v50 = vadd.f32 %v4213_v48, %v311_v47 }
 0x280   :  { %v312_v49 = vmul.f32 %v4212_v44, %v304_v46 }
 0x282   :  { %v6109_v51 = vadd.f32 %v4213_v48, %v312_v49 }
 0x284   :  { %v323_v52 = vpack.c.bf16 %v6109_v51, %v6107_v50 }
 0x286   :  { %534 = vmatmul.mubr.bf16.vlgmr.msra.gmra.mrb[0].mxu0 %v323_v52  ;;  %4659 = vmatmul.mubr.bf16.vlgmr.msra.gmra.mrb[0].mxu1 %v323_v52 }
 0x287   :  { %4664 = vmatprep.mubr.msk.bf16.mxu0 %vm5716_vm0, %v5714_v4  ;;  %4670 = vmatprep.mubr.msk.bf16.mxu1 %vm5716_vm0, %v5714_v4 }
 0x359   :  { %v535_v61 = vpop.f32.mrb[0].mxu0  ;;  %v578_v62 = vpop.f32.mrb[0].mxu1 }
 0x35a   :  { %v536_v0 = vadd.f32 %v535_v61, %v361_v59  ;;  %v537_v1 = vpop.f32.mrb[1].mxu0  ;;  %v4660_v2 = vpop.f32.mrb[1].mxu1  ;;  %v579_v6 = vadd.f32 %v578_v62, %v369_v60 }
 0x35b   :  { %v539_v3 = vpop.f32.mrb[2].mxu0  ;;  %v581_v5 = vpop.f32.mrb[2].mxu1  ;;  %v538_v11 = vadd.f32 %v537_v1, %v365_v63 }
 0x35c   :  { %v540_v7 = vadd.f32 %v539_v3, %v361_v59  ;;  %v582_v8 = vadd.f32 %v581_v5, %v369_v60  ;;  %v541_v9 = vpop.f32.mrb[3].mxu0  ;;  %v4661_v10 = vpop.f32.mrb[3].mxu1  ;;  %v585_v13 = vmul.f32 0.17677669, %v536_v0 }
 0x35d   :  { %v542_v12 = vadd.f32 %v541_v9, %v365_v63 }
 0x35e   :  { %v586_v14 = vmul.f32 0.17677669, %v540_v7  ;;  %v6131_v15 = vpack.c.bf16 %v582_v8, %v579_v6 }
 0x35f   :  { %v6133_v16 = vpack.c.bf16 %v542_v12, %v538_v11  ;;  %v4949_v11 = vld [vmem:[#allocation13 + $0x10] sm:$0xff]   ;;  %v4950_v12 = vld [vmem:[#allocation13 + $0x18] sm:$0xff]  }
 0x360   :  { %v6135_v17 = vpack.c.bf16 %v586_v14, %v585_v13  ;;  %4669 = vmatpush3.bf16.msra.mxu1 %v6131_v15 }
 0x361   :  { %727 = vrot.lane.b32.xlu0 %v6133_v16, %s5717_s17  ;;  %v611_v18 = vsel %vm606_vm1, %v6133_v16, 0  ;;  %4680 = vmatprep.subr.bf16.mxu1 %v5714_v4 }
 0x362   :  { %4663 = vmatpush3.bf16.xpose.msra.mxu0 %v611_v18  ;;  %724 = vrot.lane.b32.xlu1 %v6135_v17, %s5717_s17 }
 0x363   :  { %4674 = vmatprep.subr.bf16.mxu0 %v5714_v4 }
 0x369   :  { %4665 = vmatmul.mubr.msk.bf16.vlgmr.msra.gmra.mrb[4].mxu0 %vm606_vm1, %v6135_v17 }
 0x36a   :  { %4676 = vmatprep.mubr.msk.bf16.mxu0 %vm5716_vm0, %v5714_v4 }
 0x3d3   :  { %v728_v19 = vpop.permute.xlu0 %727 }
 0x3d4   :  { %v733_v20 = vsel %vm606_vm1, %v728_v19, 0  ;;  %v725_v21 = vpop.permute.xlu1 %724 }
 0x3d5   :  { %4675 = vmatpush3.bf16.xpose.msra.mxu0 %v733_v20 }
 0x3d6   :  { %4686 = vmatprep.subr.bf16.mxu0 %v5714_v4 }
 0x3dc   :  { %4677 = vmatmul.mubr.msk.bf16.vlgmr.msra.gmra.mrb[8].mxu0 %vm606_vm1, %v725_v21 }
 0x3dd   :  { %4690 = vmatprep.mubr.msk.bf16.mxu0 %vm5716_vm0, %v5714_v4  ;;  %4687 = vmatpush3.bf16.msra.mxu0 %v4949_v11 }
 0x3de   :  { %4688 = vmatprep.subr.bf16.mxu0 %v5714_v4 }
 0x3e1   :  { %4689 = vmatpush3.bf16.msra.mxu0 %v4950_v12 }
 0x3e2   :  { %4702 = vmatprep.subr.bf16.mxu0 %v5714_v4 }
 0x43c   :  { %v647_v23 = vpop.f32.mrb[4].mxu0 }
 0x43d   :  { %v648_v25 = vadd.f32 %v647_v23, %v6155_v22  ;;  %v4666_v26 = vpop.f32.mrb[5].mxu0 }
 0x43e   :  { %v650_v27 = vpop.f32.mrb[6].mxu0 }
 0x43f   :  { %v651_v28 = vadd.f32 %v650_v27, %v6157_v24  ;;  %v4667_v29 = vpop.f32.mrb[7].mxu0  ;;  %v655_v31 = vsel %vm654_vm2, %v648_v25, -inf  ;;  %v4948_v27 = vld [vmem:[#allocation13 + $0x8] sm:$0xff]  }
 0x440   :  { %656 = vmax.xlane.f32.xlu1 %v655_v31 }
 0x441   :  { %v658_v32 = vsel %vm654_vm2, %v651_v28, -inf }
 0x442   :  { %659 = vmax.xlane.f32.xlu0 %v658_v32 }
 0x4af   :  { %v769_v33 = vpop.f32.mrb[8].mxu0 }
 0x4b0   :  { %v770_v34 = vadd.f32 %v769_v33, %v6155_v22  ;;  %v4678_v35 = vpop.f32.mrb[9].mxu0 }
 0x4b1   :  { %v772_v36 = vpop.f32.mrb[10].mxu0 }
 0x4b2   :  { %v773_v37 = vadd.f32 %v772_v36, %v6157_v24  ;;  %v4679_v38 = vpop.f32.mrb[11].mxu0  ;;  %v776_v39 = vsel %vm654_vm2, %v770_v34, -inf }
 0x4b3   :  { %777 = vmax.xlane.f32.xlu0 %v776_v39 }
 0x4b4   :  { %v779_v40 = vsel %vm654_vm2, %v773_v37, -inf }
 0x4b5   :  { %780 = vmax.xlane.f32.xlu1 %v779_v40 }
 0x4cd   :  { %v657_v41 = vpop.xlane.xlu1 %656 }
 0x4ce   :  { %v661_v42 = vsub.f32 %v648_v25, %v657_v41  ;;  %v4947_v25 = vld [vmem:[#allocation13] sm:$0xff]  }
 0x4cf   :  { %v660_v43 = vpop.xlane.xlu0 %659 }
 0x4d0   :  { %v663_v44 = vmul.f32 1.442695, %v661_v42  ;;  %v662_v45 = vsub.f32 %v651_v28, %v660_v43 }
 0x4d2   :  { %5175 = vpow2.f32 %v663_v44  ;;  %v665_v46 = vmul.f32 1.442695, %v662_v45 }
 0x4d4   :  { %5177 = vpow2.f32 %v665_v46 }
 0x4dc   :  { %v5176_v47 = vpop.eup %5175 }
 0x4dd   :  { %v667_v48 = vsel %vm654_vm2, %v5176_v47, 0.0 }
 0x4de   :  { %v5178_v49 = vpop.eup %5177  ;;  %668 = vadd.xlane.f32.xlu0 %v667_v48 }
 0x4df   :  { %v670_v52 = vsel %vm654_vm2, %v5178_v49, 0.0 }
 0x4e0   :  { %671 = vadd.xlane.f32.xlu1 %v670_v52 }
 0x540   :  { %v778_v53 = vpop.xlane.xlu0 %777 }
 0x541   :  { %v782_v56 = vsub.f32 %v770_v34, %v778_v53 }
 0x542   :  { %v781_v59 = vpop.xlane.xlu1 %780 }
 0x543   :  { %v784_v60 = vmul.f32 1.442695, %v782_v56  ;;  %v783_v61 = vsub.f32 %v773_v37, %v781_v59 }
 0x545   :  { %5179 = vpow2.f32 %v784_v60  ;;  %v786_v62 = vmul.f32 1.442695, %v783_v61 }
 0x547   :  { %5181 = vpow2.f32 %v786_v62 }
 0x54f   :  { %v5180_v63 = vpop.eup %5179 }
 0x550   :  { %v788_v0 = vsel %vm654_vm2, %v5180_v63, 0.0 }
 0x551   :  { %v5182_v1 = vpop.eup %5181  ;;  %789 = vadd.xlane.f32.xlu0 %v788_v0 }
 0x552   :  { %v791_v2 = vsel %vm654_vm2, %v5182_v1, 0.0 }
 0x553   :  { %792 = vadd.xlane.f32.xlu1 %v791_v2 }
 0x564   :  { %962 = vrot.lane.b32.xlu1 %v6133_v16, %s6672_s21 }
 0x567   :  { %800 = vrot.lane.b32.xlu0 %v6131_v15, %s5717_s17 }
 0x568   :  { %960 = vrot.lane.b32.xlu1 %v6135_v17, %s6672_s21 }
 0x56b   :  { %v669_v3 = vpop.xlane.xlu0 %668 }
 0x56c   :  { %5183 = vrcp.f32 %v669_v3 }
 0x56d   :  { %v672_v5 = vpop.xlane.xlu1 %671 }
 0x56e   :  { %5185 = vrcp.f32 %v672_v5 }
 0x576   :  { %v5184_v6 = vpop.eup %5183 }
 0x577   :  { %v675_v8 = vmul.f32 %v5184_v6, %v5176_v47 }
 0x578   :  { %v5186_v7 = vpop.eup %5185 }
 0x579   :  { %v676_v9 = vmul.f32 %v5186_v7, %v5178_v49 }
 0x57b   :  { %v677_v10 = vpack.c.bf16 %v676_v9, %v675_v8 }
 0x57d   :  { %4671 = vmatmul.mubr.msk.bf16.vlgmr.msra.gmra.mrb[4].mxu1 %vm654_vm2, %v677_v10 }
 0x57e   :  { %4682 = vmatprep.mubr.msk.bf16.mxu1 %vm5716_vm0, %v5714_v4 }
 0x5de   :  { %v790_v13 = vpop.xlane.xlu0 %789 }
 0x5df   :  { %5187 = vrcp.f32 %v790_v13 }
 0x5e0   :  { %v793_v14 = vpop.xlane.xlu1 %792 }
 0x5e1   :  { %5189 = vrcp.f32 %v793_v14 }
 0x5e2   :  { %v801_v18 = vpop.permute.xlu0 %800 }
 0x5e3   :  { %4681 = vmatpush3.bf16.msra.mxu1 %v801_v18 }
 0x5e4   :  { %4694 = vmatprep.subr.bf16.mxu1 %v5714_v4  ;;  %v963_v36 = vpop.permute.xlu1 %962 }
 0x5e5   :  { %v968_v40 = vsel %vm606_vm1, %v963_v36, 0 }
 0x5e8   :  { %v961_v41 = vpop.permute.xlu1 %960 }
 0x5e9   :  { %v5188_v19 = vpop.eup %5187 }
 0x5ea   :  { %v796_v21 = vmul.f32 %v5188_v19, %v5180_v63 }
 0x5eb   :  { %v5190_v20 = vpop.eup %5189 }
 0x5ec   :  { %v797_v23 = vmul.f32 %v5190_v20, %v5182_v1 }
 0x5ee   :  { %v798_v26 = vpack.c.bf16 %v797_v23, %v796_v21 }
 0x5f0   :  { %4683 = vmatmul.mubr.msk.bf16.vlgmr.msra.gmra.mrb[8].mxu1 %vm654_vm2, %v798_v26 }
 0x5f1   :  { %4695 = vmatpush3.bf16.msra.mxu1 %v4947_v25  ;;  %4698 = vmatprep.mubr.msk.bf16.mxu1 %vm5716_vm0, %v5714_v4 }
 0x5f2   :  { %4696 = vmatprep.subr.bf16.mxu1 %v5714_v4 }
 0x5f5   :  { %4697 = vmatpush3.bf16.msra.mxu1 %v4948_v27 }
 0x5f6   :  { %4708 = vmatprep.subr.bf16.mxu1 %v5714_v4 }
 0x650   :  { %v715_v28 = vpop.f32.mrb[4].mxu1 }
 0x651   :  { %v4672_v29 = vpop.f32.mrb[5].mxu1 }
 0x652   :  { %v718_v31 = vpop.f32.mrb[6].mxu1 }
 0x653   :  { %v722_v32 = vpack.c.bf16 %v718_v31, %v715_v28  ;;  %v4673_v33 = vpop.f32.mrb[7].mxu1  ;;  %v4952_v28 = vld [vmem:[#allocation13 + $0x28] sm:$0xff]  }
 0x655   :  { %4699 = vmatmul.mubr.msk.bf16.vlgmr.msra.gmra.mrb[12].mxu1 %vm606_vm1, %v722_v32 }
 0x656   :  { %4710 = vmatprep.mubr.msk.bf16.mxu1 %vm5716_vm0, %v5714_v4 }
 0x6c3   :  { %v840_v34 = vpop.f32.mrb[8].mxu1 }
 0x6c4   :  { %v4684_v35 = vpop.f32.mrb[9].mxu1 }
 0x6c5   :  { %v843_v37 = vpop.f32.mrb[10].mxu1 }
 0x6c6   :  { %v847_v38 = vpack.c.bf16 %v843_v37, %v840_v34  ;;  %v4685_v39 = vpop.f32.mrb[11].mxu1 }
 0x6c8   :  { %4691 = vmatmul.mubr.msk.bf16.vlgmr.msra.gmra.mrb[12].mxu0 %vm606_vm1, %v847_v38 }
 0x6c9   :  { %4703 = vmatpush3.bf16.xpose.msra.mxu0 %v968_v40  ;;  %4704 = vmatprep.mubr.msk.bf16.mxu0 %vm5716_vm0, %v5714_v4 }
 0x6ca   :  { %4714 = vmatprep.subr.bf16.mxu0 %v5714_v4 }
 0x6d0   :  { %4705 = vmatmul.mubr.msk.bf16.vlgmr.msra.gmra.mrb[16].mxu0 %vm606_vm1, %v961_v41 }
 0x6d1   :  { %4718 = vmatprep.mubr.msk.bf16.mxu0 %vm5716_vm0, %v5714_v4 }
 0x728   :  { %v953_v42 = vpop.f32.mrb[12].mxu1 }
 0x729   :  { %v4700_v43 = vpop.f32.mrb[13].mxu1 }
 0x72a   :  { %v956_v44 = vpop.f32.mrb[14].mxu1 }
 0x72b   :  { %v4701_v45 = vpop.f32.mrb[15].mxu1 }
 0x79b   :  { %v897_v46 = vpop.f32.mrb[12].mxu0 }
 0x79c   :  { %v6199_v47 = vadd.f32 %v953_v42, %v897_v46  ;;  %v4692_v48 = vpop.f32.mrb[13].mxu0 }
 0x79d   :  { %v900_v49 = vpop.f32.mrb[14].mxu0 }
 0x79e   :  { %v6201_v52 = vadd.f32 %v956_v44, %v900_v49  ;;  %v4693_v53 = vpop.f32.mrb[15].mxu0 }
 0x7a3   :  { %v1004_v56 = vpop.f32.mrb[16].mxu0 }
 0x7a4   :  { %v1005_v59 = vadd.f32 %v1004_v56, %v6155_v22  ;;  %v4706_v60 = vpop.f32.mrb[17].mxu0 }
 0x7a5   :  { %v1007_v61 = vpop.f32.mrb[18].mxu0 }
 0x7a6   :  { %v1008_v62 = vadd.f32 %v1007_v61, %v6157_v24  ;;  %v4707_v63 = vpop.f32.mrb[19].mxu0  ;;  %v1011_v0 = vsel %vm654_vm2, %v1005_v59, -inf }
 0x7a7   :  { %1012 = vmax.xlane.f32.xlu1 %v1011_v0 }
 0x7a8   :  { %v1014_v1 = vsel %vm654_vm2, %v1008_v62, -inf }
 0x7a9   :  { %1015 = vmax.xlane.f32.xlu0 %v1014_v1 }
 0x7b8   :  { %1034 = vrot.lane.b32.xlu1 %v6131_v15, %s6672_s21 }
 0x7bc   :  { %1140 = vrot.lane.b32.xlu1 %v6135_v17, %s5718_s4  ;;  %v4951_v17 = vld [vmem:[#allocation13 + $0x20] sm:$0xff]  }
 0x7bd   :  { %4715 = vmatpush3.bf16.msra.mxu0 %v4951_v17 }
 0x7be   :  { %4716 = vmatprep.subr.bf16.mxu0 %v5714_v4 }
 0x7c1   :  { %4717 = vmatpush3.bf16.msra.mxu0 %v4952_v28  ;;  %v4955_v28 = vld [vmem:[#allocation16] ss:$16 sps:$4 sm:$0xff]  }
 0x7c2   :  { %4728 = vmatprep.subr.bf16.mxu0 %v5714_v4 }
 0x834   :  { %v1013_v2 = vpop.xlane.xlu1 %1012 }
 0x835   :  { %v1017_v3 = vsub.f32 %v1005_v59, %v1013_v2  ;;  %v4953_v59 = vld [vmem:[#allocation13 + $0x30] sm:$0xff]  }
 0x836   :  { %v1016_v5 = vpop.xlane.xlu0 %1015 }
 0x837   :  { %v1019_v6 = vmul.f32 1.442695, %v1017_v3  ;;  %v1018_v7 = vsub.f32 %v1008_v62, %v1016_v5 }
 0x838   :  { %v1035_v8 = vpop.permute.xlu1 %1034 }
 0x839   :  { %5191 = vpow2.f32 %v1019_v6  ;;  %v1021_v9 = vmul.f32 1.442695, %v1018_v7  ;;  %4709 = vmatpush3.bf16.msra.mxu1 %v1035_v8 }
 0x83a   :  { %4722 = vmatprep.subr.bf16.mxu1 %v5714_v4 }
 0x83b   :  { %5193 = vpow2.f32 %v1021_v9 }
 0x843   :  { %v5192_v10 = vpop.eup %5191 }
 0x844   :  { %v1023_v11 = vsel %vm654_vm2, %v5192_v10, 0.0 }
 0x845   :  { %v5194_v12 = vpop.eup %5193  ;;  %1024 = vadd.xlane.f32.xlu0 %v1023_v11 }
 0x846   :  { %v1026_v13 = vsel %vm654_vm2, %v5194_v12, 0.0 }
 0x849   :  { %1027 = vadd.xlane.f32.xlu0 %v1026_v13 }
 0x85f   :  { %1142 = vrot.lane.b32.xlu0 %v6133_v16, %s5718_s4  ;;  %v1141_v16 = vpop.permute.xlu1 %1140 }
 0x8d2   :  { %v1025_v14 = vpop.xlane.xlu0 %1024 }
 0x8d3   :  { %5195 = vrcp.f32 %v1025_v14 }
 0x8d6   :  { %v1028_v18 = vpop.xlane.xlu0 %1027 }
 0x8d7   :  { %5197 = vrcp.f32 %v1028_v18 }
 0x8da   :  { %v1143_v25 = vpop.permute.xlu0 %1142 }
 0x8db   :  { %v1148_v27 = vsel %vm606_vm1, %v1143_v25, 0 }
 0x8dd   :  { %v5196_v19 = vpop.eup %5195 }
 0x8de   :  { %v1031_v21 = vmul.f32 %v5196_v19, %v5192_v10 }
 0x8e1   :  { %v5198_v20 = vpop.eup %5197 }
 0x8e2   :  { %v1032_v23 = vmul.f32 %v5198_v20, %v5194_v12  ;;  %v4258_v20 = vld [vmem:[%s6632_s7] ss:$0 sm:$0xff] }
 0x8e4   :  { %v1033_v26 = vpack.c.bf16 %v1032_v23, %v1031_v21 }
 0x8e6   :  { %4711 = vmatmul.mubr.msk.bf16.vlgmr.msra.gmra.mrb[16].mxu1 %vm654_vm2, %v1033_v26 }
 0x8e7   :  { %4723 = vmatpush3.bf16.xpose.msra.mxu1 %v1148_v27  ;;  %4724 = vmatprep.mubr.msk.bf16.mxu1 %vm5716_vm0, %v5714_v4 }
 0x8e8   :  { %4734 = vmatprep.subr.bf16.mxu1 %v5714_v4 }
 0x8ee   :  { %4725 = vmatmul.mubr.msk.bf16.vlgmr.msra.gmra.mrb[20].mxu1 %vm606_vm1, %v1141_v16 }
 0x8ef   :  { %4738 = vmatprep.mubr.msk.bf16.mxu1 %vm5716_vm0, %v5714_v4  ;;  %4735 = vmatpush3.bf16.msra.mxu1 %v4953_v59  ;;  %v4979_v59 = vld [vmem:[#allocation16 + $0x80] ss:$16 sps:$4 sm:$0xff]  }
 0x8f0   :  { %4736 = vmatprep.subr.bf16.mxu1 %v5714_v4 }
 0x9b9   :  { %v1074_v29 = vpop.f32.mrb[16].mxu1 }
 0x9ba   :  { %v4712_v31 = vpop.f32.mrb[17].mxu1 }
 0x9bb   :  { %v1077_v32 = vpop.f32.mrb[18].mxu1  ;;  %v4958_v31 = vld [vmem:[#allocation16 + $0x8] ss:$16 sps:$4 sm:$0xff]  }
 0x9bc   :  { %v1081_v33 = vpack.c.bf16 %v1077_v32, %v1074_v29  ;;  %v4713_v34 = vpop.f32.mrb[19].mxu1  ;;  %v4957_v29 = vld [vmem:[#allocation16 + $0x4] ss:$16 sps:$4 sm:$0xff]   ;;  %v4960_v32 = vld [vmem:[#allocation16 + $0xc] ss:$16 sps:$4 sm:$0xff]  }
 0x9bd   :  { %v4966_v34 = vld [vmem:[#allocation16 + $0x2c] ss:$16 sps:$4 sm:$0xff]  }
 0x9be   :  { %4719 = vmatmul.mubr.msk.bf16.vlgmr.msra.gmra.mrb[20].mxu0 %vm606_vm1, %v1081_v33  ;;  %v4963_v33 = vld [vmem:[#allocation16 + $0x24] ss:$16 sps:$4 sm:$0xff]  }
 0x9bf   :  { %4730 = vmatprep.mubr.msk.bf16.mxu0 %vm5716_vm0, %v5714_v4 }
 0x9c1   :  { %v1184_v35 = vpop.f32.mrb[20].mxu1 }
 0x9c2   :  { %v1185_v36 = vadd.f32 %v1184_v35, %v6155_v22  ;;  %v4726_v37 = vpop.f32.mrb[21].mxu1  ;;  %v4961_v35 = vld [vmem:[#allocation16 + $0x20] ss:$16 sps:$4 sm:$0xff]  }
 0x9c3   :  { %v1187_v38 = vpop.f32.mrb[22].mxu1 }
 0x9c4   :  { %v1188_v39 = vadd.f32 %v1187_v38, %v6157_v24  ;;  %v4727_v40 = vpop.f32.mrb[23].mxu1  ;;  %v1191_v41 = vsel %vm654_vm2, %v1185_v36, -inf }
 0x9c5   :  { %1192 = vmax.xlane.f32.xlu1 %v1191_v41 }
 0x9c6   :  { %v1194_v42 = vsel %vm654_vm2, %v1188_v39, -inf }
 0x9c7   :  { %1195 = vmax.xlane.f32.xlu0 %v1194_v42 }
 0xa52   :  { %v1193_v43 = vpop.xlane.xlu1 %1192 }
 0xa53   :  { %v1197_v44 = vsub.f32 %v1185_v36, %v1193_v43  ;;  %v4969_v43 = vld [vmem:[#allocation16 + $0x44] ss:$16 sps:$4 sm:$0xff]  }
 0xa54   :  { %v1196_v45 = vpop.xlane.xlu0 %1195 }
 0xa55   :  { %v1199_v46 = vmul.f32 1.442695, %v1197_v44  ;;  %v1198_v48 = vsub.f32 %v1188_v39, %v1196_v45  ;;  %v4972_v44 = vld [vmem:[#allocation16 + $0x4c] ss:$16 sps:$4 sm:$0xff]   ;;  %v4967_v45 = vld [vmem:[#allocation16 + $0x40] ss:$16 sps:$4 sm:$0xff]  }
 0xa57   :  { %5199 = vpow2.f32 %v1199_v46  ;;  %v1201_v49 = vmul.f32 1.442695, %v1198_v48  ;;  %v4970_v46 = vld [vmem:[#allocation16 + $0x48] ss:$16 sps:$4 sm:$0xff]   ;;  %v4975_v48 = vld [vmem:[#allocation16 + $0x64] ss:$16 sps:$4 sm:$0xff]  }
 0xa59   :  { %5201 = vpow2.f32 %v1201_v49  ;;  %v4978_v49 = vld [vmem:[#allocation16 + $0x6c] ss:$16 sps:$4 sm:$0xff]  }
 0xa61   :  { %v5200_v22 = vpop.eup %5199 }
 0xa62   :  { %v1203_v53 = vsel %vm654_vm2, %v5200_v22, 0.0 }
 0xa63   :  { %v5202_v56 = vpop.eup %5201  ;;  %1204 = vadd.xlane.f32.xlu0 %v1203_v53  ;;  %v4976_v53 = vld [vmem:[#allocation16 + $0x68] ss:$16 sps:$4 sm:$0xff]  }
 0xa64   :  { %v1206_v24 = vsel %vm654_vm2, %v5202_v56, 0.0 }
 0xa65   :  { %1207 = vadd.xlane.f32.xlu1 %v1206_v24  ;;  %v4984_v24 = vld [vmem:[#allocation16 + $0x8c] ss:$16 sps:$4 sm:$0xff]  }
 0xa79   :  { %1214 = vrot.lane.b32.xlu0 %v6131_v15, %s5718_s4 }
 0xa91   :  { %v1131_v60 = vpop.f32.mrb[20].mxu0 }
 0xa92   :  { %v1138_v61 = vadd.f32 %v1131_v60, %v6199_v47  ;;  %v4720_v62 = vpop.f32.mrb[21].mxu0  ;;  %v4954_v47 = vld [vmem:[#allocation13 + $0x38] sm:$0xff]  }
 0xa93   :  { %v1134_v63 = vpop.f32.mrb[22].mxu0  ;;  %4737 = vmatpush3.bf16.msra.mxu1 %v4954_v47  ;;  %v4982_v60 = vld [vmem:[#allocation16 + $0x88] ss:$16 sps:$4 sm:$0xff]   ;;  %v4990_v62 = vld [vmem:[#allocation16 + $0xac] ss:$16 sps:$4 sm:$0xff]  }
 0xa94   :  { %v1139_v0 = vadd.f32 %v1134_v63, %v6201_v52  ;;  %v4721_v1 = vpop.f32.mrb[23].mxu0  ;;  %1629 = vmatprep.subr.bf16.mxu1 %v4960_v32  ;;  %v4985_v63 = vld [vmem:[#allocation16 + $0xa0] ss:$16 sps:$4 sm:$0xff]  }
 0xa95   :  { %v4993_v1 = vld [vmem:[#allocation16 + $0xc4] ss:$16 sps:$4 sm:$0xff]  }
 0xa96   :  { %v5007_v32 = vld [vmem:[#allocation19 + $0x48] sm:$0xff]  }
 0xaf0   :  { %v1205_v2 = vpop.xlane.xlu0 %1204 }
 0xaf1   :  { %5203 = vrcp.f32 %v1205_v2  ;;  %v4996_v2 = vld [vmem:[#allocation16 + $0xcc] ss:$16 sps:$4 sm:$0xff]  }
 0xaf2   :  { %v1208_v3 = vpop.xlane.xlu1 %1207 }
 0xaf3   :  { %5205 = vrcp.f32 %v1208_v3  ;;  %v4991_v3 = vld [vmem:[#allocation16 + $0xc0] ss:$16 sps:$4 sm:$0xff]  }
 0xaf4   :  { %v1215_v5 = vpop.permute.xlu0 %1214 }
 0xaf5   :  { %4729 = vmatpush3.bf16.msra.mxu0 %v1215_v5  ;;  %v4994_v5 = vld [vmem:[#allocation16 + $0xc8] ss:$16 sps:$4 sm:$0xff]  }
 0xaf6   :  { %1586 = vmatprep.subr.bf16.mxu0 %v4957_v29  ;;  %v5005_v29 = vld [vmem:[#allocation19] sm:$0xff]  }
 0xafb   :  { %v5204_v6 = vpop.eup %5203 }
 0xafc   :  { %v1211_v7 = vmul.f32 %v5204_v6, %v5200_v22  ;;  %v4973_v22 = vld [vmem:[#allocation16 + $0x60] ss:$16 sps:$4 sm:$0xff]   ;;  %v4999_v6 = vld [vmem:[#allocation16 + $0xe4] ss:$16 sps:$4 sm:$0xff]  }
 0xafd   :  { %v5206_v15 = vpop.eup %5205 }
 0xafe   :  { %v1212_v8 = vmul.f32 %v5206_v15, %v5202_v56  ;;  %v4981_v56 = vld [vmem:[#allocation16 + $0x84] ss:$16 sps:$4 sm:$0xff]   ;;  %v5002_v15 = vld [vmem:[#allocation16 + $0xec] ss:$16 sps:$4 sm:$0xff]  }
 0xb00   :  { %v1213_v9 = vpack.c.bf16 %v1212_v8, %v1211_v7  ;;  %v4997_v7 = vld [vmem:[#allocation16 + $0xe0] ss:$16 sps:$4 sm:$0xff]   ;;  %v5000_v8 = vld [vmem:[#allocation16 + $0xe8] ss:$16 sps:$4 sm:$0xff]  }
 0xb02   :  { %4731 = vmatmul.mubr.msk.bf16.vlgmr.msra.gmra.mrb[24].mxu0 %vm654_vm2, %v1213_v9 }
 0xb03   :  { %1618 = vmatprep.mubr.bf16.mxu0 %v5715_v30  ;;  %1587 = vmatpush1.bf16.msra.mxu0 %v4955_v28  ;;  %v5004_v28 = vld [vmem:[#allocation19 + $0xc0] sm:$0xff]  }
 0xb04   :  { %1588 = vmatprep.subr.bf16.mxu0 %v4963_v33  ;;  %v5008_v33 = vld [vmem:[#allocation19 + $0xc8] sm:$0xff]  }
 0xb07   :  { %1589 = vmatpush1.bf16.msra.mxu0 %v4961_v35  ;;  %v5010_v35 = vld [vmem:[#allocation19 + $0x88] sm:$0xff]  }
 0xb08   :  { %1590 = vmatprep.subr.bf16.mxu0 %v4969_v43  ;;  %v5020_v43 = vld [vmem:[#allocation19 + $0xe0] sm:$0xff]  }
 0xb0b   :  { %1591 = vmatpush1.bf16.msra.mxu0 %v4967_v45  ;;  %v5022_v45 = vld [vmem:[#allocation19 + $0xa0] sm:$0xff]  }
 0xb0c   :  { %1592 = vmatprep.subr.bf16.mxu0 %v4975_v48  ;;  %v5024_v48 = vld [vmem:[#allocation19 + $0xe8] sm:$0xff]  }
 0xb0f   :  { %1593 = vmatpush1.bf16.msra.mxu0 %v4973_v22  ;;  %v5026_v22 = vld [vmem:[#allocation19 + $0xa8] sm:$0xff]  }
 0xb10   :  { %1594 = vmatprep.subr.bf16.mxu0 %v4981_v56  ;;  %v5028_v56 = vld [vmem:[#allocation19 + $0xf0] sm:$0xff]  }
 0xb13   :  { %1595 = vmatpush1.bf16.msra.mxu0 %v4979_v59  ;;  %v5030_v59 = vld [vmem:[#allocation19 + $0xb0] sm:$0xff]  }
 0xbd5   :  { %v1254_v10 = vpop.f32.mrb[24].mxu0 }
 0xbd6   :  { %v4732_v52 = vpop.f32.mrb[25].mxu0 }
 0xbd7   :  { %v1257_v11 = vpop.f32.mrb[26].mxu0 }
 0xbd8   :  { %v1261_v12 = vpack.c.bf16 %v1257_v11, %v1254_v10  ;;  %v4733_v13 = vpop.f32.mrb[27].mxu0 }
 0xbda   :  { %4739 = vmatmul.mubr.msk.bf16.vlgmr.msra.gmra.mrb[24].mxu1 %vm606_vm1, %v1261_v12 }
 0xbdb   :  { %1661 = vmatprep.mubr.bf16.mxu1 %v5715_v30  ;;  %1630 = vmatpush1.bf16.msra.mxu1 %v4958_v31  ;;  %v5006_v31 = vld [vmem:[#allocation19 + $0x80] sm:$0xff]  }
 0xbdc   :  { %1631 = vmatprep.subr.bf16.mxu1 %v4966_v34  ;;  %v5009_v34 = vld [vmem:[#allocation19 + $0x8] sm:$0xff]  }
 0xcad   :  { %v1311_v17 = vpop.f32.mrb[24].mxu1 }
 0xcae   :  { %v1318_v14 = vadd.f32 %v1311_v17, %v1138_v61  ;;  %v4740_v18 = vpop.f32.mrb[25].mxu1  ;;  %v4987_v61 = vld [vmem:[#allocation16 + $0xa4] ss:$16 sps:$4 sm:$0xff]  }
 0xcaf   :  { %v1314_v19 = vpop.f32.mrb[26].mxu1  ;;  %1596 = vmatprep.subr.bf16.mxu0 %v4987_v61  ;;  %v5032_v61 = vld [vmem:[#allocation19 + $0xf8] sm:$0xff]  }
 0xcb0   :  { %v1320_v21 = vadd.f32 %v1318_v14, %v6107_v50  ;;  %v1319_v23 = vadd.f32 %v1314_v19, %v1139_v0  ;;  %v4741_v25 = vpop.f32.mrb[27].mxu1  ;;  %v4964_v50 = vld [vmem:[#allocation16 + $0x28] ss:$16 sps:$4 sm:$0xff]   ;;  %1597 = vmatpush1.bf16.msra.mxu0 %v4985_v63  ;;  %v4259_v14 = vld [vmem:[%s6633_s8] ss:$0 sm:$0xff]  ;;  %v5034_v63 = vld [vmem:[#allocation19 + $0xb8] sm:$0xff]  }
 0xcb1   :  { %1632 = vmatpush1.bf16.msra.mxu1 %v4964_v50  ;;  %v4988_v0 = vld [vmem:[#allocation16 + $0xa8] ss:$16 sps:$4 sm:$0xff]   ;;  %1598 = vmatprep.subr.bf16.mxu0 %v4993_v1  ;;  %v1420_v1 = vsub.s32 3, %v6117_v54 }
 0xcb2   :  { %v1321_v26 = vadd.f32 %v1319_v23, %v6109_v51  ;;  %v1329_v27 = vadd.f32 %v4258_v20, %v1320_v21  ;;  %1633 = vmatprep.subr.bf16.mxu1 %v4972_v44  ;;  %v4260_v21 = vld [vmem:[#allocation14] ss:$0 sm:$0xff]  ;;  %v5021_v44 = vld [vmem:[#allocation19 + $0x20] sm:$0xff]  }
 0xcb3   :  { %v5011_v50 = vld [vmem:[#allocation19 + $0x50] sm:$0xff]  }
 0xcb4   :  { %1333 = vadd.xlane.f32.xlu1 %v1329_v27  ;;  %v1330_v16 = vadd.f32 %v4258_v20, %v1321_v26  ;;  %1599 = vmatpush1.bf16.msra.mxu0 %v4991_v3 }
 0xcb5   :  { %1634 = vmatpush1.bf16.msra.mxu1 %v4970_v46  ;;  %1600 = vmatprep.subr.bf16.mxu0 %v4999_v6  ;;  %v5023_v46 = vld [vmem:[#allocation19 + $0x68] sm:$0xff]  }
 0xcb6   :  { %1635 = vmatprep.subr.bf16.mxu1 %v4978_v49  ;;  %v5025_v49 = vld [vmem:[#allocation19 + $0x28] sm:$0xff]  }
 0xcb8   :  { %1335 = vadd.xlane.f32.xlu1 %v1330_v16  ;;  %1601 = vmatpush1.bf16.msra.mxu0 %v4997_v7 }
 0xcb9   :  { %1636 = vmatpush1.bf16.msra.mxu1 %v4976_v53  ;;  %v5027_v53 = vld [vmem:[#allocation19 + $0x70] sm:$0xff]  }
 0xcba   :  { %1637 = vmatprep.subr.bf16.mxu1 %v4984_v24  ;;  %v5029_v24 = vld [vmem:[#allocation19 + $0x30] sm:$0xff]  }
 0xcbd   :  { %1638 = vmatpush1.bf16.msra.mxu1 %v4982_v60  ;;  %v5031_v60 = vld [vmem:[#allocation19 + $0x78] sm:$0xff]  }
 0xcbe   :  { %1639 = vmatprep.subr.bf16.mxu1 %v4990_v62  ;;  %v5033_v62 = vld [vmem:[#allocation19 + $0x38] sm:$0xff]  }
 0xcc1   :  { %1640 = vmatpush1.bf16.msra.mxu1 %v4988_v0  ;;  %v1404_v0 = vld [vmem:[#allocation17] sm:$0xf] }
 0xcc2   :  { %1641 = vmatprep.subr.bf16.mxu1 %v4996_v2  ;;  %v1409_v2 = vrot.slane %v1404_v0, %v6120_v55  ;;  %v1417_v3 = vrot.slane %v1404_v0, %v6123_v57  ;;  %v1421_v6 = vrot.slane %v1404_v0, %v1420_v1 }
 0xcc5   :  { %1642 = vmatpush1.bf16.msra.mxu1 %v4994_v5  ;;  %v1413_v5 = vrot.slane %v1404_v0, %v6126_v58 }
 0xcc6   :  { %1643 = vmatprep.subr.bf16.mxu1 %v5002_v15 }
 0xcc9   :  { %1644 = vmatpush1.bf16.msra.mxu1 %v5000_v8 }
 0xcca   :  { %4521 = vmatprep.subr.bf16.mxu1 %v5004_v28 }
 0xd41   :  { %v1334_v51 = vpop.xlane.xlu1 %1333 }
 0xd42   :  { %v1337_v36 = vmul.f32 0.0078125, %v1334_v51  ;;  %v5012_v51 = vld [vmem:[#allocation19 + $0xd0] sm:$0xff]  }
 0xd44   :  { %v6249_v37 = vsub.f32 %v1329_v27, %v1337_v36  ;;  %v5013_v36 = vld [vmem:[#allocation19 + $0x10] sm:$0xff]  }
 0xd45   :  { %v1336_v38 = vpop.xlane.xlu1 %1335 }
 0xd46   :  { %v1338_v39 = vmul.f32 0.0078125, %v1336_v38  ;;  %v1341_v40 = vmul.f32 %v6249_v37, %v6249_v37  ;;  %v5015_v38 = vld [vmem:[#allocation19 + $0x58] sm:$0xff]  }
 0xd48   :  { %v6253_v41 = vsub.f32 %v1330_v16, %v1338_v39  ;;  %1343 = vadd.xlane.f32.xlu1 %v1341_v40  ;;  %v5003_v16 = vld [vmem:[#allocation19 + $0x40] sm:$0xff]   ;;  %v5016_v39 = vld [vmem:[#allocation19 + $0xd8] sm:$0xff]  }
 0xd49   :  { %4499 = vmatprep.subr.bf16.mxu0 %v5003_v16  ;;  %v5017_v40 = vld [vmem:[#allocation19 + $0x18] sm:$0xff]  }
 0xd4a   :  { %v1342_v42 = vmul.f32 %v6253_v41, %v6253_v41 }
 0xd4c   :  { %1345 = vadd.xlane.f32.xlu1 %v1342_v42  ;;  %v5019_v42 = vld [vmem:[#allocation19 + $0x60] sm:$0xff]  }
 0xdd5   :  { %v1344_v9 = vpop.xlane.xlu1 %1343 }
 0xdd6   :  { %v1347_v47 = vmul.f32 0.0078125, %v1344_v9 }
 0xdd8   :  { %v1349_v10 = vadd.f32 1e-12, %v1347_v47 }
 0xdd9   :  { %v1346_v52 = vpop.xlane.xlu1 %1345 }
 0xdda   :  { %5207 = vrsqrt.f32 %v1349_v10  ;;  %v1348_v11 = vmul.f32 0.0078125, %v1346_v52 }
 0xddc   :  { %v1350_v12 = vadd.f32 1e-12, %v1348_v11 }
 0xdde   :  { %5209 = vrsqrt.f32 %v1350_v12 }
 0xde4   :  { %v5208_v13 = vpop.eup %5207 }
 0xde5   :  { %v1353_v17 = vmul.f32 %v5208_v13, %v6249_v37  ;;  %v5014_v37 = vld [vmem:[#allocation19 + $0x90] sm:$0xff]  }
 0xde7   :  { %v1361_v20 = vmul.f32 %v4259_v14, %v1353_v17 }
 0xde8   :  { %v5210_v18 = vpop.eup %5209 }
 0xde9   :  { %v1354_v19 = vmul.f32 %v5210_v18, %v6253_v41  ;;  %v6262_v25 = vadd.f32 %v4260_v21, %v1361_v20  ;;  %v5018_v41 = vld [vmem:[#allocation19 + $0x98] sm:$0xff]  }
 0xdeb   :  { %v1362_v23 = vmul.f32 %v4259_v14, %v1354_v19 }
 0xded   :  { %v6264_v26 = vadd.f32 %v4260_v21, %v1362_v23 }
 0xdef   :  { %v1371_v27 = vpack.c.bf16 %v6264_v26, %v6262_v25 }
 0xdf1   :  { %1619 = vmatmul.mubr.bf16.vlgmr.msra.gmra.mrb[28].mxu0 %v1371_v27  ;;  %1662 = vmatmul.mubr.bf16.vlgmr.msra.gmra.mrb[28].mxu1 %v1371_v27 }
 0xdf2   :  { %4500 = vmatpush3.bf16.msra.mxu0 %v5005_v29  ;;  %4522 = vmatpush3.bf16.msra.mxu1 %v5006_v31 }
 0xdf3   :  { %4501 = vmatprep.subr.bf16.mxu0 %v5007_v32  ;;  %4523 = vmatprep.subr.bf16.mxu1 %v5008_v33 }
 0xdf6   :  { %4502 = vmatpush3.bf16.msra.mxu0 %v5009_v34  ;;  %4524 = vmatpush3.bf16.msra.mxu1 %v5010_v35 }
 0xdf7   :  { %4503 = vmatprep.subr.bf16.mxu0 %v5011_v50  ;;  %4525 = vmatprep.subr.bf16.mxu1 %v5012_v51 }
 0xdfa   :  { %4504 = vmatpush3.bf16.msra.mxu0 %v5013_v36  ;;  %4526 = vmatpush3.bf16.msra.mxu1 %v5014_v37 }
 0xdfb   :  { %4505 = vmatprep.subr.bf16.mxu0 %v5015_v38  ;;  %4527 = vmatprep.subr.bf16.mxu1 %v5016_v39 }
 0xdfe   :  { %4506 = vmatpush3.bf16.msra.mxu0 %v5017_v40  ;;  %4528 = vmatpush3.bf16.msra.mxu1 %v5018_v41 }
 0xdff   :  { %4507 = vmatprep.subr.bf16.mxu0 %v5019_v42  ;;  %4529 = vmatprep.subr.bf16.mxu1 %v5020_v43 }
 0xe02   :  { %4508 = vmatpush3.bf16.msra.mxu0 %v5021_v44  ;;  %4530 = vmatpush3.bf16.msra.mxu1 %v5022_v45 }
 0xe03   :  { %4509 = vmatprep.subr.bf16.mxu0 %v5023_v46  ;;  %4531 = vmatprep.subr.bf16.mxu1 %v5024_v48 }
 0xe06   :  { %4510 = vmatpush3.bf16.msra.mxu0 %v5025_v49  ;;  %4532 = vmatpush3.bf16.msra.mxu1 %v5026_v22 }
 0xe07   :  { %4511 = vmatprep.subr.bf16.mxu0 %v5027_v53  ;;  %4533 = vmatprep.subr.bf16.mxu1 %v5028_v56 }
 0xe0a   :  { %4512 = vmatpush3.bf16.msra.mxu0 %v5029_v24  ;;  %4534 = vmatpush3.bf16.msra.mxu1 %v5030_v59 }
 0xe0b   :  { %4513 = vmatprep.subr.bf16.mxu0 %v5031_v60  ;;  %4535 = vmatprep.subr.bf16.mxu1 %v5032_v61 }
 0xe0e   :  { %4514 = vmatpush3.bf16.msra.mxu0 %v5033_v62  ;;  %4536 = vmatpush3.bf16.msra.mxu1 %v5034_v63 }
 0xe0f   :  { %4742 = vmatprep.subr.bf16.mxu1 %v5714_v4 }
 0xec4   :  { %v1620_v15 = vpop.f32.mrb[28].mxu0  ;;  %v1663_v7 = vpop.f32.mrb[28].mxu1 }
 0xec5   :  { %v6275_v8 = vadd.f32 %v1620_v15, %v1409_v2  ;;  %v6277_v9 = vadd.f32 %v1663_v7, %v1417_v3  ;;  %v1622_v47 = vpop.f32.mrb[29].mxu0  ;;  %v1665_v10 = vpop.f32.mrb[29].mxu1 }
 0xec6   :  { %v6279_v52 = vadd.f32 %v1622_v47, %v1413_v5  ;;  %v6281_v11 = vadd.f32 %v1665_v10, %v1421_v6  ;;  %v1624_v12 = vpop.f32.mrb[30].mxu0  ;;  %v1667_v13 = vpop.f32.mrb[30].mxu1 }
 0xec7   :  { %v1672_v17 = vmul.f32 %v6275_v8, %v6275_v8  ;;  %v1674_v14 = vmul.f32 %v6277_v9, %v6277_v9  ;;  %v6287_v18 = vadd.f32 %v1624_v12, %v1409_v2  ;;  %v6289_v19 = vadd.f32 %v1667_v13, %v1417_v3  ;;  %v1626_v20 = vpop.f32.mrb[31].mxu0  ;;  %v1669_v21 = vpop.f32.mrb[31].mxu1 }
 0xec8   :  { %v1673_v23 = vmul.f32 %v6279_v52, %v6279_v52  ;;  %v1675_v27 = vmul.f32 %v6281_v11, %v6281_v11  ;;  %v6295_v16 = vadd.f32 %v1626_v20, %v1413_v5  ;;  %v6297_v28 = vadd.f32 %v1669_v21, %v1421_v6 }
 0xec9   :  { %v1680_v29 = vmul.f32 %v1672_v17, %v6275_v8  ;;  %v1682_v31 = vmul.f32 %v1674_v14, %v6277_v9  ;;  %v1676_v32 = vmul.f32 %v6287_v18, %v6287_v18  ;;  %v1678_v33 = vmul.f32 %v6289_v19, %v6289_v19 }
 0xeca   :  { %v1681_v34 = vmul.f32 %v1673_v23, %v6279_v52  ;;  %v1683_v35 = vmul.f32 %v1675_v27, %v6281_v11  ;;  %v1677_v50 = vmul.f32 %v6295_v16, %v6295_v16  ;;  %v1679_v51 = vmul.f32 %v6297_v28, %v6297_v28 }
 0xecb   :  { %v1688_v36 = vmul.f32 0.044715, %v1680_v29  ;;  %v1690_v37 = vmul.f32 0.044715, %v1682_v31  ;;  %v1684_v38 = vmul.f32 %v1676_v32, %v6287_v18  ;;  %v1686_v39 = vmul.f32 %v1678_v33, %v6289_v19 }
 0xecc   :  { %v1689_v40 = vmul.f32 0.044715, %v1681_v34  ;;  %v1691_v41 = vmul.f32 0.044715, %v1683_v35  ;;  %v1685_v42 = vmul.f32 %v1677_v50, %v6295_v16  ;;  %v1687_v43 = vmul.f32 %v1679_v51, %v6297_v28 }
 0xecd   :  { %v1696_v44 = vadd.f32 %v1688_v36, %v6275_v8  ;;  %v1698_v45 = vadd.f32 %v1690_v37, %v6277_v9  ;;  %v1692_v46 = vmul.f32 0.044715, %v1684_v38  ;;  %v1694_v48 = vmul.f32 0.044715, %v1686_v39 }
 0xece   :  { %v1697_v49 = vadd.f32 %v1689_v40, %v6279_v52  ;;  %v1699_v22 = vadd.f32 %v1691_v41, %v6281_v11  ;;  %v1693_v53 = vmul.f32 0.044715, %v1685_v42  ;;  %v1695_v56 = vmul.f32 0.044715, %v1687_v43 }
 0xecf   :  { %v1704_v24 = vmul.f32 0.7978846, %v1696_v44  ;;  %v1706_v59 = vmul.f32 0.7978846, %v1698_v45  ;;  %v1700_v60 = vadd.f32 %v1692_v46, %v6287_v18  ;;  %v1702_v61 = vadd.f32 %v1694_v48, %v6289_v19 }
 0xed0   :  { %v1705_v62 = vmul.f32 0.7978846, %v1697_v49  ;;  %v1707_v63 = vmul.f32 0.7978846, %v1699_v22  ;;  %v1701_v0 = vadd.f32 %v1693_v53, %v6295_v16  ;;  %v1703_v2 = vadd.f32 %v1695_v56, %v6297_v28 }
 0xed1   :  { %5211 = vtanh.f32 %v1704_v24  ;;  %v1708_v3 = vmul.f32 0.7978846, %v1700_v60  ;;  %v1710_v5 = vmul.f32 0.7978846, %v1702_v61 }
 0xed2   :  { %5213 = vtanh.f32 %v1706_v59  ;;  %v1709_v6 = vmul.f32 0.7978846, %v1701_v0  ;;  %v1711_v15 = vmul.f32 0.7978846, %v1703_v2 }
 0xed3   :  { %5215 = vtanh.f32 %v1705_v62 }
 0xed4   :  { %5217 = vtanh.f32 %v1707_v63 }
 0xed5   :  { %5219 = vtanh.f32 %v1708_v3 }
 0xed6   :  { %5221 = vtanh.f32 %v1710_v5 }
 0xed7   :  { %5223 = vtanh.f32 %v1709_v6 }
 0xed8   :  { %5225 = vtanh.f32 %v1711_v15 }
 0xedb   :  { %v5212_v7 = vpop.eup %5211 }
 0xedc   :  { %v5214_v47 = vpop.eup %5213  ;;  %v1720_v10 = vadd.f32 1.0, %v5212_v7  ;;  %v5035_v7 = vld [vmem:[#allocation10 + $0xc0] ss:$12 sps:$4 sm:$0xff]  }
 0xedd   :  { %v5216_v12 = vpop.eup %5215  ;;  %v1722_v13 = vadd.f32 1.0, %v5214_v47  ;;  %v5037_v47 = vld [vmem:[#allocation10 + $0xc4] ss:$12 sps:$4 sm:$0xff]  }
 0xede   :  { %v5218_v17 = vpop.eup %5217  ;;  %v1721_v14 = vadd.f32 1.0, %v5216_v12  ;;  %v1728_v27 = vmul.f32 0.5, %v1720_v10  ;;  %v5038_v10 = vld [vmem:[#allocation10 + $0xc8] ss:$12 sps:$4 sm:$0xff]   ;;  %2315 = vmatprep.subr.bf16.mxu0 %v5037_v47 }
 0xedf   :  { %v5220_v20 = vpop.eup %5219  ;;  %v1723_v21 = vadd.f32 1.0, %v5218_v17  ;;  %v1730_v32 = vmul.f32 0.5, %v1722_v13  ;;  %v5041_v12 = vld [vmem:[#allocation10 + $0xdc] ss:$12 sps:$4 sm:$0xff]   ;;  %v5039_v13 = vld [vmem:[#allocation10 + $0xd8] ss:$12 sps:$4 sm:$0xff]  }
 0xee0   :  { %v5222_v23 = vpop.eup %5221  ;;  %v1724_v29 = vadd.f32 1.0, %v5220_v20  ;;  %v1729_v51 = vmul.f32 0.5, %v1721_v14  ;;  %v1736_v39 = vmul.f32 %v1728_v27, %v6275_v8 }
 0xee1   :  { %v5224_v31 = vpop.eup %5223  ;;  %v1726_v33 = vadd.f32 1.0, %v5222_v23  ;;  %v1731_v38 = vmul.f32 0.5, %v1723_v21  ;;  %v1738_v42 = vmul.f32 %v1730_v32, %v6277_v9  ;;  %v5043_v32 = vld [vmem:[#allocation10 + $0xf0] ss:$12 sps:$4 sm:$0xff]  }
 0xee2   :  { %v5226_v34 = vpop.eup %5225  ;;  %v1732_v35 = vmul.f32 0.5, %v1724_v29  ;;  %v1725_v50 = vadd.f32 1.0, %v5224_v31  ;;  %v1737_v45 = vmul.f32 %v1729_v51, %v6279_v52  ;;  %v5042_v29 = vld [vmem:[#allocation10 + $0xe0] ss:$12 sps:$4 sm:$0xff]   ;;  %v5053_v51 = vld [vmem:[#allocation10 + $0x124] ss:$12 sps:$4 sm:$0xff]  }
 0xee3   :  { %v1734_v36 = vmul.f32 0.5, %v1726_v33  ;;  %v1727_v37 = vadd.f32 1.0, %v5226_v34  ;;  %v1739_v49 = vmul.f32 %v1731_v38, %v6281_v11  ;;  %v5045_v31 = vld [vmem:[#allocation10 + $0xf4] ss:$12 sps:$4 sm:$0xff]   ;;  %v5046_v33 = vld [vmem:[#allocation10 + $0xf8] ss:$12 sps:$4 sm:$0xff]  }
 0xee4   :  { %v1740_v40 = vmul.f32 %v1732_v35, %v6287_v18  ;;  %v1733_v41 = vmul.f32 0.5, %v1725_v50  ;;  %v4293_v18 = vld [vmem:[#allocation20] ss:$0 sm:$0xff]  ;;  %v5049_v34 = vld [vmem:[#allocation10 + $0x10c] ss:$12 sps:$4 sm:$0xff]  }
 0xee5   :  { %v1742_v43 = vmul.f32 %v1734_v36, %v6289_v19  ;;  %v1735_v44 = vmul.f32 0.5, %v1727_v37  ;;  %v5047_v35 = vld [vmem:[#allocation10 + $0x108] ss:$12 sps:$4 sm:$0xff]   ;;  %v5050_v50 = vld [vmem:[#allocation10 + $0x110] ss:$12 sps:$4 sm:$0xff]  }
 0xee6   :  { %v1741_v46 = vmul.f32 %v1733_v41, %v6295_v16  ;;  %v1744_v48 = vpack.c.bf16 %v1740_v40, %v1736_v39  ;;  %v5051_v36 = vld [vmem:[#allocation10 + $0x120] ss:$12 sps:$4 sm:$0xff]   ;;  %v5054_v37 = vld [vmem:[#allocation10 + $0x128] ss:$12 sps:$4 sm:$0xff]   ;;  %v5055_v39 = vld [vmem:[#allocation10 + $0x138] ss:$12 sps:$4 sm:$0xff]  }
 0xee7   :  { %v1743_v22 = vmul.f32 %v1735_v44, %v6297_v28  ;;  %v1746_v53 = vpack.c.bf16 %v1742_v43, %v1738_v42  ;;  %v5057_v38 = vld [vmem:[#allocation10 + $0x13c] ss:$12 sps:$4 sm:$0xff]   ;;  %v5058_v40 = vld [vmem:[#allocation10 + $0x140] ss:$12 sps:$4 sm:$0xff]   ;;  %v5062_v43 = vld [vmem:[#allocation10 + $0x158] ss:$12 sps:$4 sm:$0xff]  }
 0xee8   :  { %v1745_v56 = vpack.c.bf16 %v1741_v46, %v1737_v45  ;;  %v5061_v41 = vld [vmem:[#allocation10 + $0x154] ss:$12 sps:$4 sm:$0xff]   ;;  %v5059_v42 = vld [vmem:[#allocation10 + $0x150] ss:$12 sps:$4 sm:$0xff]   ;;  %v5065_v44 = vld [vmem:[#allocation10 + $0x16c] ss:$12 sps:$4 sm:$0xff]  }
 0xee9   :  { %v1747_v8 = vpack.c.bf16 %v1743_v22, %v1739_v49  ;;  %v5063_v45 = vld [vmem:[#allocation10 + $0x168] ss:$12 sps:$4 sm:$0xff]   ;;  %v5066_v46 = vld [vmem:[#allocation10 + $0x170] ss:$12 sps:$4 sm:$0xff]  }
 0xeea   :  { %2043 = vmatprep.mubr.bf16.mxu0 %v1745_v56 }
 0xeeb   :  { %2084 = vmatprep.mubr.bf16.mxu1 %v1747_v8  ;;  %2044 = vmatmul.mubr.bf16.vlgmr.msra.gmra.mrb[32].mxu0 %v1744_v48 }
 0xeec   :  { %2085 = vmatmul.mubr.bf16.vlgmr.msra.gmra.mrb[32].mxu1 %v1746_v53  ;;  %2347 = vmatprep.mubr.bf16.mxu0 %v5715_v30 }
 0xeed   :  { %4758 = vmatprep.mubr.msk.bf16.mxu1 %vm5716_vm0, %v5714_v4  ;;  %4743 = vmatpush3.bf16.msra.mxu1 %v5038_v10 }
 0xeee   :  { %2316 = vmatpush1.bf16.msra.mxu0 %v5035_v7  ;;  %4744 = vmatprep.subr.bf16.mxu1 %v5714_v4 }
 0xeef   :  { %2317 = vmatprep.subr.bf16.mxu0 %v5041_v12 }
 0xef1   :  { %4745 = vmatpush3.bf16.msra.mxu1 %v5042_v29 }
 0xef2   :  { %2318 = vmatpush1.bf16.msra.mxu0 %v5039_v13  ;;  %4746 = vmatprep.subr.bf16.mxu1 %v5714_v4 }
 0xef3   :  { %2319 = vmatprep.subr.bf16.mxu0 %v5045_v31 }
 0xef5   :  { %4747 = vmatpush3.bf16.msra.mxu1 %v5046_v33 }
 0xef6   :  { %2320 = vmatpush1.bf16.msra.mxu0 %v5043_v32  ;;  %4748 = vmatprep.subr.bf16.mxu1 %v5714_v4 }
 0xef7   :  { %2321 = vmatprep.subr.bf16.mxu0 %v5049_v34 }
 0xef9   :  { %4749 = vmatpush3.bf16.msra.mxu1 %v5050_v50 }
 0xefa   :  { %2322 = vmatpush1.bf16.msra.mxu0 %v5047_v35  ;;  %4750 = vmatprep.subr.bf16.mxu1 %v5714_v4 }
 0xefb   :  { %2323 = vmatprep.subr.bf16.mxu0 %v5053_v51  ;;  %v6387_v51 = vld [vmem:[#allocation5] sm:$0xff] }
 0xefd   :  { %4751 = vmatpush3.bf16.msra.mxu1 %v5054_v37 }
 0xefe   :  { %2324 = vmatpush1.bf16.msra.mxu0 %v5051_v36  ;;  %4752 = vmatprep.subr.bf16.mxu1 %v5714_v4 }
 0xeff   :  { %2325 = vmatprep.subr.bf16.mxu0 %v5057_v38 }
 0xf01   :  { %4753 = vmatpush3.bf16.msra.mxu1 %v5058_v40 }
 0xf02   :  { %2326 = vmatpush1.bf16.msra.mxu0 %v5055_v39  ;;  %4754 = vmatprep.subr.bf16.mxu1 %v5714_v4  ;;  %v6390_v39 = vld [vmem:[#allocation5 + $0x8] sm:$0xff] }
 0xf03   :  { %2327 = vmatprep.subr.bf16.mxu0 %v5061_v41 }
 0xf05   :  { %4755 = vmatpush3.bf16.msra.mxu1 %v5062_v43 }
 0xf06   :  { %2328 = vmatpush1.bf16.msra.mxu0 %v5059_v42  ;;  %4756 = vmatprep.subr.bf16.mxu1 %v5714_v4 }
 0xf07   :  { %2329 = vmatprep.subr.bf16.mxu0 %v5065_v44 }
 0xf09   :  { %4757 = vmatpush3.bf16.msra.mxu1 %v5066_v46 }
 0xf0a   :  { %2330 = vmatpush1.bf16.msra.mxu0 %v5063_v45  ;;  %4768 = vmatprep.subr.bf16.mxu1 %v5714_v4 }
 0xf0b   :  { %4762 = vmatprep.subr.bf16.mxu0 %v5714_v4 }
 0xfbe   :  { %v4515_v9 = vpop.f32.mrb[32].mxu0 }
 0xfbf   :  { %v4537_v52 = vpop.f32.mrb[32].mxu1  ;;  %v4516_v19 = vpop.f32.mrb[33].mxu0 }
 0xfc0   :  { %v4517_v16 = vadd.f32 %v4516_v19, %v4515_v9  ;;  %v4538_v11 = vpop.f32.mrb[33].mxu1  ;;  %v4518_v24 = vpop.f32.mrb[34].mxu0 }
 0xfc1   :  { %v4539_v28 = vadd.f32 %v4538_v11, %v4537_v52  ;;  %v4540_v59 = vpop.f32.mrb[34].mxu1  ;;  %v4519_v60 = vpop.f32.mrb[35].mxu0 }
 0xfc2   :  { %v2046_v61 = vadd.f32 %v4517_v16, %v4293_v18  ;;  %v4520_v62 = vadd.f32 %v4519_v60, %v4518_v24  ;;  %v4541_v63 = vpop.f32.mrb[35].mxu1  ;;  %v4327_v24 = vld [vmem:[#allocation23] ss:$0 sm:$0xff] }
 0xfc3   :  { %v4542_v0 = vadd.f32 %v4541_v63, %v4540_v59 }
 0xfc4   :  { %v2087_v2 = vadd.f32 %v4539_v28, %v2046_v61  ;;  %v2049_v3 = vadd.f32 %v4520_v62, %v4293_v18  ;;  %v4326_v18 = vld [vmem:[#allocation22] ss:$0 sm:$0xff]  ;;  %v2170_v62 = vld [vmem:[#allocation11 + $0x3] sm:$0x7] }
 0xfc5   :  { %v2175_v63 = vrot.slane %v2170_v62, %v6120_v55 }
 0xfc6   :  { %v2090_v5 = vadd.f32 %v4542_v0, %v2049_v3  ;;  %v2093_v6 = vadd.f32 %v2087_v2, %v6262_v25  ;;  %v2183_v0 = vrot.slane %v2170_v62, %v6123_v57 }
 0xfc8   :  { %2097 = vadd.xlane.f32.xlu1 %v2093_v6  ;;  %v2094_v15 = vadd.f32 %v2090_v5, %v6264_v26  ;;  %v2179_v5 = vrot.slane %v2170_v62, %v6126_v58 }
 0xfcc   :  { %2099 = vadd.xlane.f32.xlu1 %v2094_v15 }
0x1055   :  { %v2098_v17 = vpop.xlane.xlu1 %2097 }
0x1056   :  { %v2101_v14 = vmul.f32 0.0078125, %v2098_v17 }
0x1058   :  { %v6337_v20 = vsub.f32 %v2093_v6, %v2101_v14 }
0x1059   :  { %v2100_v25 = vpop.xlane.xlu1 %2099 }
0x105a   :  { %v2102_v21 = vmul.f32 0.0078125, %v2100_v25  ;;  %v2105_v26 = vmul.f32 %v6337_v20, %v6337_v20 }
0x105c   :  { %v2104_v23 = vsub.f32 %v2094_v15, %v2102_v21  ;;  %2107 = vadd.xlane.f32.xlu0 %v2105_v26 }
0x105e   :  { %v2106_v27 = vmul.f32 %v2104_v23, %v2104_v23 }
0x1060   :  { %2109 = vadd.xlane.f32.xlu1 %v2106_v27 }
0x10e9   :  { %v2108_v48 = vpop.xlane.xlu0 %2107 }
0x10ea   :  { %v2111_v49 = vmul.f32 0.0078125, %v2108_v48 }
0x10ec   :  { %v2113_v22 = vadd.f32 1e-12, %v2111_v49 }
0x10ed   :  { %v2110_v53 = vpop.xlane.xlu1 %2109 }
0x10ee   :  { %5227 = vrsqrt.f32 %v2113_v22  ;;  %v2112_v56 = vmul.f32 0.0078125, %v2110_v53 }
0x10f0   :  { %v2114_v8 = vadd.f32 1e-12, %v2112_v56 }
0x10f2   :  { %5229 = vrsqrt.f32 %v2114_v8 }
0x10f8   :  { %v5228_v9 = vpop.eup %5227 }
0x10f9   :  { %v2117_v52 = vmul.f32 %v5228_v9, %v6337_v20 }
0x10fb   :  { %v2125_v11 = vmul.f32 %v4326_v18, %v2117_v52 }
0x10fc   :  { %v5230_v19 = vpop.eup %5229 }
0x10fd   :  { %v2118_v16 = vmul.f32 %v5230_v19, %v2104_v23  ;;  %v6350_v59 = vadd.f32 %v4327_v24, %v2125_v11 }
0x10ff   :  { %v2126_v28 = vmul.f32 %v4326_v18, %v2118_v16 }
0x1101   :  { %v6352_v60 = vadd.f32 %v4327_v24, %v2126_v28 }
0x1103   :  { %v2135_v61 = vpack.c.bf16 %v6352_v60, %v6350_v59 }
0x1105   :  { %2348 = vmatmul.mubr.bf16.vlgmr.msra.gmra.mrb[36].mxu0 %v2135_v61  ;;  %4759 = vmatmul.mubr.bf16.vlgmr.msra.gmra.mrb[36].mxu1 %v2135_v61 }
0x1106   :  { %4764 = vmatprep.mubr.msk.bf16.mxu0 %vm5716_vm0, %v5714_v4  ;;  %4770 = vmatprep.mubr.msk.bf16.mxu1 %vm5716_vm0, %v5714_v4 }
0x11d8   :  { %v2349_v2 = vpop.f32.mrb[36].mxu0  ;;  %v2392_v3 = vpop.f32.mrb[36].mxu1 }
0x11d9   :  { %v2350_v6 = vadd.f32 %v2349_v2, %v2175_v63  ;;  %v2351_v15 = vpop.f32.mrb[37].mxu0  ;;  %v4760_v7 = vpop.f32.mrb[37].mxu1  ;;  %v2393_v12 = vadd.f32 %v2392_v3, %v2183_v0 }
0x11da   :  { %v2353_v47 = vpop.f32.mrb[38].mxu0  ;;  %v2395_v10 = vpop.f32.mrb[38].mxu1  ;;  %v2352_v25 = vadd.f32 %v2351_v15, %v2179_v5 }
0x11db   :  { %v2354_v13 = vadd.f32 %v2353_v47, %v2175_v63  ;;  %v2396_v17 = vadd.f32 %v2395_v10, %v2183_v0  ;;  %v2355_v14 = vpop.f32.mrb[39].mxu0  ;;  %v4761_v20 = vpop.f32.mrb[39].mxu1  ;;  %v2399_v26 = vmul.f32 0.17677669, %v2350_v6 }
0x11dc   :  { %v2356_v21 = vadd.f32 %v2355_v14, %v2179_v5 }
0x11dd   :  { %v2400_v23 = vmul.f32 0.17677669, %v2354_v13  ;;  %v6363_v27 = vpack.c.bf16 %v2396_v17, %v2393_v12 }
0x11de   :  { %v6365_v29 = vpack.c.bf16 %v2356_v21, %v2352_v25  ;;  %v5069_v21 = vld [vmem:[#allocation13 + $0x50] sm:$0xff]  }
0x11df   :  { %v6367_v31 = vpack.c.bf16 %v2400_v23, %v2399_v26  ;;  %4769 = vmatpush3.bf16.msra.mxu1 %v6363_v27  ;;  %v5070_v26 = vld [vmem:[#allocation13 + $0x58] sm:$0xff]  }
0x11e0   :  { %2540 = vrot.lane.b32.xlu1 %v6365_v29, %s5717_s17  ;;  %v2425_v32 = vsel %vm606_vm1, %v6365_v29, 0  ;;  %4780 = vmatprep.subr.bf16.mxu1 %v5714_v4 }
0x11e1   :  { %4763 = vmatpush3.bf16.xpose.msra.mxu0 %v2425_v32 }
0x11e2   :  { %4774 = vmatprep.subr.bf16.mxu0 %v5714_v4 }
0x11e4   :  { %2537 = vrot.lane.b32.xlu1 %v6367_v31, %s5717_s17 }
0x11e8   :  { %4765 = vmatmul.mubr.msk.bf16.vlgmr.msra.gmra.mrb[40].mxu0 %vm606_vm1, %v6367_v31 }
0x11e9   :  { %4776 = vmatprep.mubr.msk.bf16.mxu0 %vm5716_vm0, %v5714_v4 }
0x1252   :  { %v2541_v33 = vpop.permute.xlu1 %2540 }
0x1253   :  { %v2546_v34 = vsel %vm606_vm1, %v2541_v33, 0 }
0x1254   :  { %4775 = vmatpush3.bf16.xpose.msra.mxu0 %v2546_v34 }
0x1255   :  { %4786 = vmatprep.subr.bf16.mxu0 %v5714_v4 }
0x1256   :  { %v2538_v35 = vpop.permute.xlu1 %2537 }
0x125b   :  { %4777 = vmatmul.mubr.msk.bf16.vlgmr.msra.gmra.mrb[44].mxu0 %vm606_vm1, %v2538_v35 }
0x125c   :  { %4790 = vmatprep.mubr.msk.bf16.mxu0 %vm5716_vm0, %v5714_v4  ;;  %4787 = vmatpush3.bf16.msra.mxu0 %v5069_v21 }
0x125d   :  { %4788 = vmatprep.subr.bf16.mxu0 %v5714_v4 }
0x1260   :  { %4789 = vmatpush3.bf16.msra.mxu0 %v5070_v26 }
0x1261   :  { %4802 = vmatprep.subr.bf16.mxu0 %v5714_v4 }
0x12bb   :  { %v2461_v50 = vpop.f32.mrb[40].mxu0 }
0x12bc   :  { %v2462_v36 = vadd.f32 %v6387_v51, %v2461_v50  ;;  %v4766_v37 = vpop.f32.mrb[41].mxu0 }
0x12bd   :  { %v2464_v38 = vpop.f32.mrb[42].mxu0  ;;  %v5067_v37 = vld [vmem:[#allocation13 + $0x40] sm:$0xff]  }
0x12be   :  { %v2465_v40 = vadd.f32 %v6390_v39, %v2464_v38  ;;  %v4767_v41 = vpop.f32.mrb[43].mxu0  ;;  %v2468_v42 = vsel %vm654_vm2, %v2462_v36, -inf }
0x12bf   :  { %2469 = vmax.xlane.f32.xlu1 %v2468_v42 }
0x12c0   :  { %v2471_v43 = vsel %vm654_vm2, %v2465_v40, -inf }
0x12c1   :  { %2472 = vmax.xlane.f32.xlu0 %v2471_v43 }
0x12d0   :  { %2775 = vrot.lane.b32.xlu1 %v6365_v29, %s6672_s21 }
0x12d4   :  { %2773 = vrot.lane.b32.xlu1 %v6367_v31, %s6672_s21 }
0x132e   :  { %v2582_v44 = vpop.f32.mrb[44].mxu0 }
0x132f   :  { %v2583_v45 = vadd.f32 %v6387_v51, %v2582_v44  ;;  %v4778_v46 = vpop.f32.mrb[45].mxu0 }
0x1330   :  { %v2585_v48 = vpop.f32.mrb[46].mxu0 }
0x1331   :  { %v2586_v49 = vadd.f32 %v6390_v39, %v2585_v48  ;;  %v4779_v22 = vpop.f32.mrb[47].mxu0  ;;  %v2589_v53 = vsel %vm654_vm2, %v2583_v45, -inf }
0x1332   :  { %2590 = vmax.xlane.f32.xlu0 %v2589_v53 }
0x1333   :  { %v2592_v56 = vsel %vm654_vm2, %v2586_v49, -inf }
0x1336   :  { %2593 = vmax.xlane.f32.xlu0 %v2592_v56 }
0x134c   :  { %v2470_v8 = vpop.xlane.xlu1 %2469 }
0x134d   :  { %v2474_v9 = vsub.f32 %v2462_v36, %v2470_v8 }
0x134e   :  { %v2473_v52 = vpop.xlane.xlu0 %2472 }
0x134f   :  { %v2476_v18 = vmul.f32 1.442695, %v2474_v9  ;;  %v2475_v19 = vsub.f32 %v2465_v40, %v2473_v52  ;;  %v5068_v40 = vld [vmem:[#allocation13 + $0x48] sm:$0xff]  }
0x1351   :  { %5231 = vpow2.f32 %v2476_v18  ;;  %v2478_v16 = vmul.f32 1.442695, %v2475_v19 }
0x1353   :  { %5233 = vpow2.f32 %v2478_v16 }
0x135b   :  { %v5232_v11 = vpop.eup %5231 }
0x135c   :  { %v2480_v24 = vsel %vm654_vm2, %v5232_v11, 0.0 }
0x135d   :  { %v5234_v28 = vpop.eup %5233  ;;  %2481 = vadd.xlane.f32.xlu0 %v2480_v24 }
0x135e   :  { %v2483_v61 = vsel %vm654_vm2, %v5234_v28, 0.0 }
0x1361   :  { %2484 = vadd.xlane.f32.xlu0 %v2483_v61 }
0x13bf   :  { %v2591_v62 = vpop.xlane.xlu0 %2590 }
0x13c0   :  { %v2595_v63 = vsub.f32 %v2583_v45, %v2591_v62 }
0x13c2   :  { %v2597_v0 = vmul.f32 1.442695, %v2595_v63 }
0x13c3   :  { %v2594_v2 = vpop.xlane.xlu0 %2593 }
0x13c4   :  { %5235 = vpow2.f32 %v2597_v0  ;;  %v2596_v3 = vsub.f32 %v2586_v49, %v2594_v2  ;;  %v2776_v49 = vpop.permute.xlu1 %2775 }
0x13c5   :  { %v2781_v8 = vsel %vm606_vm1, %v2776_v49, 0 }
0x13c6   :  { %v2599_v5 = vmul.f32 1.442695, %v2596_v3 }
0x13c8   :  { %5237 = vpow2.f32 %v2599_v5  ;;  %v2774_v9 = vpop.permute.xlu1 %2773 }
0x13ce   :  { %v5236_v6 = vpop.eup %5235 }
0x13cf   :  { %v2601_v15 = vsel %vm654_vm2, %v5236_v6, 0.0 }
0x13d0   :  { %2602 = vadd.xlane.f32.xlu0 %v2601_v15 }
0x13d2   :  { %v5238_v7 = vpop.eup %5237 }
0x13d3   :  { %v2604_v47 = vsel %vm654_vm2, %v5238_v7, 0.0 }
0x13d4   :  { %2605 = vadd.xlane.f32.xlu0 %v2604_v47 }
0x13ea   :  { %2613 = vrot.lane.b32.xlu0 %v6363_v27, %s5717_s17  ;;  %v2482_v10 = vpop.xlane.xlu0 %2481 }
0x13eb   :  { %5239 = vrcp.f32 %v2482_v10 }
0x13ee   :  { %v2485_v12 = vpop.xlane.xlu0 %2484 }
0x13ef   :  { %5241 = vrcp.f32 %v2485_v12 }
0x13f5   :  { %v5240_v13 = vpop.eup %5239 }
0x13f6   :  { %v2488_v14 = vmul.f32 %v5240_v13, %v5232_v11 }
0x13f9   :  { %v5242_v17 = vpop.eup %5241 }
0x13fa   :  { %v2489_v20 = vmul.f32 %v5242_v17, %v5234_v28 }
0x13fc   :  { %v2490_v25 = vpack.c.bf16 %v2489_v20, %v2488_v14 }
0x13fe   :  { %4771 = vmatmul.mubr.msk.bf16.vlgmr.msra.gmra.mrb[40].mxu1 %vm654_vm2, %v2490_v25 }
0x13ff   :  { %4782 = vmatprep.mubr.msk.bf16.mxu1 %vm5716_vm0, %v5714_v4 }
0x145d   :  { %v2603_v23 = vpop.xlane.xlu0 %2602 }
0x145e   :  { %5243 = vrcp.f32 %v2603_v23 }
0x1461   :  { %v2606_v32 = vpop.xlane.xlu0 %2605 }
0x1462   :  { %5245 = vrcp.f32 %v2606_v32 }
0x1465   :  { %v2614_v33 = vpop.permute.xlu0 %2613 }
0x1466   :  { %4781 = vmatpush3.bf16.msra.mxu1 %v2614_v33 }
0x1467   :  { %4794 = vmatprep.subr.bf16.mxu1 %v5714_v4 }
0x1468   :  { %v5244_v34 = vpop.eup %5243 }
0x1469   :  { %v2609_v50 = vmul.f32 %v5244_v34, %v5236_v6 }
0x146c   :  { %v5246_v35 = vpop.eup %5245 }
0x146d   :  { %v2610_v36 = vmul.f32 %v5246_v35, %v5238_v7 }
0x146f   :  { %v2611_v38 = vpack.c.bf16 %v2610_v36, %v2609_v50 }
0x1471   :  { %4783 = vmatmul.mubr.msk.bf16.vlgmr.msra.gmra.mrb[44].mxu1 %vm654_vm2, %v2611_v38 }
0x1472   :  { %4795 = vmatpush3.bf16.msra.mxu1 %v5067_v37  ;;  %4798 = vmatprep.mubr.msk.bf16.mxu1 %vm5716_vm0, %v5714_v4 }
0x1473   :  { %4796 = vmatprep.subr.bf16.mxu1 %v5714_v4 }
0x1476   :  { %4797 = vmatpush3.bf16.msra.mxu1 %v5068_v40 }
0x1477   :  { %4808 = vmatprep.subr.bf16.mxu1 %v5714_v4 }
0x14d1   :  { %v2528_v41 = vpop.f32.mrb[40].mxu1 }
0x14d2   :  { %v4772_v42 = vpop.f32.mrb[41].mxu1 }
0x14d3   :  { %v2531_v43 = vpop.f32.mrb[42].mxu1  ;;  %v5072_v42 = vld [vmem:[#allocation13 + $0x68] sm:$0xff]  }
0x14d4   :  { %v2535_v44 = vpack.c.bf16 %v2531_v43, %v2528_v41  ;;  %v4773_v45 = vpop.f32.mrb[43].mxu1 }
0x14d6   :  { %4799 = vmatmul.mubr.msk.bf16.vlgmr.msra.gmra.mrb[48].mxu1 %vm606_vm1, %v2535_v44 }
0x14d7   :  { %4810 = vmatprep.mubr.msk.bf16.mxu1 %vm5716_vm0, %v5714_v4 }
0x1544   :  { %v2653_v46 = vpop.f32.mrb[44].mxu1 }
0x1545   :  { %v4784_v48 = vpop.f32.mrb[45].mxu1 }
0x1546   :  { %v2656_v22 = vpop.f32.mrb[46].mxu1 }
0x1547   :  { %v2660_v53 = vpack.c.bf16 %v2656_v22, %v2653_v46  ;;  %v4785_v56 = vpop.f32.mrb[47].mxu1 }
0x1549   :  { %4791 = vmatmul.mubr.msk.bf16.vlgmr.msra.gmra.mrb[48].mxu0 %vm606_vm1, %v2660_v53 }
0x154a   :  { %4803 = vmatpush3.bf16.xpose.msra.mxu0 %v2781_v8  ;;  %4804 = vmatprep.mubr.msk.bf16.mxu0 %vm5716_vm0, %v5714_v4 }
0x154b   :  { %4814 = vmatprep.subr.bf16.mxu0 %v5714_v4 }
0x1551   :  { %4805 = vmatmul.mubr.msk.bf16.vlgmr.msra.gmra.mrb[52].mxu0 %vm606_vm1, %v2774_v9 }
0x1552   :  { %4818 = vmatprep.mubr.msk.bf16.mxu0 %vm5716_vm0, %v5714_v4 }
0x15a9   :  { %v2766_v52 = vpop.f32.mrb[48].mxu1 }
0x15aa   :  { %v4800_v18 = vpop.f32.mrb[49].mxu1 }
0x15ab   :  { %v2769_v19 = vpop.f32.mrb[50].mxu1 }
0x15ac   :  { %v4801_v16 = vpop.f32.mrb[51].mxu1 }
0x161c   :  { %v2710_v11 = vpop.f32.mrb[48].mxu0 }
0x161d   :  { %v6431_v24 = vadd.f32 %v2766_v52, %v2710_v11  ;;  %v4792_v28 = vpop.f32.mrb[49].mxu0 }
0x161e   :  { %v2713_v61 = vpop.f32.mrb[50].mxu0 }
0x161f   :  { %v6433_v62 = vadd.f32 %v2769_v19, %v2713_v61  ;;  %v4793_v63 = vpop.f32.mrb[51].mxu0 }
0x1624   :  { %v2817_v0 = vpop.f32.mrb[52].mxu0 }
0x1625   :  { %v2818_v2 = vadd.f32 %v6387_v51, %v2817_v0  ;;  %v4806_v3 = vpop.f32.mrb[53].mxu0 }
0x1626   :  { %v2820_v5 = vpop.f32.mrb[54].mxu0 }
0x1627   :  { %v2821_v6 = vadd.f32 %v6390_v39, %v2820_v5  ;;  %v4807_v15 = vpop.f32.mrb[55].mxu0  ;;  %v2824_v7 = vsel %vm654_vm2, %v2818_v2, -inf  ;;  %v5073_v5 = vld [vmem:[#allocation13 + $0x70] sm:$0xff]  }
0x1628   :  { %2825 = vmax.xlane.f32.xlu0 %v2824_v7 }
0x1629   :  { %v2827_v47 = vsel %vm654_vm2, %v2821_v6, -inf }
0x162a   :  { %2828 = vmax.xlane.f32.xlu1 %v2827_v47 }
0x163b   :  { %2955 = vrot.lane.b32.xlu1 %v6365_v29, %s5718_s4  ;;  %v5071_v29 = vld [vmem:[#allocation13 + $0x60] sm:$0xff]  }
0x163c   :  { %4815 = vmatpush3.bf16.msra.mxu0 %v5071_v29 }
0x163d   :  { %4816 = vmatprep.subr.bf16.mxu0 %v5714_v4 }
0x163f   :  { %2953 = vrot.lane.b32.xlu1 %v6367_v31, %s5718_s4 }
0x1640   :  { %4817 = vmatpush3.bf16.msra.mxu0 %v5072_v42 }
0x1641   :  { %4828 = vmatprep.subr.bf16.mxu0 %v5714_v4 }
0x16b5   :  { %v2826_v10 = vpop.xlane.xlu0 %2825 }
0x16b6   :  { %v2830_v12 = vsub.f32 %v2818_v2, %v2826_v10 }
0x16b7   :  { %v2829_v13 = vpop.xlane.xlu1 %2828 }
0x16b8   :  { %v2832_v17 = vmul.f32 1.442695, %v2830_v12  ;;  %v2831_v14 = vsub.f32 %v2821_v6, %v2829_v13 }
0x16ba   :  { %5247 = vpow2.f32 %v2832_v17  ;;  %v2834_v20 = vmul.f32 1.442695, %v2831_v14 }
0x16bb   :  { %v2956_v37 = vpop.permute.xlu1 %2955 }
0x16bc   :  { %5249 = vpow2.f32 %v2834_v20  ;;  %v2961_v40 = vsel %vm606_vm1, %v2956_v37, 0 }
0x16bf   :  { %v2954_v41 = vpop.permute.xlu1 %2953 }
0x16c4   :  { %v5248_v25 = vpop.eup %5247 }
0x16c5   :  { %v2836_v21 = vsel %vm654_vm2, %v5248_v25, 0.0 }
0x16c6   :  { %v5250_v26 = vpop.eup %5249  ;;  %2837 = vadd.xlane.f32.xlu0 %v2836_v21 }
0x16c7   :  { %v2839_v23 = vsel %vm654_vm2, %v5250_v26, 0.0 }
0x16ca   :  { %2840 = vadd.xlane.f32.xlu0 %v2839_v23 }
0x16e0   :  { %2847 = vrot.lane.b32.xlu0 %v6363_v27, %s6672_s21 }
0x1753   :  { %v2838_v31 = vpop.xlane.xlu0 %2837 }
0x1754   :  { %5251 = vrcp.f32 %v2838_v31 }
0x1757   :  { %v2841_v32 = vpop.xlane.xlu0 %2840 }
0x1758   :  { %5253 = vrcp.f32 %v2841_v32 }
0x175b   :  { %v2848_v33 = vpop.permute.xlu0 %2847 }
0x175c   :  { %4809 = vmatpush3.bf16.msra.mxu1 %v2848_v33 }
0x175d   :  { %4822 = vmatprep.subr.bf16.mxu1 %v5714_v4 }
0x175e   :  { %v5252_v34 = vpop.eup %5251 }
0x175f   :  { %v2844_v50 = vmul.f32 %v5252_v34, %v5248_v25 }
0x1762   :  { %v5254_v35 = vpop.eup %5253 }
0x1763   :  { %v2845_v36 = vmul.f32 %v5254_v35, %v5250_v26  ;;  %v5074_v26 = vld [vmem:[#allocation13 + $0x78] sm:$0xff]  }
0x1765   :  { %v2846_v38 = vpack.c.bf16 %v2845_v36, %v2844_v50  ;;  %v4373_v50 = vld [vmem:[%s6632_s7 + $0x1] ss:$0 sm:$0xff] }
0x1767   :  { %4811 = vmatmul.mubr.msk.bf16.vlgmr.msra.gmra.mrb[52].mxu1 %vm654_vm2, %v2846_v38 }
0x1768   :  { %4823 = vmatpush3.bf16.xpose.msra.mxu1 %v2961_v40  ;;  %4824 = vmatprep.mubr.msk.bf16.mxu1 %vm5716_vm0, %v5714_v4 }
0x1769   :  { %4834 = vmatprep.subr.bf16.mxu1 %v5714_v4 }
0x176f   :  { %4825 = vmatmul.mubr.msk.bf16.vlgmr.msra.gmra.mrb[56].mxu1 %vm606_vm1, %v2954_v41 }
0x1770   :  { %4838 = vmatprep.mubr.msk.bf16.mxu1 %vm5716_vm0, %v5714_v4  ;;  %4835 = vmatpush3.bf16.msra.mxu1 %v5073_v5  ;;  %v5102_v5 = vld [vmem:[#allocation16 + $0x188] ss:$16 sps:$4 sm:$0xff]  }
0x1771   :  { %4836 = vmatprep.subr.bf16.mxu1 %v5714_v4 }
0x1774   :  { %4837 = vmatpush3.bf16.msra.mxu1 %v5074_v26 }
0x183a   :  { %v2887_v43 = vpop.f32.mrb[52].mxu1 }
0x183b   :  { %v4812_v44 = vpop.f32.mrb[53].mxu1 }
0x183c   :  { %v2890_v45 = vpop.f32.mrb[54].mxu1  ;;  %v5078_v44 = vld [vmem:[#allocation16 + $0x108] ss:$16 sps:$4 sm:$0xff]  }
0x183d   :  { %v2894_v46 = vpack.c.bf16 %v2890_v45, %v2887_v43  ;;  %v4813_v48 = vpop.f32.mrb[55].mxu1  ;;  %v5075_v43 = vld [vmem:[#allocation16 + $0x100] ss:$16 sps:$4 sm:$0xff]   ;;  %v5080_v45 = vld [vmem:[#allocation16 + $0x10c] ss:$16 sps:$4 sm:$0xff]  }
0x183e   :  { %v5086_v48 = vld [vmem:[#allocation16 + $0x12c] ss:$16 sps:$4 sm:$0xff]   ;;  %3447 = vmatprep.subr.bf16.mxu1 %v5080_v45  ;;  %v5127_v45 = vld [vmem:[#allocation19 + $0x148] sm:$0xff]  }
0x183f   :  { %4819 = vmatmul.mubr.msk.bf16.vlgmr.msra.gmra.mrb[56].mxu0 %vm606_vm1, %v2894_v46  ;;  %v5083_v46 = vld [vmem:[#allocation16 + $0x124] ss:$16 sps:$4 sm:$0xff]  }
0x1840   :  { %4830 = vmatprep.mubr.msk.bf16.mxu0 %vm5716_vm0, %v5714_v4 }
0x1842   :  { %v2997_v49 = vpop.f32.mrb[56].mxu1 }
0x1843   :  { %v2998_v22 = vadd.f32 %v6387_v51, %v2997_v49  ;;  %v4826_v53 = vpop.f32.mrb[57].mxu1  ;;  %v5081_v49 = vld [vmem:[#allocation16 + $0x120] ss:$16 sps:$4 sm:$0xff]  }
0x1844   :  { %v3000_v56 = vpop.f32.mrb[58].mxu1 }
0x1845   :  { %v3001_v8 = vadd.f32 %v6390_v39, %v3000_v56  ;;  %v4827_v9 = vpop.f32.mrb[59].mxu1  ;;  %v3004_v52 = vsel %vm654_vm2, %v2998_v22, -inf }
0x1846   :  { %3005 = vmax.xlane.f32.xlu1 %v3004_v52 }
0x1847   :  { %v3007_v18 = vsel %vm654_vm2, %v3001_v8, -inf }
0x1848   :  { %3008 = vmax.xlane.f32.xlu0 %v3007_v18 }
0x1857   :  { %3027 = vrot.lane.b32.xlu1 %v6363_v27, %s5718_s4 }
0x18d3   :  { %v3006_v19 = vpop.xlane.xlu1 %3005 }
0x18d4   :  { %v3010_v16 = vsub.f32 %v2998_v22, %v3006_v19  ;;  %v5089_v19 = vld [vmem:[#allocation16 + $0x144] ss:$16 sps:$4 sm:$0xff]  }
0x18d5   :  { %v3009_v11 = vpop.xlane.xlu0 %3008 }
0x18d6   :  { %v3012_v28 = vmul.f32 1.442695, %v3010_v16  ;;  %v3011_v61 = vsub.f32 %v3001_v8, %v3009_v11  ;;  %v5092_v16 = vld [vmem:[#allocation16 + $0x14c] ss:$16 sps:$4 sm:$0xff]   ;;  %v5087_v11 = vld [vmem:[#allocation16 + $0x140] ss:$16 sps:$4 sm:$0xff]  }
0x18d7   :  { %v3028_v51 = vpop.permute.xlu1 %3027 }
0x18d8   :  { %5255 = vpow2.f32 %v3012_v28  ;;  %v3014_v63 = vmul.f32 1.442695, %v3011_v61  ;;  %4829 = vmatpush3.bf16.msra.mxu0 %v3028_v51  ;;  %v5090_v28 = vld [vmem:[#allocation16 + $0x148] ss:$16 sps:$4 sm:$0xff]   ;;  %v5095_v61 = vld [vmem:[#allocation16 + $0x164] ss:$16 sps:$4 sm:$0xff]  }
0x18d9   :  { %v5098_v51 = vld [vmem:[#allocation16 + $0x16c] ss:$16 sps:$4 sm:$0xff]  }
0x18da   :  { %5257 = vpow2.f32 %v3014_v63  ;;  %v5093_v63 = vld [vmem:[#allocation16 + $0x160] ss:$16 sps:$4 sm:$0xff]  }
0x18e2   :  { %v5256_v39 = vpop.eup %5255 }
0x18e3   :  { %v3016_v0 = vsel %vm654_vm2, %v5256_v39, 0.0 }
0x18e4   :  { %v5258_v2 = vpop.eup %5257  ;;  %3017 = vadd.xlane.f32.xlu0 %v3016_v0  ;;  %v5101_v0 = vld [vmem:[#allocation16 + $0x184] ss:$16 sps:$4 sm:$0xff]  }
0x18e5   :  { %v3019_v3 = vsel %vm654_vm2, %v5258_v2, 0.0 }
0x18e8   :  { %3020 = vadd.xlane.f32.xlu0 %v3019_v3  ;;  %v5099_v3 = vld [vmem:[#allocation16 + $0x180] ss:$16 sps:$4 sm:$0xff]  }
0x1912   :  { %v2944_v27 = vpop.f32.mrb[56].mxu0 }
0x1913   :  { %v2951_v6 = vadd.f32 %v2944_v27, %v6431_v24  ;;  %v4820_v15 = vpop.f32.mrb[57].mxu0  ;;  %v5107_v27 = vld [vmem:[#allocation16 + $0x1a4] ss:$16 sps:$4 sm:$0xff]  }
0x1914   :  { %v2947_v7 = vpop.f32.mrb[58].mxu0  ;;  %v5105_v15 = vld [vmem:[#allocation16 + $0x1a0] ss:$16 sps:$4 sm:$0xff]  }
0x1915   :  { %v2952_v47 = vadd.f32 %v2947_v7, %v6433_v62  ;;  %v4821_v10 = vpop.f32.mrb[59].mxu0  ;;  %v5108_v7 = vld [vmem:[#allocation16 + $0x1a8] ss:$16 sps:$4 sm:$0xff]  }
0x1916   :  { %v5116_v10 = vld [vmem:[#allocation16 + $0x1cc] ss:$16 sps:$4 sm:$0xff]  }
0x1971   :  { %v3018_v12 = vpop.xlane.xlu0 %3017 }
0x1972   :  { %5259 = vrcp.f32 %v3018_v12  ;;  %v5111_v12 = vld [vmem:[#allocation16 + $0x1c0] ss:$16 sps:$4 sm:$0xff]  }
0x1975   :  { %v3021_v13 = vpop.xlane.xlu0 %3020 }
0x1976   :  { %5261 = vrcp.f32 %v3021_v13  ;;  %v5114_v13 = vld [vmem:[#allocation16 + $0x1c8] ss:$16 sps:$4 sm:$0xff]  }
0x197c   :  { %v5260_v17 = vpop.eup %5259 }
0x197d   :  { %v3024_v20 = vmul.f32 %v5260_v17, %v5256_v39  ;;  %v5096_v39 = vld [vmem:[#allocation16 + $0x168] ss:$16 sps:$4 sm:$0xff]   ;;  %v5119_v17 = vld [vmem:[#allocation16 + $0x1e4] ss:$16 sps:$4 sm:$0xff]  }
0x1980   :  { %v5262_v14 = vpop.eup %5261 }
0x1981   :  { %v3025_v25 = vmul.f32 %v5262_v14, %v5258_v2  ;;  %v5104_v2 = vld [vmem:[#allocation16 + $0x18c] ss:$16 sps:$4 sm:$0xff]  }
0x1982   :  { %v5122_v14 = vld [vmem:[#allocation16 + $0x1ec] ss:$16 sps:$4 sm:$0xff]  }
0x1983   :  { %v3026_v21 = vpack.c.bf16 %v3025_v25, %v3024_v20  ;;  %v5117_v20 = vld [vmem:[#allocation16 + $0x1e0] ss:$16 sps:$4 sm:$0xff]   ;;  %v5120_v25 = vld [vmem:[#allocation16 + $0x1e8] ss:$16 sps:$4 sm:$0xff]  }
0x1985   :  { %4831 = vmatmul.mubr.msk.bf16.vlgmr.msra.gmra.mrb[60].mxu0 %vm654_vm2, %v3026_v21 }
0x1986   :  { %3436 = vmatprep.mubr.bf16.mxu0 %v5715_v30 }
0x1a58   :  { %v3067_v24 = vpop.f32.mrb[60].mxu0 }
0x1a59   :  { %v4832_v23 = vpop.f32.mrb[61].mxu0 }
0x1a5a   :  { %v3070_v29 = vpop.f32.mrb[62].mxu0 }
0x1a5b   :  { %v3074_v62 = vpack.c.bf16 %v3070_v29, %v3067_v24  ;;  %v4833_v31 = vpop.f32.mrb[63].mxu0 }
0x1a5d   :  { %4839 = vmatmul.mubr.msk.bf16.vlgmr.msra.gmra.mrb[60].mxu1 %vm606_vm1, %v3074_v62 }
0x1a5e   :  { %3479 = vmatprep.mubr.bf16.mxu1 %v5715_v30  ;;  %v5077_v30 = vld [vmem:[#allocation16 + $0x104] ss:$16 sps:$4 sm:$0xff]   ;;  %3448 = vmatpush1.bf16.msra.mxu1 %v5078_v44  ;;  %v5126_v44 = vld [vmem:[#allocation19 + $0x180] sm:$0xff]  }
0x1a5f   :  { %3404 = vmatprep.subr.bf16.mxu0 %v5077_v30  ;;  %3449 = vmatprep.subr.bf16.mxu1 %v5086_v48  ;;  %v5125_v30 = vld [vmem:[#allocation19 + $0x100] sm:$0xff]   ;;  %v5129_v48 = vld [vmem:[#allocation19 + $0x108] sm:$0xff]  }
0x1a60   :  { %3405 = vmatpush1.bf16.msra.mxu0 %v5075_v43  ;;  %v5124_v43 = vld [vmem:[#allocation19 + $0x1c0] sm:$0xff]  }
0x1a61   :  { %3406 = vmatprep.subr.bf16.mxu0 %v5083_v46  ;;  %v5128_v46 = vld [vmem:[#allocation19 + $0x1c8] sm:$0xff]  }
0x1a64   :  { %3407 = vmatpush1.bf16.msra.mxu0 %v5081_v49  ;;  %v5130_v49 = vld [vmem:[#allocation19 + $0x188] sm:$0xff]  }
0x1a65   :  { %3408 = vmatprep.subr.bf16.mxu0 %v5089_v19  ;;  %v5140_v19 = vld [vmem:[#allocation19 + $0x1e0] sm:$0xff]  }
0x1a68   :  { %3409 = vmatpush1.bf16.msra.mxu0 %v5087_v11  ;;  %v5142_v11 = vld [vmem:[#allocation19 + $0x1a0] sm:$0xff]  }
0x1a69   :  { %3410 = vmatprep.subr.bf16.mxu0 %v5095_v61  ;;  %v5144_v61 = vld [vmem:[#allocation19 + $0x1e8] sm:$0xff]  }
0x1a6c   :  { %3411 = vmatpush1.bf16.msra.mxu0 %v5093_v63  ;;  %v5146_v63 = vld [vmem:[#allocation19 + $0x1a8] sm:$0xff]  }
0x1a6d   :  { %3412 = vmatprep.subr.bf16.mxu0 %v5101_v0  ;;  %v5148_v0 = vld [vmem:[#allocation19 + $0x1f0] sm:$0xff]  }
0x1a70   :  { %3413 = vmatpush1.bf16.msra.mxu0 %v5099_v3  ;;  %v5150_v3 = vld [vmem:[#allocation19 + $0x1b0] sm:$0xff]  }
0x1a71   :  { %3414 = vmatprep.subr.bf16.mxu0 %v5107_v27  ;;  %v5152_v27 = vld [vmem:[#allocation19 + $0x1f8] sm:$0xff]  }
0x1a74   :  { %3415 = vmatpush1.bf16.msra.mxu0 %v5105_v15  ;;  %v5154_v15 = vld [vmem:[#allocation19 + $0x1b8] sm:$0xff]  }
0x1b30   :  { %v3124_v32 = vpop.f32.mrb[60].mxu1 }
0x1b31   :  { %v3131_v33 = vadd.f32 %v3124_v32, %v2951_v6  ;;  %v4840_v34 = vpop.f32.mrb[61].mxu1  ;;  %v5110_v6 = vld [vmem:[#allocation16 + $0x1ac] ss:$16 sps:$4 sm:$0xff]  }
0x1b32   :  { %v3127_v35 = vpop.f32.mrb[62].mxu1 }
0x1b33   :  { %v3133_v36 = vadd.f32 %v3131_v33, %v6350_v59  ;;  %v3132_v37 = vadd.f32 %v3127_v35, %v2952_v47  ;;  %v4841_v38 = vpop.f32.mrb[63].mxu1  ;;  %v5084_v59 = vld [vmem:[#allocation16 + $0x128] ss:$16 sps:$4 sm:$0xff]   ;;  %v5113_v47 = vld [vmem:[#allocation16 + $0x1c4] ss:$16 sps:$4 sm:$0xff]  }
0x1b34   :  { %3450 = vmatpush1.bf16.msra.mxu1 %v5084_v59  ;;  %3416 = vmatprep.subr.bf16.mxu0 %v5113_v47  ;;  %v4375_v33 = vld [vmem:[%s6633_s8 + $0x1] ss:$0 sm:$0xff]  ;;  %v5131_v59 = vld [vmem:[#allocation19 + $0x150] sm:$0xff]  }
0x1b35   :  { %v3134_v40 = vadd.f32 %v3132_v37, %v6352_v60  ;;  %v3143_v41 = vadd.f32 %v4373_v50, %v3133_v36  ;;  %3451 = vmatprep.subr.bf16.mxu1 %v5092_v16  ;;  %3417 = vmatpush1.bf16.msra.mxu0 %v5111_v12  ;;  %v4376_v36 = vld [vmem:[#allocation14 + $0x1] ss:$0 sm:$0xff]  ;;  %v5141_v16 = vld [vmem:[#allocation19 + $0x120] sm:$0xff]  }
0x1b36   :  { %3418 = vmatprep.subr.bf16.mxu0 %v5119_v17 }
0x1b37   :  { %3149 = vadd.xlane.f32.xlu0 %v3143_v41  ;;  %v3144_v42 = vadd.f32 %v4373_v50, %v3134_v40 }
0x1b38   :  { %3452 = vmatpush1.bf16.msra.mxu1 %v5090_v28  ;;  %v5143_v28 = vld [vmem:[#allocation19 + $0x168] sm:$0xff]  }
0x1b39   :  { %3453 = vmatprep.subr.bf16.mxu1 %v5098_v51  ;;  %3419 = vmatpush1.bf16.msra.mxu0 %v5117_v20  ;;  %v5145_v51 = vld [vmem:[#allocation19 + $0x128] sm:$0xff]  }
0x1b3b   :  { %3151 = vadd.xlane.f32.xlu0 %v3144_v42 }
0x1b3c   :  { %3454 = vmatpush1.bf16.msra.mxu1 %v5096_v39  ;;  %v5147_v39 = vld [vmem:[#allocation19 + $0x170] sm:$0xff]  }
0x1b3d   :  { %3455 = vmatprep.subr.bf16.mxu1 %v5104_v2  ;;  %v5149_v2 = vld [vmem:[#allocation19 + $0x130] sm:$0xff]  }
0x1b40   :  { %3456 = vmatpush1.bf16.msra.mxu1 %v5102_v5  ;;  %v5151_v5 = vld [vmem:[#allocation19 + $0x178] sm:$0xff]  }
0x1b41   :  { %3457 = vmatprep.subr.bf16.mxu1 %v5110_v6  ;;  %v5153_v6 = vld [vmem:[#allocation19 + $0x138] sm:$0xff]  }
0x1b44   :  { %3458 = vmatpush1.bf16.msra.mxu1 %v5108_v7  ;;  %v3222_v7 = vld [vmem:[#allocation17 + $0x4] sm:$0xf] }
0x1b45   :  { %3459 = vmatprep.subr.bf16.mxu1 %v5116_v10  ;;  %v3227_v47 = vrot.slane %v3222_v7, %v6120_v55  ;;  %v3235_v10 = vrot.slane %v3222_v7, %v6123_v57  ;;  %v3231_v12 = vrot.slane %v3222_v7, %v6126_v58 }
0x1b48   :  { %3460 = vmatpush1.bf16.msra.mxu1 %v5114_v13  ;;  %v3239_v13 = vrot.slane %v3222_v7, %v1420_v1 }
0x1b49   :  { %3461 = vmatprep.subr.bf16.mxu1 %v5122_v14 }
0x1b4c   :  { %3462 = vmatpush1.bf16.msra.mxu1 %v5120_v25 }
0x1b4d   :  { %4602 = vmatprep.subr.bf16.mxu1 %v5124_v43 }
0x1bc4   :  { %v3150_v60 = vpop.xlane.xlu0 %3149 }
0x1bc5   :  { %v3153_v22 = vmul.f32 0.0078125, %v3150_v60  ;;  %v5132_v60 = vld [vmem:[#allocation19 + $0x1d0] sm:$0xff]  }
0x1bc7   :  { %v6481_v53 = vsub.f32 %v3143_v41, %v3153_v22  ;;  %v5133_v22 = vld [vmem:[#allocation19 + $0x110] sm:$0xff]  }
0x1bc8   :  { %v3152_v56 = vpop.xlane.xlu0 %3151 }
0x1bc9   :  { %v3154_v8 = vmul.f32 0.0078125, %v3152_v56  ;;  %v3157_v9 = vmul.f32 %v6481_v53, %v6481_v53  ;;  %v5135_v56 = vld [vmem:[#allocation19 + $0x158] sm:$0xff]  }
0x1bcb   :  { %v6485_v52 = vsub.f32 %v3144_v42, %v3154_v8  ;;  %3159 = vadd.xlane.f32.xlu0 %v3157_v9  ;;  %v5123_v42 = vld [vmem:[#allocation19 + $0x140] sm:$0xff]   ;;  %v5136_v8 = vld [vmem:[#allocation19 + $0x1d8] sm:$0xff]  }
0x1bcc   :  { %4580 = vmatprep.subr.bf16.mxu0 %v5123_v42  ;;  %v5137_v9 = vld [vmem:[#allocation19 + $0x118] sm:$0xff]  }
0x1bcd   :  { %v3158_v18 = vmul.f32 %v6485_v52, %v6485_v52 }
0x1bcf   :  { %3161 = vadd.xlane.f32.xlu0 %v3158_v18  ;;  %v5139_v18 = vld [vmem:[#allocation19 + $0x160] sm:$0xff]  }
0x1c58   :  { %v3160_v21 = vpop.xlane.xlu0 %3159 }
0x1c59   :  { %v3163_v26 = vmul.f32 0.0078125, %v3160_v21 }
0x1c5b   :  { %v3165_v24 = vadd.f32 1e-12, %v3163_v26 }
0x1c5c   :  { %v3162_v23 = vpop.xlane.xlu0 %3161 }
0x1c5d   :  { %5263 = vrsqrt.f32 %v3165_v24  ;;  %v3164_v29 = vmul.f32 0.0078125, %v3162_v23 }
0x1c5f   :  { %v3166_v62 = vadd.f32 1e-12, %v3164_v29 }
0x1c61   :  { %5265 = vrsqrt.f32 %v3166_v62 }
0x1c67   :  { %v5264_v31 = vpop.eup %5263 }
0x1c68   :  { %v3169_v32 = vmul.f32 %v5264_v31, %v6481_v53  ;;  %v5134_v53 = vld [vmem:[#allocation19 + $0x190] sm:$0xff]  }
0x1c6a   :  { %v3177_v50 = vmul.f32 %v4375_v33, %v3169_v32 }
0x1c6b   :  { %v5266_v34 = vpop.eup %5265 }
0x1c6c   :  { %v3170_v35 = vmul.f32 %v5266_v34, %v6485_v52  ;;  %v6494_v38 = vadd.f32 %v4376_v36, %v3177_v50  ;;  %v5138_v52 = vld [vmem:[#allocation19 + $0x198] sm:$0xff]  }
0x1c6e   :  { %v3178_v37 = vmul.f32 %v4375_v33, %v3170_v35 }
0x1c70   :  { %v6496_v40 = vadd.f32 %v4376_v36, %v3178_v37 }
0x1c72   :  { %v3187_v41 = vpack.c.bf16 %v6496_v40, %v6494_v38 }
0x1c74   :  { %3437 = vmatmul.mubr.bf16.vlgmr.msra.gmra.mrb[64].mxu0 %v3187_v41  ;;  %3480 = vmatmul.mubr.bf16.vlgmr.msra.gmra.mrb[64].mxu1 %v3187_v41 }
0x1c75   :  { %4581 = vmatpush3.bf16.msra.mxu0 %v5125_v30  ;;  %4603 = vmatpush3.bf16.msra.mxu1 %v5126_v44 }
0x1c76   :  { %4582 = vmatprep.subr.bf16.mxu0 %v5127_v45  ;;  %4604 = vmatprep.subr.bf16.mxu1 %v5128_v46 }
0x1c79   :  { %4583 = vmatpush3.bf16.msra.mxu0 %v5129_v48  ;;  %4605 = vmatpush3.bf16.msra.mxu1 %v5130_v49 }
0x1c7a   :  { %4584 = vmatprep.subr.bf16.mxu0 %v5131_v59  ;;  %4606 = vmatprep.subr.bf16.mxu1 %v5132_v60 }
0x1c7d   :  { %4585 = vmatpush3.bf16.msra.mxu0 %v5133_v22  ;;  %4607 = vmatpush3.bf16.msra.mxu1 %v5134_v53 }
0x1c7e   :  { %4586 = vmatprep.subr.bf16.mxu0 %v5135_v56  ;;  %4608 = vmatprep.subr.bf16.mxu1 %v5136_v8 }
0x1c81   :  { %4587 = vmatpush3.bf16.msra.mxu0 %v5137_v9  ;;  %4609 = vmatpush3.bf16.msra.mxu1 %v5138_v52 }
0x1c82   :  { %4588 = vmatprep.subr.bf16.mxu0 %v5139_v18  ;;  %4610 = vmatprep.subr.bf16.mxu1 %v5140_v19 }
0x1c85   :  { %4589 = vmatpush3.bf16.msra.mxu0 %v5141_v16  ;;  %4611 = vmatpush3.bf16.msra.mxu1 %v5142_v11 }
0x1c86   :  { %4590 = vmatprep.subr.bf16.mxu0 %v5143_v28  ;;  %4612 = vmatprep.subr.bf16.mxu1 %v5144_v61 }
0x1c89   :  { %4591 = vmatpush3.bf16.msra.mxu0 %v5145_v51  ;;  %4613 = vmatpush3.bf16.msra.mxu1 %v5146_v63 }
0x1c8a   :  { %4592 = vmatprep.subr.bf16.mxu0 %v5147_v39  ;;  %4614 = vmatprep.subr.bf16.mxu1 %v5148_v0 }
0x1c8d   :  { %4593 = vmatpush3.bf16.msra.mxu0 %v5149_v2  ;;  %4615 = vmatpush3.bf16.msra.mxu1 %v5150_v3 }
0x1c8e   :  { %4594 = vmatprep.subr.bf16.mxu0 %v5151_v5  ;;  %4616 = vmatprep.subr.bf16.mxu1 %v5152_v27 }
0x1c91   :  { %4595 = vmatpush3.bf16.msra.mxu0 %v5153_v6  ;;  %4617 = vmatpush3.bf16.msra.mxu1 %v5154_v15 }
0x1c92   :  { %4842 = vmatprep.subr.bf16.mxu0 %v5714_v4  ;;  %4862 = vmatprep.subr.bf16.mxu1 %v5714_v4 }
0x1d47   :  { %v3438_v17 = vpop.f32.mrb[64].mxu0  ;;  %v3481_v14 = vpop.f32.mrb[64].mxu1 }
0x1d48   :  { %v6507_v20 = vadd.f32 %v3438_v17, %v3227_v47  ;;  %v6509_v25 = vadd.f32 %v3481_v14, %v3235_v10  ;;  %v3440_v21 = vpop.f32.mrb[65].mxu0  ;;  %v3483_v26 = vpop.f32.mrb[65].mxu1 }
0x1d49   :  { %v6511_v24 = vadd.f32 %v3440_v21, %v3231_v12  ;;  %v6513_v23 = vadd.f32 %v3483_v26, %v3239_v13  ;;  %v3442_v55 = vpop.f32.mrb[66].mxu0  ;;  %v3485_v29 = vpop.f32.mrb[66].mxu1 }
0x1d4a   :  { %v3490_v57 = vmul.f32 %v6507_v20, %v6507_v20  ;;  %v3492_v54 = vmul.f32 %v6509_v25, %v6509_v25  ;;  %v6519_v58 = vadd.f32 %v3442_v55, %v3227_v47  ;;  %v6521_v1 = vadd.f32 %v3485_v29, %v3235_v10  ;;  %v3444_v62 = vpop.f32.mrb[67].mxu0  ;;  %v3487_v31 = vpop.f32.mrb[67].mxu1 }
0x1d4b   :  { %v3491_v32 = vmul.f32 %v6511_v24, %v6511_v24  ;;  %v3493_v33 = vmul.f32 %v6513_v23, %v6513_v23  ;;  %v6527_v34 = vadd.f32 %v3444_v62, %v3231_v12  ;;  %v6529_v35 = vadd.f32 %v3487_v31, %v3239_v13 }
0x1d4c   :  { %v3498_v50 = vmul.f32 %v3490_v57, %v6507_v20  ;;  %v3500_v36 = vmul.f32 %v3492_v54, %v6509_v25  ;;  %v3494_v37 = vmul.f32 %v6519_v58, %v6519_v58  ;;  %v3496_v41 = vmul.f32 %v6521_v1, %v6521_v1 }
0x1d4d   :  { %v3499_v42 = vmul.f32 %v3491_v32, %v6511_v24  ;;  %v3501_v43 = vmul.f32 %v3493_v33, %v6513_v23  ;;  %v3495_v30 = vmul.f32 %v6527_v34, %v6527_v34  ;;  %v3497_v44 = vmul.f32 %v6529_v35, %v6529_v35 }
0x1d4e   :  { %v3506_v45 = vmul.f32 0.044715, %v3498_v50  ;;  %v3508_v46 = vmul.f32 0.044715, %v3500_v36  ;;  %v3502_v48 = vmul.f32 %v3494_v37, %v6519_v58  ;;  %v3504_v49 = vmul.f32 %v3496_v41, %v6521_v1 }
0x1d4f   :  { %v3507_v59 = vmul.f32 0.044715, %v3499_v42  ;;  %v3509_v60 = vmul.f32 0.044715, %v3501_v43  ;;  %v3503_v22 = vmul.f32 %v3495_v30, %v6527_v34  ;;  %v3505_v53 = vmul.f32 %v3497_v44, %v6529_v35 }
0x1d50   :  { %v3514_v56 = vadd.f32 %v3506_v45, %v6507_v20  ;;  %v3516_v8 = vadd.f32 %v3508_v46, %v6509_v25  ;;  %v3510_v9 = vmul.f32 0.044715, %v3502_v48  ;;  %v3512_v52 = vmul.f32 0.044715, %v3504_v49 }
0x1d51   :  { %v3515_v18 = vadd.f32 %v3507_v59, %v6511_v24  ;;  %v3517_v19 = vadd.f32 %v3509_v60, %v6513_v23  ;;  %v3511_v16 = vmul.f32 0.044715, %v3503_v22  ;;  %v3513_v11 = vmul.f32 0.044715, %v3505_v53 }
0x1d52   :  { %v3522_v28 = vmul.f32 0.7978846, %v3514_v56  ;;  %v3524_v61 = vmul.f32 0.7978846, %v3516_v8  ;;  %v3518_v51 = vadd.f32 %v3510_v9, %v6519_v58  ;;  %v3520_v63 = vadd.f32 %v3512_v52, %v6521_v1 }
0x1d53   :  { %v3523_v39 = vmul.f32 0.7978846, %v3515_v18  ;;  %v3525_v0 = vmul.f32 0.7978846, %v3517_v19  ;;  %v3519_v2 = vadd.f32 %v3511_v16, %v6527_v34  ;;  %v3521_v3 = vadd.f32 %v3513_v11, %v6529_v35 }
0x1d54   :  { %5267 = vtanh.f32 %v3522_v28  ;;  %v3526_v5 = vmul.f32 0.7978846, %v3518_v51  ;;  %v3528_v27 = vmul.f32 0.7978846, %v3520_v63 }
0x1d55   :  { %5269 = vtanh.f32 %v3524_v61  ;;  %v3527_v6 = vmul.f32 0.7978846, %v3519_v2  ;;  %v3529_v15 = vmul.f32 0.7978846, %v3521_v3  ;;  %v5155_v2 = vld [vmem:[#allocation25] sm:$0xff]  }
0x1d56   :  { %5271 = vtanh.f32 %v3523_v39 }
0x1d57   :  { %5273 = vtanh.f32 %v3525_v0 }
0x1d58   :  { %5275 = vtanh.f32 %v3526_v5 }
0x1d59   :  { %5277 = vtanh.f32 %v3528_v27 }
0x1d5a   :  { %5279 = vtanh.f32 %v3527_v6 }
0x1d5b   :  { %5281 = vtanh.f32 %v3529_v15 }
0x1d5e   :  { %v5268_v7 = vpop.eup %5267 }
0x1d5f   :  { %v5270_v47 = vpop.eup %5269  ;;  %v3538_v10 = vadd.f32 1.0, %v5268_v7 }
0x1d60   :  { %v5272_v12 = vpop.eup %5271  ;;  %v3540_v13 = vadd.f32 1.0, %v5270_v47 }
0x1d61   :  { %v5274_v17 = vpop.eup %5273  ;;  %v3539_v14 = vadd.f32 1.0, %v5272_v12  ;;  %v3546_v29 = vmul.f32 0.5, %v3538_v10  ;;  %v5156_v12 = vld [vmem:[#allocation25 + $0x8] sm:$0xff]  }
0x1d62   :  { %v5276_v21 = vpop.eup %5275  ;;  %v3541_v26 = vadd.f32 1.0, %v5274_v17  ;;  %v3548_v62 = vmul.f32 0.5, %v3540_v13  ;;  %v5159_v13 = vld [vmem:[#allocation25 + $0x20] sm:$0xff]   ;;  %v5160_v17 = vld [vmem:[#allocation25 + $0x28] sm:$0xff]  }
0x1d63   :  { %v5278_v55 = vpop.eup %5277  ;;  %v3542_v57 = vadd.f32 1.0, %v5276_v21  ;;  %v3547_v36 = vmul.f32 0.5, %v3539_v14  ;;  %v3554_v43 = vmul.f32 %v3546_v29, %v6507_v20  ;;  %v5161_v14 = vld [vmem:[#allocation25 + $0x30] sm:$0xff]   ;;  %v5162_v21 = vld [vmem:[#allocation25 + $0x38] sm:$0xff]  }
0x1d64   :  { %v5280_v54 = vpop.eup %5279  ;;  %v3544_v31 = vadd.f32 1.0, %v5278_v55  ;;  %v3549_v42 = vmul.f32 0.5, %v3541_v26  ;;  %v3556_v45 = vmul.f32 %v3548_v62, %v6509_v25  ;;  %v5163_v26 = vld [vmem:[%s6643_s18] sm:$0xff]   ;;  %v5164_v55 = vld [vmem:[%s6643_s18 + $0x8] sm:$0xff]   ;;  %v5165_v29 = vld [vmem:[%s6643_s18 + $0x10] sm:$0xff]  }
0x1d65   :  { %v5282_v32 = vpop.eup %5281  ;;  %v3550_v33 = vmul.f32 0.5, %v3542_v57  ;;  %v3543_v50 = vadd.f32 1.0, %v5280_v54  ;;  %v3555_v49 = vmul.f32 %v3547_v36, %v6511_v24  ;;  %v5166_v57 = vld [vmem:[%s6643_s18 + $0x18] sm:$0xff]  }
0x1d66   :  { %v3552_v37 = vmul.f32 0.5, %v3544_v31  ;;  %v3545_v41 = vadd.f32 1.0, %v5282_v32  ;;  %v3557_v22 = vmul.f32 %v3549_v42, %v6513_v23 }
0x1d67   :  { %v3558_v30 = vmul.f32 %v3550_v33, %v6519_v58  ;;  %v3551_v44 = vmul.f32 0.5, %v3543_v50  ;;  %v4409_v58 = vld [vmem:[#allocation20 + $0x1] ss:$0 sm:$0xff] }
0x1d68   :  { %v3560_v46 = vmul.f32 %v3552_v37, %v6521_v1  ;;  %v3553_v48 = vmul.f32 0.5, %v3545_v41  ;;  %v4442_v41 = vld [vmem:[#allocation22 + $0x1] ss:$0 sm:$0xff] }
0x1d69   :  { %v3559_v59 = vmul.f32 %v3551_v44, %v6527_v34  ;;  %v3562_v60 = vpack.c.bf16 %v3558_v30, %v3554_v43  ;;  %v4443_v44 = vld [vmem:[#allocation23 + $0x1] ss:$0 sm:$0xff] }
0x1d6a   :  { %v3561_v53 = vmul.f32 %v3553_v48, %v6529_v35  ;;  %v3564_v56 = vpack.c.bf16 %v3560_v46, %v3556_v45 }
0x1d6b   :  { %v3563_v8 = vpack.c.bf16 %v3559_v59, %v3555_v49  ;;  %v5167_v59 = vld [vmem:[%s6643_s18 + $0x20] sm:$0xff]  }
0x1d6c   :  { %v3565_v20 = vpack.c.bf16 %v3561_v53, %v3557_v22  ;;  %v5169_v22 = vld [vmem:[%s6643_s18 + $0x30] sm:$0xff]   ;;  %v5170_v53 = vld [vmem:[%s6643_s18 + $0x38] sm:$0xff]  }
0x1d6d   :  { %3863 = vmatprep.mubr.bf16.mxu0 %v3563_v8 }
0x1d6e   :  { %3904 = vmatprep.mubr.bf16.mxu1 %v3565_v20  ;;  %3864 = vmatmul.mubr.bf16.vlgmr.msra.gmra.mrb[68].mxu0 %v3562_v60  ;;  %v5168_v60 = vld [vmem:[%s6643_s18 + $0x28] sm:$0xff]   ;;  %s5719_s18 = smov [#allocation28]  }
0x1d6f   :  { %3905 = vmatmul.mubr.bf16.vlgmr.msra.gmra.mrb[68].mxu1 %v3564_v56  ;;  %4858 = vmatprep.mubr.msk.bf16.mxu0 %vm5716_vm0, %v5714_v4  ;;  %v4444_v56 = vld [vmem:[#allocation26] ss:$0 sm:$0xff]  ;;  %s4192_s10 = sshll.u32 %s5719_s18, 4  ;;  %s4193_s10 = int_to_ptr.vmem [resolvable:$true] %s4192_s10 }
0x1d70   :  { %4878 = vmatprep.mubr.msk.bf16.mxu1 %vm5716_vm0, %v5714_v4  ;;  %4843 = vmatpush3.bf16.msra.mxu0 %v5155_v2  ;;  %s5645_s25 = scalar_lea.vmem %s4193_s10, 256  ;;  %p5650_p3 = scmp.lt.s32.totalorder %s4193_s10, %s4193_s10 }
0x1d71   :  { %4844 = vmatprep.subr.bf16.mxu0 %v5714_v4  ;;  %4863 = vmatpush3.bf16.msra.mxu1 %v5163_v26  ;;  %p5646_p2 = scmp.ne.s32.totalorder %s4193_s10, %s5645_s25  ;;  %p5651_p4 = scmp.lt.s32.totalorder %s5645_s25, %s5645_s25 }
0x1d72   :  { %4864 = vmatprep.subr.bf16.mxu1 %v5714_v4 }
0x1d73   :  { %p5652_p5 = por %p5651_p4, %p5650_p3 }
0x1d74   :  { %4845 = vmatpush3.bf16.msra.mxu0 %v5156_v12 }
0x1d75   :  { %4846 = vmatprep.subr.bf16.mxu0 %v5714_v4  ;;  %4865 = vmatpush3.bf16.msra.mxu1 %v5164_v55  ;;  %p5653_p6 = pnand %p5652_p5, %p5646_p2 }
0x1d76   :  { %4866 = vmatprep.subr.bf16.mxu1 %v5714_v4 }
0x1d79   :  { %4867 = vmatpush3.bf16.msra.mxu1 %v5165_v29 }
0x1d7a   :  { %4868 = vmatprep.subr.bf16.mxu1 %v5714_v4 }
0x1d7d   :  { %4869 = vmatpush3.bf16.msra.mxu1 %v5166_v57 }
0x1d7e   :  { %4870 = vmatprep.subr.bf16.mxu1 %v5714_v4 }
0x1d81   :  { %4871 = vmatpush3.bf16.msra.mxu1 %v5167_v59 }
0x1d82   :  { %4872 = vmatprep.subr.bf16.mxu1 %v5714_v4 }
0x1d85   :  { %4873 = vmatpush3.bf16.msra.mxu1 %v5168_v60 }
0x1d86   :  { %4874 = vmatprep.subr.bf16.mxu1 %v5714_v4 }
0x1d89   :  { %4875 = vmatpush3.bf16.msra.mxu1 %v5169_v22 }
0x1d8a   :  { %4876 = vmatprep.subr.bf16.mxu1 %v5714_v4 }
0x1d8d   :  { %4877 = vmatpush3.bf16.msra.mxu1 %v5170_v53 }
0x1e41   :  { %v4596_v25 = vpop.f32.mrb[68].mxu0 }
0x1e42   :  { %v4618_v24 = vpop.f32.mrb[68].mxu1  ;;  %v4597_v1 = vpop.f32.mrb[69].mxu0 }
0x1e43   :  { %v4598_v23 = vadd.f32 %v4597_v1, %v4596_v25  ;;  %v4619_v34 = vpop.f32.mrb[69].mxu1  ;;  %v4599_v35 = vpop.f32.mrb[70].mxu0 }
0x1e44   :  { %v4620_v9 = vadd.f32 %v4619_v34, %v4618_v24  ;;  %v4621_v52 = vpop.f32.mrb[70].mxu1  ;;  %v4600_v18 = vpop.f32.mrb[71].mxu0 }
0x1e45   :  { %v3866_v19 = vadd.f32 %v4598_v23, %v4409_v58  ;;  %v4601_v16 = vadd.f32 %v4600_v18, %v4599_v35  ;;  %v4622_v11 = vpop.f32.mrb[71].mxu1 }
0x1e46   :  { %v4623_v28 = vadd.f32 %v4622_v11, %v4621_v52 }
0x1e47   :  { %v3907_v61 = vadd.f32 %v4620_v9, %v3866_v19  ;;  %v3869_v51 = vadd.f32 %v4601_v16, %v4409_v58  ;;  %v4453_v9 = vld [vmem:[%s6644_s19] ss:$0 sm:$0xff] }
0x1e49   :  { %v3910_v63 = vadd.f32 %v4623_v28, %v3869_v51  ;;  %v3913_v39 = vadd.f32 %v3907_v61, %v6494_v38  ;;  %v5157_v38 = vld [vmem:[#allocation25 + $0x10] sm:$0xff]  }
0x1e4a   :  { %4847 = vmatpush3.bf16.msra.mxu0 %v5157_v38 }
0x1e4b   :  { %3919 = vadd.xlane.f32.xlu1 %v3913_v39  ;;  %v3914_v0 = vadd.f32 %v3910_v63, %v6496_v40  ;;  %4848 = vmatprep.subr.bf16.mxu0 %v5714_v4  ;;  %v5158_v40 = vld [vmem:[#allocation25 + $0x18] sm:$0xff]  }
0x1e4d   :  { %3921 = vadd.xlane.f32.xlu0 %v3914_v0 }
0x1e4e   :  { %4849 = vmatpush3.bf16.msra.mxu0 %v5158_v40 }
0x1e4f   :  { %4850 = vmatprep.subr.bf16.mxu0 %v5714_v4 }
0x1e52   :  { %4851 = vmatpush3.bf16.msra.mxu0 %v5159_v13 }
0x1e53   :  { %4852 = vmatprep.subr.bf16.mxu0 %v5714_v4 }
0x1e56   :  { %4853 = vmatpush3.bf16.msra.mxu0 %v5160_v17 }
0x1e57   :  { %4854 = vmatprep.subr.bf16.mxu0 %v5714_v4 }
0x1e5a   :  { %4855 = vmatpush3.bf16.msra.mxu0 %v5161_v14 }
0x1e5b   :  { %4856 = vmatprep.subr.bf16.mxu0 %v5714_v4 }
0x1e5e   :  { %4857 = vmatpush3.bf16.msra.mxu0 %v5162_v21 }
0x1ed8   :  { %v3920_v3 = vpop.xlane.xlu1 %3919 }
0x1ed9   :  { %v3923_v5 = vmul.f32 0.0078125, %v3920_v3 }
0x1eda   :  { %v3922_v27 = vpop.xlane.xlu0 %3921 }
0x1edb   :  { %v3925_v6 = vsub.f32 %v3913_v39, %v3923_v5  ;;  %v3924_v15 = vmul.f32 0.0078125, %v3922_v27 }
0x1edd   :  { %v3926_v7 = vsub.f32 %v3914_v0, %v3924_v15  ;;  %v3927_v47 = vmul.f32 %v3925_v6, %v3925_v6 }
0x1edf   :  { %3929 = vadd.xlane.f32.xlu0 %v3927_v47  ;;  %v3928_v10 = vmul.f32 %v3926_v7, %v3926_v7 }
0x1ee3   :  { %3931 = vadd.xlane.f32.xlu0 %v3928_v10 }
0x1f6c   :  { %v3930_v54 = vpop.xlane.xlu0 %3929 }
0x1f6d   :  { %v3933_v62 = vmul.f32 0.0078125, %v3930_v54 }
0x1f6f   :  { %v3935_v31 = vadd.f32 1e-12, %v3933_v62 }
0x1f70   :  { %v3932_v32 = vpop.xlane.xlu0 %3931 }
0x1f71   :  { %5283 = vrsqrt.f32 %v3935_v31  ;;  %v3934_v33 = vmul.f32 0.0078125, %v3932_v32 }
0x1f73   :  { %v3936_v50 = vadd.f32 1e-12, %v3934_v33 }
0x1f75   :  { %5285 = vrsqrt.f32 %v3936_v50 }
0x1f7b   :  { %v5284_v36 = vpop.eup %5283 }
0x1f7c   :  { %v3939_v37 = vmul.f32 %v5284_v36, %v3925_v6 }
0x1f7e   :  { %v3947_v30 = vmul.f32 %v4442_v41, %v3939_v37 }
0x1f7f   :  { %v5286_v42 = vpop.eup %5285 }
0x1f80   :  { %v3940_v43 = vmul.f32 %v5286_v42, %v3926_v7  ;;  %v3955_v46 = vadd.f32 %v4443_v44, %v3947_v30 }
0x1f82   :  { %v3948_v45 = vmul.f32 %v4442_v41, %v3940_v43 }
0x1f84   :  { %v3956_v48 = vadd.f32 %v4443_v44, %v3948_v45 }
0x1f86   :  { %v3957_v49 = vpack.c.bf16 %v3956_v48, %v3955_v46 }
0x1f88   :  { %4859 = vmatmul.mubr.bf16.vlgmr.msra.gmra.mrb[72].mxu0 %v3957_v49 }
0x205b   :  { %v4063_v8 = vpop.f32.mrb[72].mxu0 }
0x205c   :  { %v4064_v20 = vadd.f32 %v4444_v56, %v4063_v8  ;;  %v4860_v25 = vpop.f32.mrb[73].mxu0 }
0x205d   :  { %v4066_v24 = vpop.f32.mrb[74].mxu0 }
0x205e   :  { %v4067_v58 = vadd.f32 %v4444_v56, %v4066_v24  ;;  %v4861_v1 = vpop.f32.mrb[75].mxu0  ;;  %5287 = vtanh.f32 %v4064_v20 }
0x2060   :  { %5289 = vtanh.f32 %v4067_v58 }
0x2068   :  { %v5288_v23 = vpop.eup %5287 }
0x206a   :  { %v5290_v34 = vpop.eup %5289 }
0x206b   :  { %v4072_v35 = vpack.c.bf16 %v5290_v34, %v5288_v23 }
0x206d   :  { %4879 = vmatmul.mubr.bf16.vlgmr.msra.gmra.mrb[72].mxu1 %v4072_v35 }
0x2140   :  { %v4178_v52 = vpop.f32.mrb[72].mxu1 }
0x2141   :  { %v4179_v4 = vadd.f32 %v4453_v9, %v4178_v52  ;;  %v4880_v18 = vpop.f32.mrb[73].mxu1 }
0x2142   :  { %v4181_v19 = vpop.f32.mrb[74].mxu1 }
0x2143   :  { %4185 = vst [vmem:[#allocation28] sm:$0xff] %v4179_v4  ;;  %v4182_v16 = vadd.f32 %v4453_v9, %v4181_v19  ;;  %v4881_v11 = vpop.f32.mrb[75].mxu1 }
0x2145   :  { %4186 = vst [vmem:[#allocation28 + $0x8] sm:$0xff] %v4182_v16 }
0x2146   :  { %5656 = shalt.err (!%p5653_p6)
}
0x2147   :  { %s5657_s30 = scalar_lea.hbm %s6645_s20, 256 }
0x2148   :  { %p5658_p7 = scmp.ne.s32.totalorder %s6645_s20, %s5657_s30  ;;  %p5661_p8 = scmp.lt.u32.totalorder %s5657_s30, %s6645_s20 }
0x214a   :  { %p5663_p9 = pnand %p5661_p8, %p5658_p7 }
0x214c   :  { %5666 = shalt.err (!%p5663_p9)
}
0x214d   :  { %4198 = dma.vmem_to_hbm [thread:$0]  %s4193_s10, 256, %s6645_s20, [#allocation4], %s6669_s26, %s6669_s26, %s6668_s15  }
0x214e   :  { %5685 = dma.done.wait [#allocation4], 256  }
0x214f   :  { %5686 = vsyncadd [#allocation4], 4294967040 }
0x2150   :  { %4202 = vsyncpa [#allocation3], 1 }
0x2151   :  { %4203 = vsyncpa [#allocation6], 1 }
0x2152   :  { %4204 = vsyncpa [#allocation9], 1 }
0x2153   :  { %4205 = vsyncpa [#allocation12], 1 }
0x2154   :  { %4206 = vsyncpa [#allocation15], 1 }
0x2155   :  { %4207 = vsyncpa [#allocation18], 1 }
0x2156   :  { %4208 = vsyncpa [#allocation21], 1 }
0x2157   :  { %4209 = vsyncpa [#allocation24], 1 }
0x2158   :  { %4210 = vsyncpa [#allocation27], 1 }
0x2159   :  { %4211 = vsyncpa [#allocation4], 1 }

</bundles_post_ra>
